<compile_context>
chip_gen: v7x
topology: tpu7x:2x2x1
jax: 0.10.0
libtpu: 0.0.40
codegen_flags: <defaults>
</compile_context>

<pallas_src>
import functools

import jax
import jax.numpy as jnp
from jax.experimental import pallas as pl
from jax.experimental.pallas import tpu as pltpu

F32 = jnp.float32
BN_EPS = 1e-5


# ----------------------------------------------------------------------------
# Fused whole-network kernel (one image per grid step)
# ----------------------------------------------------------------------------
def _fused_net_kernel(cfg, q_ref, w1_ref, s1_ref, w2_ref, s2_ref, w3_ref,
                      s3_ref, w4_ref, s4_ref, w5_ref, s5_ref, wfc_ref,
                      bfc_ref, logp_ref, z_ref, p1_ref, y2_ref, y3_ref,
                      y5_ref):
    WP = cfg["wp"]                 # physical row stride of the flat layout (12)
    K = cfg["k"]                   # 3 (conv2..conv4 kernel size)
    M1, M2, M3, M4 = cfg["m1"], cfg["m2"], cfg["m3"], cfg["m4"]

    # ---- layer 1: conv1(5x5,1->32) + bias + ReLU + 2x2 max-pool -------------
    # q_ref: (1, 4, 144, 25) pool-quadrant im2col patches (built by wrapper).
    w1 = w1_ref[...]                                            # (25, 32)
    acc1 = None
    for qi in range(4):
        c = jnp.dot(q_ref[0, qi], w1, preferred_element_type=F32)  # (144, 32)
        acc1 = c if acc1 is None else jnp.maximum(acc1, c)
    p1 = jnp.maximum(acc1 + s1_ref[...], 0.0)                   # (144, 32)
    p1_ref[pl.ds(0, M1), :] = p1
    pad1 = p1_ref.shape[0] - M1
    p1_ref[pl.ds(M1, pad1), :] = jnp.zeros((pad1, p1.shape[1]), F32)

    # ---- layer 2: conv2(3x3,32->64) [bn1 pre, bn2 post folded] + ReLU -------
    acc2 = jnp.zeros((M2, w2_ref.shape[2]), F32)
    for i in range(K):
        for j in range(K):
            win = p1_ref[pl.ds(i * WP + j, M2), :]              # (120, 32)
            acc2 = acc2 + jnp.dot(win, w2_ref[i * K + j],
                                  preferred_element_type=F32)
    y2 = jnp.maximum(acc2 + s2_ref[...], 0.0)                   # (120, 64)
    y2_ref[pl.ds(0, M2), :] = y2
    pad2 = y2_ref.shape[0] - M2
    y2_ref[pl.ds(M2, pad2), :] = jnp.zeros((pad2, y2.shape[1]), F32)

    # ---- layer 3: conv3(3x3,64->64) [bn3 post folded] + ReLU ----------------
    acc3 = jnp.zeros((M3, w3_ref.shape[2]), F32)
    for i in range(K):
        for j in range(K):
            win = y2_ref[pl.ds(i * WP + j, M3), :]              # (96, 64)
            acc3 = acc3 + jnp.dot(win, w3_ref[i * K + j],
                                  preferred_element_type=F32)
    y3 = jnp.maximum(acc3 + s3_ref[...], 0.0)                   # (96, 64)
    y3_ref[...] = y3

    # ---- layer 4: 2x2 max-pool folded into tap reads, then conv4(3x3,64->128)
    #      [pool_bn3 pre, bn4 post folded] + ReLU.  Only rows {0,2,24,26} of
    #      the (27, 128) accumulator are valid (the 2x2 spatial grid).
    pool_d = (0, 1, WP, WP + 1)
    acc4 = jnp.zeros((M4, w4_ref.shape[2]), F32)
    for i in range(K):
        for j in range(K):
            base = 2 * i * WP + 2 * j
            win = y3_ref[pl.ds(base + pool_d[0], M4), :]
            for d in pool_d[1:]:
                win = jnp.maximum(win, y3_ref[pl.ds(base + d, M4), :])
            acc4 = acc4 + jnp.dot(win, w4_ref[i * K + j],
                                  preferred_element_type=F32)
    y4 = jnp.maximum(acc4 + s4_ref[...], 0.0)                   # (27, 128)

    # ---- head: conv5(1x1)+bn5+ReLU -> global avg pool -> fc -> log_softmax --
    y5 = jnp.maximum(jnp.dot(y4, w5_ref[...], preferred_element_type=F32)
                     + s5_ref[...], 0.0)                        # (27, Cd)
    y5_ref[pl.ds(0, M4), :] = y5
    rows = cfg["head_rows"]                                     # (0, 2, 24, 26)
    zsum = y5_ref[pl.ds(rows[0], 1), :]
    for r in rows[1:]:
        zsum = zsum + y5_ref[pl.ds(r, 1), :]
    z = zsum * (1.0 / float(len(rows)))                         # (1, Cd)

    logits = jnp.dot(z, wfc_ref[...],
                     preferred_element_type=F32) + bfc_ref[...]  # (1, out)
    m = jnp.max(logits, axis=1, keepdims=True)
    sh = logits - m
    lse = jnp.log(jnp.sum(jnp.exp(sh), axis=1, keepdims=True))
    logp_ref[0] = (sh - lse).astype(logp_ref.dtype)
    z_ref[0] = z.astype(z_ref.dtype)


# ----------------------------------------------------------------------------
# Host-side (trace-time) BatchNorm / bias folding
# ----------------------------------------------------------------------------
def _bn_affine(bn, eps=BN_EPS):
    s = bn["gamma"] * jax.lax.rsqrt(bn["var"] + eps)
    t = bn["beta"] - bn["mean"] * s
    return s, t


def _fold_conv(w_oihw, bias, pre=None, post=None, eps=BN_EPS):
    """Return (w_eff (kh,kw,Cin,Cout), shift_eff (Cout,)) with
         post_bn(conv(pre_bn(x), w) + bias) == conv(x, w_eff) + shift_eff
    for eval-mode BN affines and a valid (no-pad) stride-1 conv."""
    w = jnp.transpose(w_oihw, (2, 3, 1, 0)).astype(F32)   # (kh, kw, Cin, Cout)
    shift = bias.astype(F32)
    if pre is not None:
        ps, pt = _bn_affine(pre, eps)
        shift = shift + jnp.einsum("ijcd,c->d", w, pt)
        w = w * ps[None, None, :, None]
    if post is not None:
        qs, qt = _bn_affine(post, eps)
        shift = qs * shift + qt
        w = w * qs[None, None, None, :]
    return w, shift


# ----------------------------------------------------------------------------
# Forward pass (matches Net.forward, eval-mode BN) -- single pallas_call
# ----------------------------------------------------------------------------
def net_forward(params, x_nchw):
    p = params
    B = x_nchw.shape[0]
    x = x_nchw.astype(F32)[:, 0]                   # (B, 28, 28), Cin == 1

    # fold conv biases / eval-mode BNs into per-layer (w_eff, shift)
    w1, s1 = _fold_conv(p["conv1_w"], p["conv1_b"])
    w2, s2 = _fold_conv(p["conv2_w"], p["conv2_b"], pre=p["bn1"], post=p["bn2"])
    w3, s3 = _fold_conv(p["conv3_w"], p["conv3_b"], post=p["bn3"])
    w4, s4 = _fold_conv(p["conv4_w"], p["conv4_b"], pre=p["pool_bn3"],
                        post=p["bn4"])
    w5, s5 = _fold_conv(p["conv5_w"], p["conv5_b"], post=p["bn5"])

    K1, C1 = w1.shape[0], w1.shape[3]              # 5, 32
    H, W = x.shape[1], x.shape[2]                  # 28, 28
    Ho1, Wo1 = H - K1 + 1, W - K1 + 1              # 24, 24
    HP, WP = Ho1 // 2, Wo1 // 2                    # 12, 12

    # conv1 im2col, grouped by 2x2 pool quadrant (one-time XLA preprocessing).
    taps = [x[:, i:i + Ho1, j:j + Wo1] for i in range(K1) for j in range(K1)]
    pf = jnp.stack(taps, axis=-1)                               # (B,24,24,25)
    quads = [pf[:, a::2, b::2, :] for a in (0, 1) for b in (0, 1)]
    patches = jnp.stack(quads, axis=1).reshape(B, 4, HP * WP, K1 * K1)

    # flattened per-tap weights (trace-time reshapes)
    w1f = w1.reshape(K1 * K1, C1)                               # (25, 32)
    K = w2.shape[0]                                             # 3
    C2, C3, C4 = w2.shape[3], w3.shape[3], w4.shape[3]          # 64, 64, 128
    Cd = w5.shape[3]
    w2f = w2.reshape(K * K, w2.shape[2], C2)                    # (9, 32, 64)
    w3f = w3.reshape(K * K, w3.shape[2], C3)                    # (9, 64, 64)
    w4f = w4.reshape(K * K, w4.shape[2], C4)                    # (9, 64, 128)
    w5f = w5.reshape(w5.shape[2], Cd)                           # (128, Cd)
    wfc = jnp.transpose(p["fc_w"]).astype(F32)                  # (Cd, out)
    out_dim = wfc.shape[1]

    # static geometry of the flat (row = h*WP + w) layout
    H2 = HP - K + 1                                             # 10
    H3 = H2 - K + 1                                             # 8
    M1 = HP * WP                                                # 144
    M2 = H2 * WP                                                # 120
    M3 = H3 * WP                                                # 96
    M4 = 2 * WP + 2 + 1                                         # 27

    def rup8(n):
        return ((n + 7) // 8) * 8

    p1_rows = rup8((K - 1) * WP + (K - 1) + M2)                 # 152
    y2_rows = rup8((K - 1) * WP + (K - 1) + M3)                 # 128
    y3_rows = M3                                                # 96 (reads <= 92)

    cfg = dict(wp=WP, k=K, m1=M1, m2=M2, m3=M3, m4=M4,
               head_rows=(0, 2, 2 * WP, 2 * WP + 2))
    kernel = functools.partial(_fused_net_kernel, cfg)

    in_specs = [
        pl.BlockSpec((1, 4, M1, K1 * K1), lambda b: (b, 0, 0, 0)),
        pl.BlockSpec(w1f.shape, lambda b: (0, 0)),
        pl.BlockSpec((1, C1), lambda b: (0, 0)),
        pl.BlockSpec(w2f.shape, lambda b: (0, 0, 0)),
        pl.BlockSpec((1, C2), lambda b: (0, 0)),
        pl.BlockSpec(w3f.shape, lambda b: (0, 0, 0)),
        pl.BlockSpec((1, C3), lambda b: (0, 0)),
        pl.BlockSpec(w4f.shape, lambda b: (0, 0, 0)),
        pl.BlockSpec((1, C4), lambda b: (0, 0)),
        pl.BlockSpec(w5f.shape, lambda b: (0, 0)),
        pl.BlockSpec((1, Cd), lambda b: (0, 0)),
        pl.BlockSpec(wfc.shape, lambda b: (0, 0)),
        pl.BlockSpec((1, out_dim), lambda b: (0, 0)),
    ]
    out_specs = (pl.BlockSpec((1, 1, out_dim), lambda b: (b, 0, 0)),
                 pl.BlockSpec((1, 1, Cd), lambda b: (b, 0, 0)))
    out_shape = (jax.ShapeDtypeStruct((B, 1, out_dim), F32),
                 jax.ShapeDtypeStruct((B, 1, Cd), F32))
    scratch = [pltpu.VMEM((p1_rows, C1), F32),
               pltpu.VMEM((y2_rows, C2), F32),
               pltpu.VMEM((y3_rows, C3), F32),
               pltpu.VMEM((rup8(M4), Cd), F32)]

    # NOTE(v7x): for B == 1 only one TensorCore gets work; a second parallel
    # axis (e.g. over pool quadrants) could recover it, omitted for clarity.
    logp3, z3 = pl.pallas_call(
        kernel,
        out_shape=out_shape,
        grid=(B,),
        in_specs=in_specs,
        out_specs=out_specs,
        scratch_shapes=scratch,
        compiler_params=pltpu.CompilerParams(
            dimension_semantics=("parallel",)),
    )(patches, w1f, s1.reshape(1, C1), w2f, s2.reshape(1, C2),
      w3f, s3.reshape(1, C3), w4f, s4.reshape(1, C4),
      w5f, s5.reshape(1, Cd), wfc, p["fc_b"].reshape(1, out_dim).astype(F32))

    return logp3[:, 0, :], z3[:, 0, :]


# ----------------------------------------------------------------------------
# Parameters (deterministic, synthetic)
# ----------------------------------------------------------------------------
def init_params(key, output_dim, cluster_dim):
    ks = jax.random.split(key, 12)
    p = {}

    def conv(kw_, kb_, cout, cin, k):
        w = jax.random.normal(kw_, (cout, cin, k, k), F32) * 0.1
        b = jax.random.normal(kb_, (cout,), F32) * 0.01
        return w, b

    p["conv1_w"], p["conv1_b"] = conv(ks[0], ks[1], 32, 1, 5)
    p["conv2_w"], p["conv2_b"] = conv(ks[2], ks[3], 64, 32, 3)
    p["conv3_w"], p["conv3_b"] = conv(ks[4], ks[5], 64, 64, 3)
    p["conv4_w"], p["conv4_b"] = conv(ks[6], ks[7], 128, 64, 3)
    p["conv5_w"], p["conv5_b"] = conv(ks[8], ks[9], cluster_dim, 128, 1)

    def bn(c):
        return dict(gamma=jnp.ones((c,), F32), beta=jnp.zeros((c,), F32),
                    mean=jnp.zeros((c,), F32), var=jnp.ones((c,), F32))

    p["bn1"], p["bn2"], p["bn3"] = bn(32), bn(64), bn(64)
    p["pool_bn3"], p["bn4"], p["bn5"] = bn(64), bn(128), bn(cluster_dim)

    p["fc_w"] = jax.random.normal(ks[10], (output_dim, cluster_dim), F32) * 0.1
    p["fc_b"] = jax.random.normal(ks[11], (output_dim,), F32) * 0.01
    return p


# ----------------------------------------------------------------------------
# Pure-JAX reference (for correctness check)
# ----------------------------------------------------------------------------
def net_reference(params, x_nchw):
    p = params
    x = jnp.transpose(x_nchw, (0, 2, 3, 1)).astype(F32)

    def conv(v, w_oihw, b):
        w = jnp.transpose(w_oihw, (2, 3, 1, 0))
        y = jax.lax.conv_general_dilated(
            v, w, (1, 1), "VALID",
            dimension_numbers=("NHWC", "HWIO", "NHWC"))
        return y + b

    def bn(v, bnp):
        s, t = _bn_affine(bnp)
        return v * s + t

    def pool(v):
        B, H, W, C = v.shape
        return v.reshape(B, H // 2, 2, W // 2, 2, C).max(axis=(2, 4))

    relu = lambda v: jnp.maximum(v, 0.0)
    x = bn(pool(relu(conv(x, p["conv1_w"], p["conv1_b"]))), p["bn1"])
    x = relu(bn(conv(x, p["conv2_w"], p["conv2_b"]), p["bn2"]))
    x = bn(pool(relu(bn(conv(x, p["conv3_w"], p["conv3_b"]), p["bn3"]))),
           p["pool_bn3"])
    x = relu(bn(conv(x, p["conv4_w"], p["conv4_b"]), p["bn4"]))
    x = relu(bn(conv(x, p["conv5_w"], p["conv5_b"]), p["bn5"]))
    z = jnp.mean(x, axis=(1, 2))
    logits = z @ p["fc_w"].T + p["fc_b"]
    logp = jax.nn.log_softmax(logits, axis=1)
    return logp, z


# ----------------------------------------------------------------------------
if __name__ == "__main__":
    output_dim, cluster_dim = 10, 16
    key = jax.random.PRNGKey(0)
    k_param, k_x = jax.random.split(key)

    params = init_params(k_param, output_dim, cluster_dim)
    # MNIST-like input implied by conv1(1, 32, 5): (B=2, C=1, 28, 28)
    x = jax.random.normal(k_x, (2, 1, 28, 28), F32)

    logp, z = jax.jit(net_forward)(params, x)
    jax.block_until_ready((logp, z))

    assert logp.shape == (2, output_dim) and z.shape == (2, cluster_dim)
    # log_softmax rows must (numerically) sum to 1 in prob space
    assert jnp.allclose(jnp.sum(jnp.exp(logp), axis=1), 1.0, atol=1e-4)

    # cross-check against a pure-JAX reference of the same module
    ref_logp, ref_z = jax.jit(net_reference)(params, x)
    assert jnp.allclose(logp, ref_logp, atol=5e-3, rtol=5e-3)
    assert jnp.allclose(z, ref_z, atol=5e-3, rtol=5e-3)

    print("KERNEL_OK")
</pallas_src>

<mosaic_0001>
module attributes {stable_mosaic.version = 11 : i64} {
  func.func @_fused_net_kernel(%arg0: i32, %arg1: memref<1x4x144x25xf32, #tpu.memory_space<vmem>>, %arg2: memref<25x32xf32, #tpu.memory_space<vmem>>, %arg3: memref<1x32xf32, #tpu.memory_space<vmem>>, %arg4: memref<9x32x64xf32, #tpu.memory_space<vmem>>, %arg5: memref<1x64xf32, #tpu.memory_space<vmem>>, %arg6: memref<9x64x64xf32, #tpu.memory_space<vmem>>, %arg7: memref<1x64xf32, #tpu.memory_space<vmem>>, %arg8: memref<9x64x128xf32, #tpu.memory_space<vmem>>, %arg9: memref<1x128xf32, #tpu.memory_space<vmem>>, %arg10: memref<128x16xf32, #tpu.memory_space<vmem>>, %arg11: memref<1x16xf32, #tpu.memory_space<vmem>>, %arg12: memref<16x10xf32, #tpu.memory_space<vmem>>, %arg13: memref<1x10xf32, #tpu.memory_space<vmem>>, %arg14: memref<1x1x10xf32, #tpu.memory_space<vmem>>, %arg15: memref<1x1x16xf32, #tpu.memory_space<vmem>>, %arg16: memref<152x32xf32, #tpu.memory_space<vmem>>, %arg17: memref<128x64xf32, #tpu.memory_space<vmem>>, %arg18: memref<96x64xf32, #tpu.memory_space<vmem>>, %arg19: memref<32x16xf32, #tpu.memory_space<vmem>>) attributes {dimension_semantics = [#tpu.dimension_semantics<parallel>], iteration_bounds = array<i64: 2>, scalar_prefetch = 0 : i64, scratch_operands = 4 : i64, tpu.core_type = #tpu.core_type<tc>, window_params = [{transform_indices = @transform_0, window_bounds = array<i64: 1, 4, 144, 25>}, {pipeline_mode = #tpu.pipeline_mode<synchronous>, transform_indices = @transform_1, window_bounds = array<i64: 25, 32>}, {pipeline_mode = #tpu.pipeline_mode<synchronous>, transform_indices = @transform_2, window_bounds = array<i64: 1, 32>}, {pipeline_mode = #tpu.pipeline_mode<synchronous>, transform_indices = @transform_3, window_bounds = array<i64: 9, 32, 64>}, {pipeline_mode = #tpu.pipeline_mode<synchronous>, transform_indices = @transform_4, window_bounds = array<i64: 1, 64>}, {pipeline_mode = #tpu.pipeline_mode<synchronous>, transform_indices = @transform_5, window_bounds = array<i64: 9, 64, 64>}, {pipeline_mode = #tpu.pipeline_mode<synchronous>, transform_indices = @transform_6, window_bounds = array<i64: 1, 64>}, {pipeline_mode = #tpu.pipeline_mode<synchronous>, transform_indices = @transform_7, window_bounds = array<i64: 9, 64, 128>}, {pipeline_mode = #tpu.pipeline_mode<synchronous>, transform_indices = @transform_8, window_bounds = array<i64: 1, 128>}, {pipeline_mode = #tpu.pipeline_mode<synchronous>, transform_indices = @transform_9, window_bounds = array<i64: 128, 16>}, {pipeline_mode = #tpu.pipeline_mode<synchronous>, transform_indices = @transform_10, window_bounds = array<i64: 1, 16>}, {pipeline_mode = #tpu.pipeline_mode<synchronous>, transform_indices = @transform_11, window_bounds = array<i64: 16, 10>}, {pipeline_mode = #tpu.pipeline_mode<synchronous>, transform_indices = @transform_12, window_bounds = array<i64: 1, 10>}, {transform_indices = @transform_13, window_bounds = array<i64: 1, 1, 10>}, {transform_indices = @transform_14, window_bounds = array<i64: 1, 1, 16>}]} {
    %c0 = arith.constant 0 : index
    %c0_0 = arith.constant 0 : index
    %0 = vector.load %arg2[%c0, %c0_0] : memref<25x32xf32, #tpu.memory_space<vmem>>, vector<25x32xf32>
    %c0_1 = arith.constant 0 : index
    %c0_2 = arith.constant 0 : index
    %c0_3 = arith.constant 0 : index
    %c0_4 = arith.constant 0 : index
    %1 = vector.load %arg1[%c0_1, %c0_2, %c0_3, %c0_4] : memref<1x4x144x25xf32, #tpu.memory_space<vmem>>, vector<1x1x144x25xf32>
    %2 = vector.shape_cast %1 : vector<1x1x144x25xf32> to vector<144x25xf32>
    %cst = arith.constant dense<0.000000e+00> : vector<144x32xf32>
    %3 = tpu.matmul %2, %0, %cst {dimension_numbers = #tpu.dot_dimension_numbers<[1], [0], [0], [1], [0, 0, 1, 1], [], []>} : vector<144x25xf32>, vector<25x32xf32>, vector<144x32xf32> -> vector<144x32xf32>
    %c0_5 = arith.constant 0 : index
    %c1 = arith.constant 1 : index
    %c0_6 = arith.constant 0 : index
    %c0_7 = arith.constant 0 : index
    %4 = vector.load %arg1[%c0_5, %c1, %c0_6, %c0_7] : memref<1x4x144x25xf32, #tpu.memory_space<vmem>>, vector<1x1x144x25xf32>
    %5 = vector.shape_cast %4 : vector<1x1x144x25xf32> to vector<144x25xf32>
    %cst_8 = arith.constant dense<0.000000e+00> : vector<144x32xf32>
    %6 = tpu.matmul %5, %0, %cst_8 {dimension_numbers = #tpu.dot_dimension_numbers<[1], [0], [0], [1], [0, 0, 1, 1], [], []>} : vector<144x25xf32>, vector<25x32xf32>, vector<144x32xf32> -> vector<144x32xf32>
    %7 = arith.maximumf %3, %6 : vector<144x32xf32>
    %c0_9 = arith.constant 0 : index
    %c2 = arith.constant 2 : index
    %c0_10 = arith.constant 0 : index
    %c0_11 = arith.constant 0 : index
    %8 = vector.load %arg1[%c0_9, %c2, %c0_10, %c0_11] : memref<1x4x144x25xf32, #tpu.memory_space<vmem>>, vector<1x1x144x25xf32>
    %9 = vector.shape_cast %8 : vector<1x1x144x25xf32> to vector<144x25xf32>
    %cst_12 = arith.constant dense<0.000000e+00> : vector<144x32xf32>
    %10 = tpu.matmul %9, %0, %cst_12 {dimension_numbers = #tpu.dot_dimension_numbers<[1], [0], [0], [1], [0, 0, 1, 1], [], []>} : vector<144x25xf32>, vector<25x32xf32>, vector<144x32xf32> -> vector<144x32xf32>
    %11 = arith.maximumf %7, %10 : vector<144x32xf32>
    %c0_13 = arith.constant 0 : index
    %c3 = arith.constant 3 : index
    %c0_14 = arith.constant 0 : index
    %c0_15 = arith.constant 0 : index
    %12 = vector.load %arg1[%c0_13, %c3, %c0_14, %c0_15] : memref<1x4x144x25xf32, #tpu.memory_space<vmem>>, vector<1x1x144x25xf32>
    %13 = vector.shape_cast %12 : vector<1x1x144x25xf32> to vector<144x25xf32>
    %cst_16 = arith.constant dense<0.000000e+00> : vector<144x32xf32>
    %14 = tpu.matmul %13, %0, %cst_16 {dimension_numbers = #tpu.dot_dimension_numbers<[1], [0], [0], [1], [0, 0, 1, 1], [], []>} : vector<144x25xf32>, vector<25x32xf32>, vector<144x32xf32> -> vector<144x32xf32>
    %15 = arith.maximumf %11, %14 : vector<144x32xf32>
    %c0_17 = arith.constant 0 : index
    %c0_18 = arith.constant 0 : index
    %16 = vector.load %arg3[%c0_17, %c0_18] : memref<1x32xf32, #tpu.memory_space<vmem>>, vector<1x32xf32>
    %17 = vector.broadcast %16 : vector<1x32xf32> to vector<144x32xf32>
    %18 = arith.addf %15, %17 : vector<144x32xf32>
    %cst_19 = arith.constant 0.000000e+00 : f32
    %19 = vector.broadcast %cst_19 : f32 to vector<144x32xf32>
    %20 = arith.maximumf %18, %19 : vector<144x32xf32>
    %c0_20 = arith.constant 0 : index
    %c0_21 = arith.constant 0 : index
    %21 = vector.load %arg16[%c0_20, %c0_21] : memref<152x32xf32, #tpu.memory_space<vmem>>, vector<144x32xf32>
    tpu.vector_store %arg16[%c0_20, %c0_21], %20 {strides = array<i32>} : memref<152x32xf32, #tpu.memory_space<vmem>>, vector<144x32xf32>,
    %cst_22 = arith.constant 0.000000e+00 : f32
    %22 = vector.broadcast %cst_22 : f32 to vector<8x32xf32>
    %c144 = arith.constant 144 : index
    %c0_23 = arith.constant 0 : index
    %23 = vector.load %arg16[%c144, %c0_23] : memref<152x32xf32, #tpu.memory_space<vmem>>, vector<8x32xf32>
    tpu.vector_store %arg16[%c144, %c0_23], %22 {strides = array<i32>} : memref<152x32xf32, #tpu.memory_space<vmem>>, vector<8x32xf32>,
    %cst_24 = arith.constant 0.000000e+00 : f32
    %24 = vector.broadcast %cst_24 : f32 to vector<120x64xf32>
    %c0_25 = arith.constant 0 : index
    %c0_26 = arith.constant 0 : index
    %25 = vector.load %arg16[%c0_25, %c0_26] : memref<152x32xf32, #tpu.memory_space<vmem>>, vector<120x32xf32>
    %c0_27 = arith.constant 0 : index
    %c0_28 = arith.constant 0 : index
    %c0_29 = arith.constant 0 : index
    %26 = vector.load %arg4[%c0_27, %c0_28, %c0_29] : memref<9x32x64xf32, #tpu.memory_space<vmem>>, vector<1x32x64xf32>
    %27 = vector.shape_cast %26 : vector<1x32x64xf32> to vector<32x64xf32>
    %cst_30 = arith.constant dense<0.000000e+00> : vector<120x64xf32>
    %28 = tpu.matmul %25, %27, %cst_30 {dimension_numbers = #tpu.dot_dimension_numbers<[1], [0], [0], [1], [0, 0, 1, 1], [], []>} : vector<120x32xf32>, vector<32x64xf32>, vector<120x64xf32> -> vector<120x64xf32>
    %29 = arith.addf %24, %28 : vector<120x64xf32>
    %c1_31 = arith.constant 1 : index
    %c0_32 = arith.constant 0 : index
    %30 = vector.load %arg16[%c1_31, %c0_32] : memref<152x32xf32, #tpu.memory_space<vmem>>, vector<120x32xf32>
    %c1_33 = arith.constant 1 : index
    %c0_34 = arith.constant 0 : index
    %c0_35 = arith.constant 0 : index
    %31 = vector.load %arg4[%c1_33, %c0_34, %c0_35] : memref<9x32x64xf32, #tpu.memory_space<vmem>>, vector<1x32x64xf32>
    %32 = vector.shape_cast %31 : vector<1x32x64xf32> to vector<32x64xf32>
    %cst_36 = arith.constant dense<0.000000e+00> : vector<120x64xf32>
    %33 = tpu.matmul %30, %32, %cst_36 {dimension_numbers = #tpu.dot_dimension_numbers<[1], [0], [0], [1], [0, 0, 1, 1], [], []>} : vector<120x32xf32>, vector<32x64xf32>, vector<120x64xf32> -> vector<120x64xf32>
    %34 = arith.addf %29, %33 : vector<120x64xf32>
    %c2_37 = arith.constant 2 : index
    %c0_38 = arith.constant 0 : index
    %35 = vector.load %arg16[%c2_37, %c0_38] : memref<152x32xf32, #tpu.memory_space<vmem>>, vector<120x32xf32>
    %c2_39 = arith.constant 2 : index
    %c0_40 = arith.constant 0 : index
    %c0_41 = arith.constant 0 : index
    %36 = vector.load %arg4[%c2_39, %c0_40, %c0_41] : memref<9x32x64xf32, #tpu.memory_space<vmem>>, vector<1x32x64xf32>
    %37 = vector.shape_cast %36 : vector<1x32x64xf32> to vector<32x64xf32>
    %cst_42 = arith.constant dense<0.000000e+00> : vector<120x64xf32>
    %38 = tpu.matmul %35, %37, %cst_42 {dimension_numbers = #tpu.dot_dimension_numbers<[1], [0], [0], [1], [0, 0, 1, 1], [], []>} : vector<120x32xf32>, vector<32x64xf32>, vector<120x64xf32> -> vector<120x64xf32>
    %39 = arith.addf %34, %38 : vector<120x64xf32>
    %c12 = arith.constant 12 : index
    %c0_43 = arith.constant 0 : index
    %40 = vector.load %arg16[%c12, %c0_43] : memref<152x32xf32, #tpu.memory_space<vmem>>, vector<120x32xf32>
    %c3_44 = arith.constant 3 : index
    %c0_45 = arith.constant 0 : index
    %c0_46 = arith.constant 0 : index
    %41 = vector.load %arg4[%c3_44, %c0_45, %c0_46] : memref<9x32x64xf32, #tpu.memory_space<vmem>>, vector<1x32x64xf32>
    %42 = vector.shape_cast %41 : vector<1x32x64xf32> to vector<32x64xf32>
    %cst_47 = arith.constant dense<0.000000e+00> : vector<120x64xf32>
    %43 = tpu.matmul %40, %42, %cst_47 {dimension_numbers = #tpu.dot_dimension_numbers<[1], [0], [0], [1], [0, 0, 1, 1], [], []>} : vector<120x32xf32>, vector<32x64xf32>, vector<120x64xf32> -> vector<120x64xf32>
    %44 = arith.addf %39, %43 : vector<120x64xf32>
    %c13 = arith.constant 13 : index
    %c0_48 = arith.constant 0 : index
    %45 = vector.load %arg16[%c13, %c0_48] : memref<152x32xf32, #tpu.memory_space<vmem>>, vector<120x32xf32>
    %c4 = arith.constant 4 : index
    %c0_49 = arith.constant 0 : index
    %c0_50 = arith.constant 0 : index
    %46 = vector.load %arg4[%c4, %c0_49, %c0_50] : memref<9x32x64xf32, #tpu.memory_space<vmem>>, vector<1x32x64xf32>
    %47 = vector.shape_cast %46 : vector<1x32x64xf32> to vector<32x64xf32>
    %cst_51 = arith.constant dense<0.000000e+00> : vector<120x64xf32>
    %48 = tpu.matmul %45, %47, %cst_51 {dimension_numbers = #tpu.dot_dimension_numbers<[1], [0], [0], [1], [0, 0, 1, 1], [], []>} : vector<120x32xf32>, vector<32x64xf32>, vector<120x64xf32> -> vector<120x64xf32>
    %49 = arith.addf %44, %48 : vector<120x64xf32>
    %c14 = arith.constant 14 : index
    %c0_52 = arith.constant 0 : index
    %50 = vector.load %arg16[%c14, %c0_52] : memref<152x32xf32, #tpu.memory_space<vmem>>, vector<120x32xf32>
    %c5 = arith.constant 5 : index
    %c0_53 = arith.constant 0 : index
    %c0_54 = arith.constant 0 : index
    %51 = vector.load %arg4[%c5, %c0_53, %c0_54] : memref<9x32x64xf32, #tpu.memory_space<vmem>>, vector<1x32x64xf32>
    %52 = vector.shape_cast %51 : vector<1x32x64xf32> to vector<32x64xf32>
    %cst_55 = arith.constant dense<0.000000e+00> : vector<120x64xf32>
    %53 = tpu.matmul %50, %52, %cst_55 {dimension_numbers = #tpu.dot_dimension_numbers<[1], [0], [0], [1], [0, 0, 1, 1], [], []>} : vector<120x32xf32>, vector<32x64xf32>, vector<120x64xf32> -> vector<120x64xf32>
    %54 = arith.addf %49, %53 : vector<120x64xf32>
    %c24 = arith.constant 24 : index
    %c0_56 = arith.constant 0 : index
    %55 = vector.load %arg16[%c24, %c0_56] : memref<152x32xf32, #tpu.memory_space<vmem>>, vector<120x32xf32>
    %c6 = arith.constant 6 : index
    %c0_57 = arith.constant 0 : index
    %c0_58 = arith.constant 0 : index
    %56 = vector.load %arg4[%c6, %c0_57, %c0_58] : memref<9x32x64xf32, #tpu.memory_space<vmem>>, vector<1x32x64xf32>
    %57 = vector.shape_cast %56 : vector<1x32x64xf32> to vector<32x64xf32>
    %cst_59 = arith.constant dense<0.000000e+00> : vector<120x64xf32>
    %58 = tpu.matmul %55, %57, %cst_59 {dimension_numbers = #tpu.dot_dimension_numbers<[1], [0], [0], [1], [0, 0, 1, 1], [], []>} : vector<120x32xf32>, vector<32x64xf32>, vector<120x64xf32> -> vector<120x64xf32>
    %59 = arith.addf %54, %58 : vector<120x64xf32>
    %c25 = arith.constant 25 : index
    %c0_60 = arith.constant 0 : index
    %60 = vector.load %arg16[%c25, %c0_60] : memref<152x32xf32, #tpu.memory_space<vmem>>, vector<120x32xf32>
    %c7 = arith.constant 7 : index
    %c0_61 = arith.constant 0 : index
    %c0_62 = arith.constant 0 : index
    %61 = vector.load %arg4[%c7, %c0_61, %c0_62] : memref<9x32x64xf32, #tpu.memory_space<vmem>>, vector<1x32x64xf32>
    %62 = vector.shape_cast %61 : vector<1x32x64xf32> to vector<32x64xf32>
    %cst_63 = arith.constant dense<0.000000e+00> : vector<120x64xf32>
    %63 = tpu.matmul %60, %62, %cst_63 {dimension_numbers = #tpu.dot_dimension_numbers<[1], [0], [0], [1], [0, 0, 1, 1], [], []>} : vector<120x32xf32>, vector<32x64xf32>, vector<120x64xf32> -> vector<120x64xf32>
    %64 = arith.addf %59, %63 : vector<120x64xf32>
    %c26 = arith.constant 26 : index
    %c0_64 = arith.constant 0 : index
    %65 = vector.load %arg16[%c26, %c0_64] : memref<152x32xf32, #tpu.memory_space<vmem>>, vector<120x32xf32>
    %c8 = arith.constant 8 : index
    %c0_65 = arith.constant 0 : index
    %c0_66 = arith.constant 0 : index
    %66 = vector.load %arg4[%c8, %c0_65, %c0_66] : memref<9x32x64xf32, #tpu.memory_space<vmem>>, vector<1x32x64xf32>
    %67 = vector.shape_cast %66 : vector<1x32x64xf32> to vector<32x64xf32>
    %cst_67 = arith.constant dense<0.000000e+00> : vector<120x64xf32>
    %68 = tpu.matmul %65, %67, %cst_67 {dimension_numbers = #tpu.dot_dimension_numbers<[1], [0], [0], [1], [0, 0, 1, 1], [], []>} : vector<120x32xf32>, vector<32x64xf32>, vector<120x64xf32> -> vector<120x64xf32>
    %69 = arith.addf %64, %68 : vector<120x64xf32>
    %c0_68 = arith.constant 0 : index
    %c0_69 = arith.constant 0 : index
    %70 = vector.load %arg5[%c0_68, %c0_69] : memref<1x64xf32, #tpu.memory_space<vmem>>, vector<1x64xf32>
    %71 = vector.broadcast %70 : vector<1x64xf32> to vector<120x64xf32>
    %72 = arith.addf %69, %71 : vector<120x64xf32>
    %cst_70 = arith.constant 0.000000e+00 : f32
    %73 = vector.broadcast %cst_70 : f32 to vector<120x64xf32>
    %74 = arith.maximumf %72, %73 : vector<120x64xf32>
    %c0_71 = arith.constant 0 : index
    %c0_72 = arith.constant 0 : index
    %75 = vector.load %arg17[%c0_71, %c0_72] : memref<128x64xf32, #tpu.memory_space<vmem>>, vector<120x64xf32>
    tpu.vector_store %arg17[%c0_71, %c0_72], %74 {strides = array<i32>} : memref<128x64xf32, #tpu.memory_space<vmem>>, vector<120x64xf32>,
    %cst_73 = arith.constant 0.000000e+00 : f32
    %76 = vector.broadcast %cst_73 : f32 to vector<8x64xf32>
    %c120 = arith.constant 120 : index
    %c0_74 = arith.constant 0 : index
    %77 = vector.load %arg17[%c120, %c0_74] : memref<128x64xf32, #tpu.memory_space<vmem>>, vector<8x64xf32>
    tpu.vector_store %arg17[%c120, %c0_74], %76 {strides = array<i32>} : memref<128x64xf32, #tpu.memory_space<vmem>>, vector<8x64xf32>,
    %cst_75 = arith.constant 0.000000e+00 : f32
    %78 = vector.broadcast %cst_75 : f32 to vector<96x64xf32>
    %c0_76 = arith.constant 0 : index
    %c0_77 = arith.constant 0 : index
    %79 = vector.load %arg17[%c0_76, %c0_77] : memref<128x64xf32, #tpu.memory_space<vmem>>, vector<96x64xf32>
    %c0_78 = arith.constant 0 : index
    %c0_79 = arith.constant 0 : index
    %c0_80 = arith.constant 0 : index
    %80 = vector.load %arg6[%c0_78, %c0_79, %c0_80] : memref<9x64x64xf32, #tpu.memory_space<vmem>>, vector<1x64x64xf32>
    %81 = vector.shape_cast %80 : vector<1x64x64xf32> to vector<64x64xf32>
    %cst_81 = arith.constant dense<0.000000e+00> : vector<96x64xf32>
    %82 = tpu.matmul %79, %81, %cst_81 {dimension_numbers = #tpu.dot_dimension_numbers<[1], [0], [0], [1], [0, 0, 1, 1], [], []>} : vector<96x64xf32>, vector<64x64xf32>, vector<96x64xf32> -> vector<96x64xf32>
    %83 = arith.addf %78, %82 : vector<96x64xf32>
    %c1_82 = arith.constant 1 : index
    %c0_83 = arith.constant 0 : index
    %84 = vector.load %arg17[%c1_82, %c0_83] : memref<128x64xf32, #tpu.memory_space<vmem>>, vector<96x64xf32>
    %c1_84 = arith.constant 1 : index
    %c0_85 = arith.constant 0 : index
    %c0_86 = arith.constant 0 : index
    %85 = vector.load %arg6[%c1_84, %c0_85, %c0_86] : memref<9x64x64xf32, #tpu.memory_space<vmem>>, vector<1x64x64xf32>
    %86 = vector.shape_cast %85 : vector<1x64x64xf32> to vector<64x64xf32>
    %cst_87 = arith.constant dense<0.000000e+00> : vector<96x64xf32>
    %87 = tpu.matmul %84, %86, %cst_87 {dimension_numbers = #tpu.dot_dimension_numbers<[1], [0], [0], [1], [0, 0, 1, 1], [], []>} : vector<96x64xf32>, vector<64x64xf32>, vector<96x64xf32> -> vector<96x64xf32>
    %88 = arith.addf %83, %87 : vector<96x64xf32>
    %c2_88 = arith.constant 2 : index
    %c0_89 = arith.constant 0 : index
    %89 = vector.load %arg17[%c2_88, %c0_89] : memref<128x64xf32, #tpu.memory_space<vmem>>, vector<96x64xf32>
    %c2_90 = arith.constant 2 : index
    %c0_91 = arith.constant 0 : index
    %c0_92 = arith.constant 0 : index
    %90 = vector.load %arg6[%c2_90, %c0_91, %c0_92] : memref<9x64x64xf32, #tpu.memory_space<vmem>>, vector<1x64x64xf32>
    %91 = vector.shape_cast %90 : vector<1x64x64xf32> to vector<64x64xf32>
    %cst_93 = arith.constant dense<0.000000e+00> : vector<96x64xf32>
    %92 = tpu.matmul %89, %91, %cst_93 {dimension_numbers = #tpu.dot_dimension_numbers<[1], [0], [0], [1], [0, 0, 1, 1], [], []>} : vector<96x64xf32>, vector<64x64xf32>, vector<96x64xf32> -> vector<96x64xf32>
    %93 = arith.addf %88, %92 : vector<96x64xf32>
    %c12_94 = arith.constant 12 : index
    %c0_95 = arith.constant 0 : index
    %94 = vector.load %arg17[%c12_94, %c0_95] : memref<128x64xf32, #tpu.memory_space<vmem>>, vector<96x64xf32>
    %c3_96 = arith.constant 3 : index
    %c0_97 = arith.constant 0 : index
    %c0_98 = arith.constant 0 : index
    %95 = vector.load %arg6[%c3_96, %c0_97, %c0_98] : memref<9x64x64xf32, #tpu.memory_space<vmem>>, vector<1x64x64xf32>
    %96 = vector.shape_cast %95 : vector<1x64x64xf32> to vector<64x64xf32>
    %cst_99 = arith.constant dense<0.000000e+00> : vector<96x64xf32>
    %97 = tpu.matmul %94, %96, %cst_99 {dimension_numbers = #tpu.dot_dimension_numbers<[1], [0], [0], [1], [0, 0, 1, 1], [], []>} : vector<96x64xf32>, vector<64x64xf32>, vector<96x64xf32> -> vector<96x64xf32>
    %98 = arith.addf %93, %97 : vector<96x64xf32>
    %c13_100 = arith.constant 13 : index
    %c0_101 = arith.constant 0 : index
    %99 = vector.load %arg17[%c13_100, %c0_101] : memref<128x64xf32, #tpu.memory_space<vmem>>, vector<96x64xf32>
    %c4_102 = arith.constant 4 : index
    %c0_103 = arith.constant 0 : index
    %c0_104 = arith.constant 0 : index
    %100 = vector.load %arg6[%c4_102, %c0_103, %c0_104] : memref<9x64x64xf32, #tpu.memory_space<vmem>>, vector<1x64x64xf32>
    %101 = vector.shape_cast %100 : vector<1x64x64xf32> to vector<64x64xf32>
    %cst_105 = arith.constant dense<0.000000e+00> : vector<96x64xf32>
    %102 = tpu.matmul %99, %101, %cst_105 {dimension_numbers = #tpu.dot_dimension_numbers<[1], [0], [0], [1], [0, 0, 1, 1], [], []>} : vector<96x64xf32>, vector<64x64xf32>, vector<96x64xf32> -> vector<96x64xf32>
    %103 = arith.addf %98, %102 : vector<96x64xf32>
    %c14_106 = arith.constant 14 : index
    %c0_107 = arith.constant 0 : index
    %104 = vector.load %arg17[%c14_106, %c0_107] : memref<128x64xf32, #tpu.memory_space<vmem>>, vector<96x64xf32>
    %c5_108 = arith.constant 5 : index
    %c0_109 = arith.constant 0 : index
    %c0_110 = arith.constant 0 : index
    %105 = vector.load %arg6[%c5_108, %c0_109, %c0_110] : memref<9x64x64xf32, #tpu.memory_space<vmem>>, vector<1x64x64xf32>
    %106 = vector.shape_cast %105 : vector<1x64x64xf32> to vector<64x64xf32>
    %cst_111 = arith.constant dense<0.000000e+00> : vector<96x64xf32>
    %107 = tpu.matmul %104, %106, %cst_111 {dimension_numbers = #tpu.dot_dimension_numbers<[1], [0], [0], [1], [0, 0, 1, 1], [], []>} : vector<96x64xf32>, vector<64x64xf32>, vector<96x64xf32> -> vector<96x64xf32>
    %108 = arith.addf %103, %107 : vector<96x64xf32>
    %c24_112 = arith.constant 24 : index
    %c0_113 = arith.constant 0 : index
    %109 = vector.load %arg17[%c24_112, %c0_113] : memref<128x64xf32, #tpu.memory_space<vmem>>, vector<96x64xf32>
    %c6_114 = arith.constant 6 : index
    %c0_115 = arith.constant 0 : index
    %c0_116 = arith.constant 0 : index
    %110 = vector.load %arg6[%c6_114, %c0_115, %c0_116] : memref<9x64x64xf32, #tpu.memory_space<vmem>>, vector<1x64x64xf32>
    %111 = vector.shape_cast %110 : vector<1x64x64xf32> to vector<64x64xf32>
    %cst_117 = arith.constant dense<0.000000e+00> : vector<96x64xf32>
    %112 = tpu.matmul %109, %111, %cst_117 {dimension_numbers = #tpu.dot_dimension_numbers<[1], [0], [0], [1], [0, 0, 1, 1], [], []>} : vector<96x64xf32>, vector<64x64xf32>, vector<96x64xf32> -> vector<96x64xf32>
    %113 = arith.addf %108, %112 : vector<96x64xf32>
    %c25_118 = arith.constant 25 : index
    %c0_119 = arith.constant 0 : index
    %114 = vector.load %arg17[%c25_118, %c0_119] : memref<128x64xf32, #tpu.memory_space<vmem>>, vector<96x64xf32>
    %c7_120 = arith.constant 7 : index
    %c0_121 = arith.constant 0 : index
    %c0_122 = arith.constant 0 : index
    %115 = vector.load %arg6[%c7_120, %c0_121, %c0_122] : memref<9x64x64xf32, #tpu.memory_space<vmem>>, vector<1x64x64xf32>
    %116 = vector.shape_cast %115 : vector<1x64x64xf32> to vector<64x64xf32>
    %cst_123 = arith.constant dense<0.000000e+00> : vector<96x64xf32>
    %117 = tpu.matmul %114, %116, %cst_123 {dimension_numbers = #tpu.dot_dimension_numbers<[1], [0], [0], [1], [0, 0, 1, 1], [], []>} : vector<96x64xf32>, vector<64x64xf32>, vector<96x64xf32> -> vector<96x64xf32>
    %118 = arith.addf %113, %117 : vector<96x64xf32>
    %c26_124 = arith.constant 26 : index
    %c0_125 = arith.constant 0 : index
    %119 = vector.load %arg17[%c26_124, %c0_125] : memref<128x64xf32, #tpu.memory_space<vmem>>, vector<96x64xf32>
    %c8_126 = arith.constant 8 : index
    %c0_127 = arith.constant 0 : index
    %c0_128 = arith.constant 0 : index
    %120 = vector.load %arg6[%c8_126, %c0_127, %c0_128] : memref<9x64x64xf32, #tpu.memory_space<vmem>>, vector<1x64x64xf32>
    %121 = vector.shape_cast %120 : vector<1x64x64xf32> to vector<64x64xf32>
    %cst_129 = arith.constant dense<0.000000e+00> : vector<96x64xf32>
    %122 = tpu.matmul %119, %121, %cst_129 {dimension_numbers = #tpu.dot_dimension_numbers<[1], [0], [0], [1], [0, 0, 1, 1], [], []>} : vector<96x64xf32>, vector<64x64xf32>, vector<96x64xf32> -> vector<96x64xf32>
    %123 = arith.addf %118, %122 : vector<96x64xf32>
    %c0_130 = arith.constant 0 : index
    %c0_131 = arith.constant 0 : index
    %124 = vector.load %arg7[%c0_130, %c0_131] : memref<1x64xf32, #tpu.memory_space<vmem>>, vector<1x64xf32>
    %125 = vector.broadcast %124 : vector<1x64xf32> to vector<96x64xf32>
    %126 = arith.addf %123, %125 : vector<96x64xf32>
    %cst_132 = arith.constant 0.000000e+00 : f32
    %127 = vector.broadcast %cst_132 : f32 to vector<96x64xf32>
    %128 = arith.maximumf %126, %127 : vector<96x64xf32>
    %c0_133 = arith.constant 0 : index
    %c0_134 = arith.constant 0 : index
    %129 = vector.load %arg18[%c0_133, %c0_134] : memref<96x64xf32, #tpu.memory_space<vmem>>, vector<96x64xf32>
    tpu.vector_store %arg18[%c0_133, %c0_134], %128 {strides = array<i32>} : memref<96x64xf32, #tpu.memory_space<vmem>>, vector<96x64xf32>,
    %cst_135 = arith.constant 0.000000e+00 : f32
    %130 = vector.broadcast %cst_135 : f32 to vector<27x128xf32>
    %c0_136 = arith.constant 0 : index
    %c0_137 = arith.constant 0 : index
    %131 = vector.load %arg18[%c0_136, %c0_137] : memref<96x64xf32, #tpu.memory_space<vmem>>, vector<27x64xf32>
    %c1_138 = arith.constant 1 : index
    %c0_139 = arith.constant 0 : index
    %132 = vector.load %arg18[%c1_138, %c0_139] : memref<96x64xf32, #tpu.memory_space<vmem>>, vector<27x64xf32>
    %133 = arith.maximumf %131, %132 : vector<27x64xf32>
    %c12_140 = arith.constant 12 : index
    %c0_141 = arith.constant 0 : index
    %134 = vector.load %arg18[%c12_140, %c0_141] : memref<96x64xf32, #tpu.memory_space<vmem>>, vector<27x64xf32>
    %135 = arith.maximumf %133, %134 : vector<27x64xf32>
    %c13_142 = arith.constant 13 : index
    %c0_143 = arith.constant 0 : index
    %136 = vector.load %arg18[%c13_142, %c0_143] : memref<96x64xf32, #tpu.memory_space<vmem>>, vector<27x64xf32>
    %137 = arith.maximumf %135, %136 : vector<27x64xf32>
    %c0_144 = arith.constant 0 : index
    %c0_145 = arith.constant 0 : index
    %c0_146 = arith.constant 0 : index
    %138 = vector.load %arg8[%c0_144, %c0_145, %c0_146] : memref<9x64x128xf32, #tpu.memory_space<vmem>>, vector<1x64x128xf32>
    %139 = vector.shape_cast %138 : vector<1x64x128xf32> to vector<64x128xf32>
    %cst_147 = arith.constant dense<0.000000e+00> : vector<27x128xf32>
    %140 = tpu.matmul %137, %139, %cst_147 {dimension_numbers = #tpu.dot_dimension_numbers<[1], [0], [0], [1], [0, 0, 1, 1], [], []>} : vector<27x64xf32>, vector<64x128xf32>, vector<27x128xf32> -> vector<27x128xf32>
    %141 = arith.addf %130, %140 : vector<27x128xf32>
    %c2_148 = arith.constant 2 : index
    %c0_149 = arith.constant 0 : index
    %142 = vector.load %arg18[%c2_148, %c0_149] : memref<96x64xf32, #tpu.memory_space<vmem>>, vector<27x64xf32>
    %c3_150 = arith.constant 3 : index
    %c0_151 = arith.constant 0 : index
    %143 = vector.load %arg18[%c3_150, %c0_151] : memref<96x64xf32, #tpu.memory_space<vmem>>, vector<27x64xf32>
    %144 = arith.maximumf %142, %143 : vector<27x64xf32>
    %c14_152 = arith.constant 14 : index
    %c0_153 = arith.constant 0 : index
    %145 = vector.load %arg18[%c14_152, %c0_153] : memref<96x64xf32, #tpu.memory_space<vmem>>, vector<27x64xf32>
    %146 = arith.maximumf %144, %145 : vector<27x64xf32>
    %c15 = arith.constant 15 : index
    %c0_154 = arith.constant 0 : index
    %147 = vector.load %arg18[%c15, %c0_154] : memref<96x64xf32, #tpu.memory_space<vmem>>, vector<27x64xf32>
    %148 = arith.maximumf %146, %147 : vector<27x64xf32>
    %c1_155 = arith.constant 1 : index
    %c0_156 = arith.constant 0 : index
    %c0_157 = arith.constant 0 : index
    %149 = vector.load %arg8[%c1_155, %c0_156, %c0_157] : memref<9x64x128xf32, #tpu.memory_space<vmem>>, vector<1x64x128xf32>
    %150 = vector.shape_cast %149 : vector<1x64x128xf32> to vector<64x128xf32>
    %cst_158 = arith.constant dense<0.000000e+00> : vector<27x128xf32>
    %151 = tpu.matmul %148, %150, %cst_158 {dimension_numbers = #tpu.dot_dimension_numbers<[1], [0], [0], [1], [0, 0, 1, 1], [], []>} : vector<27x64xf32>, vector<64x128xf32>, vector<27x128xf32> -> vector<27x128xf32>
    %152 = arith.addf %141, %151 : vector<27x128xf32>
    %c4_159 = arith.constant 4 : index
    %c0_160 = arith.constant 0 : index
    %153 = vector.load %arg18[%c4_159, %c0_160] : memref<96x64xf32, #tpu.memory_space<vmem>>, vector<27x64xf32>
    %c5_161 = arith.constant 5 : index
    %c0_162 = arith.constant 0 : index
    %154 = vector.load %arg18[%c5_161, %c0_162] : memref<96x64xf32, #tpu.memory_space<vmem>>, vector<27x64xf32>
    %155 = arith.maximumf %153, %154 : vector<27x64xf32>
    %c16 = arith.constant 16 : index
    %c0_163 = arith.constant 0 : index
    %156 = vector.load %arg18[%c16, %c0_163] : memref<96x64xf32, #tpu.memory_space<vmem>>, vector<27x64xf32>
    %157 = arith.maximumf %155, %156 : vector<27x64xf32>
    %c17 = arith.constant 17 : index
    %c0_164 = arith.constant 0 : index
    %158 = vector.load %arg18[%c17, %c0_164] : memref<96x64xf32, #tpu.memory_space<vmem>>, vector<27x64xf32>
    %159 = arith.maximumf %157, %158 : vector<27x64xf32>
    %c2_165 = arith.constant 2 : index
    %c0_166 = arith.constant 0 : index
    %c0_167 = arith.constant 0 : index
    %160 = vector.load %arg8[%c2_165, %c0_166, %c0_167] : memref<9x64x128xf32, #tpu.memory_space<vmem>>, vector<1x64x128xf32>
    %161 = vector.shape_cast %160 : vector<1x64x128xf32> to vector<64x128xf32>
    %cst_168 = arith.constant dense<0.000000e+00> : vector<27x128xf32>
    %162 = tpu.matmul %159, %161, %cst_168 {dimension_numbers = #tpu.dot_dimension_numbers<[1], [0], [0], [1], [0, 0, 1, 1], [], []>} : vector<27x64xf32>, vector<64x128xf32>, vector<27x128xf32> -> vector<27x128xf32>
    %163 = arith.addf %152, %162 : vector<27x128xf32>
    %c24_169 = arith.constant 24 : index
    %c0_170 = arith.constant 0 : index
    %164 = vector.load %arg18[%c24_169, %c0_170] : memref<96x64xf32, #tpu.memory_space<vmem>>, vector<27x64xf32>
    %c25_171 = arith.constant 25 : index
    %c0_172 = arith.constant 0 : index
    %165 = vector.load %arg18[%c25_171, %c0_172] : memref<96x64xf32, #tpu.memory_space<vmem>>, vector<27x64xf32>
    %166 = arith.maximumf %164, %165 : vector<27x64xf32>
    %c36 = arith.constant 36 : index
    %c0_173 = arith.constant 0 : index
    %167 = vector.load %arg18[%c36, %c0_173] : memref<96x64xf32, #tpu.memory_space<vmem>>, vector<27x64xf32>
    %168 = arith.maximumf %166, %167 : vector<27x64xf32>
    %c37 = arith.constant 37 : index
    %c0_174 = arith.constant 0 : index
    %169 = vector.load %arg18[%c37, %c0_174] : memref<96x64xf32, #tpu.memory_space<vmem>>, vector<27x64xf32>
    %170 = arith.maximumf %168, %169 : vector<27x64xf32>
    %c3_175 = arith.constant 3 : index
    %c0_176 = arith.constant 0 : index
    %c0_177 = arith.constant 0 : index
    %171 = vector.load %arg8[%c3_175, %c0_176, %c0_177] : memref<9x64x128xf32, #tpu.memory_space<vmem>>, vector<1x64x128xf32>
    %172 = vector.shape_cast %171 : vector<1x64x128xf32> to vector<64x128xf32>
    %cst_178 = arith.constant dense<0.000000e+00> : vector<27x128xf32>
    %173 = tpu.matmul %170, %172, %cst_178 {dimension_numbers = #tpu.dot_dimension_numbers<[1], [0], [0], [1], [0, 0, 1, 1], [], []>} : vector<27x64xf32>, vector<64x128xf32>, vector<27x128xf32> -> vector<27x128xf32>
    %174 = arith.addf %163, %173 : vector<27x128xf32>
    %c26_179 = arith.constant 26 : index
    %c0_180 = arith.constant 0 : index
    %175 = vector.load %arg18[%c26_179, %c0_180] : memref<96x64xf32, #tpu.memory_space<vmem>>, vector<27x64xf32>
    %c27 = arith.constant 27 : index
    %c0_181 = arith.constant 0 : index
    %176 = vector.load %arg18[%c27, %c0_181] : memref<96x64xf32, #tpu.memory_space<vmem>>, vector<27x64xf32>
    %177 = arith.maximumf %175, %176 : vector<27x64xf32>
    %c38 = arith.constant 38 : index
    %c0_182 = arith.constant 0 : index
    %178 = vector.load %arg18[%c38, %c0_182] : memref<96x64xf32, #tpu.memory_space<vmem>>, vector<27x64xf32>
    %179 = arith.maximumf %177, %178 : vector<27x64xf32>
    %c39 = arith.constant 39 : index
    %c0_183 = arith.constant 0 : index
    %180 = vector.load %arg18[%c39, %c0_183] : memref<96x64xf32, #tpu.memory_space<vmem>>, vector<27x64xf32>
    %181 = arith.maximumf %179, %180 : vector<27x64xf32>
    %c4_184 = arith.constant 4 : index
    %c0_185 = arith.constant 0 : index
    %c0_186 = arith.constant 0 : index
    %182 = vector.load %arg8[%c4_184, %c0_185, %c0_186] : memref<9x64x128xf32, #tpu.memory_space<vmem>>, vector<1x64x128xf32>
    %183 = vector.shape_cast %182 : vector<1x64x128xf32> to vector<64x128xf32>
    %cst_187 = arith.constant dense<0.000000e+00> : vector<27x128xf32>
    %184 = tpu.matmul %181, %183, %cst_187 {dimension_numbers = #tpu.dot_dimension_numbers<[1], [0], [0], [1], [0, 0, 1, 1], [], []>} : vector<27x64xf32>, vector<64x128xf32>, vector<27x128xf32> -> vector<27x128xf32>
    %185 = arith.addf %174, %184 : vector<27x128xf32>
    %c28 = arith.constant 28 : index
    %c0_188 = arith.constant 0 : index
    %186 = vector.load %arg18[%c28, %c0_188] : memref<96x64xf32, #tpu.memory_space<vmem>>, vector<27x64xf32>
    %c29 = arith.constant 29 : index
    %c0_189 = arith.constant 0 : index
    %187 = vector.load %arg18[%c29, %c0_189] : memref<96x64xf32, #tpu.memory_space<vmem>>, vector<27x64xf32>
    %188 = arith.maximumf %186, %187 : vector<27x64xf32>
    %c40 = arith.constant 40 : index
    %c0_190 = arith.constant 0 : index
    %189 = vector.load %arg18[%c40, %c0_190] : memref<96x64xf32, #tpu.memory_space<vmem>>, vector<27x64xf32>
    %190 = arith.maximumf %188, %189 : vector<27x64xf32>
    %c41 = arith.constant 41 : index
    %c0_191 = arith.constant 0 : index
    %191 = vector.load %arg18[%c41, %c0_191] : memref<96x64xf32, #tpu.memory_space<vmem>>, vector<27x64xf32>
    %192 = arith.maximumf %190, %191 : vector<27x64xf32>
    %c5_192 = arith.constant 5 : index
    %c0_193 = arith.constant 0 : index
    %c0_194 = arith.constant 0 : index
    %193 = vector.load %arg8[%c5_192, %c0_193, %c0_194] : memref<9x64x128xf32, #tpu.memory_space<vmem>>, vector<1x64x128xf32>
    %194 = vector.shape_cast %193 : vector<1x64x128xf32> to vector<64x128xf32>
    %cst_195 = arith.constant dense<0.000000e+00> : vector<27x128xf32>
    %195 = tpu.matmul %192, %194, %cst_195 {dimension_numbers = #tpu.dot_dimension_numbers<[1], [0], [0], [1], [0, 0, 1, 1], [], []>} : vector<27x64xf32>, vector<64x128xf32>, vector<27x128xf32> -> vector<27x128xf32>
    %196 = arith.addf %185, %195 : vector<27x128xf32>
    %c48 = arith.constant 48 : index
    %c0_196 = arith.constant 0 : index
    %197 = vector.load %arg18[%c48, %c0_196] : memref<96x64xf32, #tpu.memory_space<vmem>>, vector<27x64xf32>
    %c49 = arith.constant 49 : index
    %c0_197 = arith.constant 0 : index
    %198 = vector.load %arg18[%c49, %c0_197] : memref<96x64xf32, #tpu.memory_space<vmem>>, vector<27x64xf32>
    %199 = arith.maximumf %197, %198 : vector<27x64xf32>
    %c60 = arith.constant 60 : index
    %c0_198 = arith.constant 0 : index
    %200 = vector.load %arg18[%c60, %c0_198] : memref<96x64xf32, #tpu.memory_space<vmem>>, vector<27x64xf32>
    %201 = arith.maximumf %199, %200 : vector<27x64xf32>
    %c61 = arith.constant 61 : index
    %c0_199 = arith.constant 0 : index
    %202 = vector.load %arg18[%c61, %c0_199] : memref<96x64xf32, #tpu.memory_space<vmem>>, vector<27x64xf32>
    %203 = arith.maximumf %201, %202 : vector<27x64xf32>
    %c6_200 = arith.constant 6 : index
    %c0_201 = arith.constant 0 : index
    %c0_202 = arith.constant 0 : index
    %204 = vector.load %arg8[%c6_200, %c0_201, %c0_202] : memref<9x64x128xf32, #tpu.memory_space<vmem>>, vector<1x64x128xf32>
    %205 = vector.shape_cast %204 : vector<1x64x128xf32> to vector<64x128xf32>
    %cst_203 = arith.constant dense<0.000000e+00> : vector<27x128xf32>
    %206 = tpu.matmul %203, %205, %cst_203 {dimension_numbers = #tpu.dot_dimension_numbers<[1], [0], [0], [1], [0, 0, 1, 1], [], []>} : vector<27x64xf32>, vector<64x128xf32>, vector<27x128xf32> -> vector<27x128xf32>
    %207 = arith.addf %196, %206 : vector<27x128xf32>
    %c50 = arith.constant 50 : index
    %c0_204 = arith.constant 0 : index
    %208 = vector.load %arg18[%c50, %c0_204] : memref<96x64xf32, #tpu.memory_space<vmem>>, vector<27x64xf32>
    %c51 = arith.constant 51 : index
    %c0_205 = arith.constant 0 : index
    %209 = vector.load %arg18[%c51, %c0_205] : memref<96x64xf32, #tpu.memory_space<vmem>>, vector<27x64xf32>
    %210 = arith.maximumf %208, %209 : vector<27x64xf32>
    %c62 = arith.constant 62 : index
    %c0_206 = arith.constant 0 : index
    %211 = vector.load %arg18[%c62, %c0_206] : memref<96x64xf32, #tpu.memory_space<vmem>>, vector<27x64xf32>
    %212 = arith.maximumf %210, %211 : vector<27x64xf32>
    %c63 = arith.constant 63 : index
    %c0_207 = arith.constant 0 : index
    %213 = vector.load %arg18[%c63, %c0_207] : memref<96x64xf32, #tpu.memory_space<vmem>>, vector<27x64xf32>
    %214 = arith.maximumf %212, %213 : vector<27x64xf32>
    %c7_208 = arith.constant 7 : index
    %c0_209 = arith.constant 0 : index
    %c0_210 = arith.constant 0 : index
    %215 = vector.load %arg8[%c7_208, %c0_209, %c0_210] : memref<9x64x128xf32, #tpu.memory_space<vmem>>, vector<1x64x128xf32>
    %216 = vector.shape_cast %215 : vector<1x64x128xf32> to vector<64x128xf32>
    %cst_211 = arith.constant dense<0.000000e+00> : vector<27x128xf32>
    %217 = tpu.matmul %214, %216, %cst_211 {dimension_numbers = #tpu.dot_dimension_numbers<[1], [0], [0], [1], [0, 0, 1, 1], [], []>} : vector<27x64xf32>, vector<64x128xf32>, vector<27x128xf32> -> vector<27x128xf32>
    %218 = arith.addf %207, %217 : vector<27x128xf32>
    %c52 = arith.constant 52 : index
    %c0_212 = arith.constant 0 : index
    %219 = vector.load %arg18[%c52, %c0_212] : memref<96x64xf32, #tpu.memory_space<vmem>>, vector<27x64xf32>
    %c53 = arith.constant 53 : index
    %c0_213 = arith.constant 0 : index
    %220 = vector.load %arg18[%c53, %c0_213] : memref<96x64xf32, #tpu.memory_space<vmem>>, vector<27x64xf32>
    %221 = arith.maximumf %219, %220 : vector<27x64xf32>
    %c64 = arith.constant 64 : index
    %c0_214 = arith.constant 0 : index
    %222 = vector.load %arg18[%c64, %c0_214] : memref<96x64xf32, #tpu.memory_space<vmem>>, vector<27x64xf32>
    %223 = arith.maximumf %221, %222 : vector<27x64xf32>
    %c65 = arith.constant 65 : index
    %c0_215 = arith.constant 0 : index
    %224 = vector.load %arg18[%c65, %c0_215] : memref<96x64xf32, #tpu.memory_space<vmem>>, vector<27x64xf32>
    %225 = arith.maximumf %223, %224 : vector<27x64xf32>
    %c8_216 = arith.constant 8 : index
    %c0_217 = arith.constant 0 : index
    %c0_218 = arith.constant 0 : index
    %226 = vector.load %arg8[%c8_216, %c0_217, %c0_218] : memref<9x64x128xf32, #tpu.memory_space<vmem>>, vector<1x64x128xf32>
    %227 = vector.shape_cast %226 : vector<1x64x128xf32> to vector<64x128xf32>
    %cst_219 = arith.constant dense<0.000000e+00> : vector<27x128xf32>
    %228 = tpu.matmul %225, %227, %cst_219 {dimension_numbers = #tpu.dot_dimension_numbers<[1], [0], [0], [1], [0, 0, 1, 1], [], []>} : vector<27x64xf32>, vector<64x128xf32>, vector<27x128xf32> -> vector<27x128xf32>
    %229 = arith.addf %218, %228 : vector<27x128xf32>
    %c0_220 = arith.constant 0 : index
    %c0_221 = arith.constant 0 : index
    %230 = vector.load %arg9[%c0_220, %c0_221] : memref<1x128xf32, #tpu.memory_space<vmem>>, vector<1x128xf32>
    %231 = vector.broadcast %230 : vector<1x128xf32> to vector<27x128xf32>
    %232 = arith.addf %229, %231 : vector<27x128xf32>
    %cst_222 = arith.constant 0.000000e+00 : f32
    %233 = vector.broadcast %cst_222 : f32 to vector<27x128xf32>
    %234 = arith.maximumf %232, %233 : vector<27x128xf32>
    %c0_223 = arith.constant 0 : index
    %c0_224 = arith.constant 0 : index
    %235 = vector.load %arg10[%c0_223, %c0_224] : memref<128x16xf32, #tpu.memory_space<vmem>>, vector<128x16xf32>
    %cst_225 = arith.constant dense<0.000000e+00> : vector<27x16xf32>
    %236 = tpu.matmul %234, %235, %cst_225 {dimension_numbers = #tpu.dot_dimension_numbers<[1], [0], [0], [1], [0, 0, 1, 1], [], []>} : vector<27x128xf32>, vector<128x16xf32>, vector<27x16xf32> -> vector<27x16xf32>
    %c0_226 = arith.constant 0 : index
    %c0_227 = arith.constant 0 : index
    %237 = vector.load %arg11[%c0_226, %c0_227] : memref<1x16xf32, #tpu.memory_space<vmem>>, vector<1x16xf32>
    %238 = vector.broadcast %237 : vector<1x16xf32> to vector<27x16xf32>
    %239 = arith.addf %236, %238 : vector<27x16xf32>
    %cst_228 = arith.constant 0.000000e+00 : f32
    %240 = vector.broadcast %cst_228 : f32 to vector<27x16xf32>
    %241 = arith.maximumf %239, %240 : vector<27x16xf32>
    %c0_229 = arith.constant 0 : index
    %c0_230 = arith.constant 0 : index
    %242 = vector.load %arg19[%c0_229, %c0_230] : memref<32x16xf32, #tpu.memory_space<vmem>>, vector<27x16xf32>
    tpu.vector_store %arg19[%c0_229, %c0_230], %241 {strides = array<i32>} : memref<32x16xf32, #tpu.memory_space<vmem>>, vector<27x16xf32>,
    %c0_231 = arith.constant 0 : index
    %c0_232 = arith.constant 0 : index
    %243 = vector.load %arg19[%c0_231, %c0_232] : memref<32x16xf32, #tpu.memory_space<vmem>>, vector<1x16xf32>
    %c2_233 = arith.constant 2 : index
    %c0_234 = arith.constant 0 : index
    %244 = vector.load %arg19[%c2_233, %c0_234] : memref<32x16xf32, #tpu.memory_space<vmem>>, vector<1x16xf32>
    %245 = arith.addf %243, %244 : vector<1x16xf32>
    %c24_235 = arith.constant 24 : index
    %c0_236 = arith.constant 0 : index
    %246 = vector.load %arg19[%c24_235, %c0_236] : memref<32x16xf32, #tpu.memory_space<vmem>>, vector<1x16xf32>
    %247 = arith.addf %245, %246 : vector<1x16xf32>
    %c26_237 = arith.constant 26 : index
    %c0_238 = arith.constant 0 : index
    %248 = vector.load %arg19[%c26_237, %c0_238] : memref<32x16xf32, #tpu.memory_space<vmem>>, vector<1x16xf32>
    %249 = arith.addf %247, %248 : vector<1x16xf32>
    %cst_239 = arith.constant 2.500000e-01 : f32
    %250 = vector.broadcast %cst_239 : f32 to vector<1x16xf32>
    %251 = arith.mulf %249, %250 : vector<1x16xf32>
    %c0_240 = arith.constant 0 : index
    %c0_241 = arith.constant 0 : index
    %252 = vector.load %arg12[%c0_240, %c0_241] : memref<16x10xf32, #tpu.memory_space<vmem>>, vector<16x10xf32>
    %cst_242 = arith.constant dense<0.000000e+00> : vector<1x10xf32>
    %253 = tpu.matmul %251, %252, %cst_242 {dimension_numbers = #tpu.dot_dimension_numbers<[1], [0], [0], [1], [0, 0, 1, 1], [], []>} : vector<1x16xf32>, vector<16x10xf32>, vector<1x10xf32> -> vector<1x10xf32>
    %c0_243 = arith.constant 0 : index
    %c0_244 = arith.constant 0 : index
    %254 = vector.load %arg13[%c0_243, %c0_244] : memref<1x10xf32, #tpu.memory_space<vmem>>, vector<1x10xf32>
    %255 = arith.addf %253, %254 : vector<1x10xf32>
    %cst_245 = arith.constant dense<0xFF800000> : vector<1xf32>
    %256 = vector.multi_reduction <maximumf>, %255, %cst_245 [1] : vector<1x10xf32> to vector<1xf32>
    %257 = vector.shape_cast %256 : vector<1xf32> to vector<1x1xf32>
    %258 = vector.broadcast %257 : vector<1x1xf32> to vector<1x10xf32>
    %259 = arith.subf %255, %258 : vector<1x10xf32>
    %260 = math.exp %259 : vector<1x10xf32>
    %cst_246 = arith.constant dense<0.000000e+00> : vector<1xf32>
    %261 = vector.multi_reduction <add>, %260, %cst_246 [1] : vector<1x10xf32> to vector<1xf32>
    %262 = vector.shape_cast %261 : vector<1xf32> to vector<1x1xf32>
    %263 = math.log %262 : vector<1x1xf32>
    %264 = vector.broadcast %263 : vector<1x1xf32> to vector<1x10xf32>
    %265 = arith.subf %259, %264 : vector<1x10xf32>
    %c0_247 = arith.constant 0 : index
    %c0_248 = arith.constant 0 : index
    %c0_249 = arith.constant 0 : index
    %266 = vector.load %arg14[%c0_247, %c0_248, %c0_249] : memref<1x1x10xf32, #tpu.memory_space<vmem>>, vector<1x1x10xf32>
    %267 = vector.shape_cast %266 : vector<1x1x10xf32> to vector<1x10xf32>
    %268 = vector.shape_cast %265 : vector<1x10xf32> to vector<1x1x10xf32>
    tpu.vector_store %arg14[%c0_247, %c0_248, %c0_249], %268 {strides = array<i32>} : memref<1x1x10xf32, #tpu.memory_space<vmem>>, vector<1x1x10xf32>,
    %c0_250 = arith.constant 0 : index
    %c0_251 = arith.constant 0 : index
    %c0_252 = arith.constant 0 : index
    %269 = vector.load %arg15[%c0_250, %c0_251, %c0_252] : memref<1x1x16xf32, #tpu.memory_space<vmem>>, vector<1x1x16xf32>
    %270 = vector.shape_cast %269 : vector<1x1x16xf32> to vector<1x16xf32>
    %271 = vector.shape_cast %251 : vector<1x16xf32> to vector<1x1x16xf32>
    tpu.vector_store %arg15[%c0_250, %c0_251, %c0_252], %271 {strides = array<i32>} : memref<1x1x16xf32, #tpu.memory_space<vmem>>, vector<1x1x16xf32>,
    return
  }
  func.func @transform_0(%arg0: i32) -> (i32, i32, i32, i32) {
    %c0_i32 = arith.constant 0 : i32
    %c0_i32_0 = arith.constant 0 : i32
    %c0_i32_1 = arith.constant 0 : i32
    %c0_i32_2 = arith.constant 0 : i32
    return %arg0, %c0_i32, %c0_i32_0, %c0_i32_1 : i32, i32, i32, i32
  }
  func.func @transform_1(%arg0: i32) -> (i32, i32) {
    %c0_i32 = arith.constant 0 : i32
    %c0_i32_0 = arith.constant 0 : i32
    %c0_i32_1 = arith.constant 0 : i32
    return %c0_i32, %c0_i32_0 : i32, i32
  }
  func.func @transform_2(%arg0: i32) -> (i32, i32) {
    %c0_i32 = arith.constant 0 : i32
    %c0_i32_0 = arith.constant 0 : i32
    %c0_i32_1 = arith.constant 0 : i32
    return %c0_i32, %c0_i32_0 : i32, i32
  }
  func.func @transform_3(%arg0: i32) -> (i32, i32, i32) {
    %c0_i32 = arith.constant 0 : i32
    %c0_i32_0 = arith.constant 0 : i32
    %c0_i32_1 = arith.constant 0 : i32
    %c0_i32_2 = arith.constant 0 : i32
    return %c0_i32, %c0_i32_0, %c0_i32_1 : i32, i32, i32
  }
  func.func @transform_4(%arg0: i32) -> (i32, i32) {
    %c0_i32 = arith.constant 0 : i32
    %c0_i32_0 = arith.constant 0 : i32
    %c0_i32_1 = arith.constant 0 : i32
    return %c0_i32, %c0_i32_0 : i32, i32
  }
  func.func @transform_5(%arg0: i32) -> (i32, i32, i32) {
    %c0_i32 = arith.constant 0 : i32
    %c0_i32_0 = arith.constant 0 : i32
    %c0_i32_1 = arith.constant 0 : i32
    %c0_i32_2 = arith.constant 0 : i32
    return %c0_i32, %c0_i32_0, %c0_i32_1 : i32, i32, i32
  }
  func.func @transform_6(%arg0: i32) -> (i32, i32) {
    %c0_i32 = arith.constant 0 : i32
    %c0_i32_0 = arith.constant 0 : i32
    %c0_i32_1 = arith.constant 0 : i32
    return %c0_i32, %c0_i32_0 : i32, i32
  }
  func.func @transform_7(%arg0: i32) -> (i32, i32, i32) {
    %c0_i32 = arith.constant 0 : i32
    %c0_i32_0 = arith.constant 0 : i32
    %c0_i32_1 = arith.constant 0 : i32
    %c0_i32_2 = arith.constant 0 : i32
    return %c0_i32, %c0_i32_0, %c0_i32_1 : i32, i32, i32
  }
  func.func @transform_8(%arg0: i32) -> (i32, i32) {
    %c0_i32 = arith.constant 0 : i32
    %c0_i32_0 = arith.constant 0 : i32
    %c0_i32_1 = arith.constant 0 : i32
    return %c0_i32, %c0_i32_0 : i32, i32
  }
  func.func @transform_9(%arg0: i32) -> (i32, i32) {
    %c0_i32 = arith.constant 0 : i32
    %c0_i32_0 = arith.constant 0 : i32
    %c0_i32_1 = arith.constant 0 : i32
    return %c0_i32, %c0_i32_0 : i32, i32
  }
  func.func @transform_10(%arg0: i32) -> (i32, i32) {
    %c0_i32 = arith.constant 0 : i32
    %c0_i32_0 = arith.constant 0 : i32
    %c0_i32_1 = arith.constant 0 : i32
    return %c0_i32, %c0_i32_0 : i32, i32
  }
  func.func @transform_11(%arg0: i32) -> (i32, i32) {
    %c0_i32 = arith.constant 0 : i32
    %c0_i32_0 = arith.constant 0 : i32
    %c0_i32_1 = arith.constant 0 : i32
    return %c0_i32, %c0_i32_0 : i32, i32
  }
  func.func @transform_12(%arg0: i32) -> (i32, i32) {
    %c0_i32 = arith.constant 0 : i32
    %c0_i32_0 = arith.constant 0 : i32
    %c0_i32_1 = arith.constant 0 : i32
    return %c0_i32, %c0_i32_0 : i32, i32
  }
  func.func @transform_13(%arg0: i32) -> (i32, i32, i32) {
    %c0_i32 = arith.constant 0 : i32
    %c0_i32_0 = arith.constant 0 : i32
    %c0_i32_1 = arith.constant 0 : i32
    return %arg0, %c0_i32, %c0_i32_0 : i32, i32, i32
  }
  func.func @transform_14(%arg0: i32) -> (i32, i32, i32) {
    %c0_i32 = arith.constant 0 : i32
    %c0_i32_0 = arith.constant 0 : i32
    %c0_i32_1 = arith.constant 0 : i32
    return %arg0, %c0_i32, %c0_i32_0 : i32, i32, i32
  }
}

</mosaic_0001>

<bundles_post_ra>
// kernel: mul.1
= control target key start
LH: loop header
LB: loop body
LE: loop exit
PB: predicated region body
PF: predicated region fallthrough
CT: control target
= control target key end

     0   :  { %s364_s0 = inlined_call_operand.vmem [shape: f32[16,128,1,1], index: 0, kind: input, shape index: {}]   ;;  %s365_s1 = inlined_call_operand.vmem [shape: f32[16,128,1,1], index: 1, kind: input, shape index: {}]   ;;  %s366_s2 = inlined_call_operand.vmem [shape: f32[16,128,1,1], index: 2, kind: output, shape index: {}]  }
   0x1   :  { %v3_v0 = vld [vmem:[%s364_s0] sm:$0x1]  ;;  %v160_v2 = vld [vmem:[%s364_s0 + $0x1] sm:$0x1]  ;;  %v163_v5 = vld [vmem:[%s364_s0 + $0x2] sm:$0x1] }
   0x2   :  { %v4_v1 = vld [vmem:[%s365_s1] sm:$0x1]  ;;  %v161_v4 = vld [vmem:[%s365_s1 + $0x1] sm:$0x1]  ;;  %v164_v6 = vld [vmem:[%s365_s1 + $0x2] sm:$0x1] }
   0x3   :  { %v7_v3 = vmul.f32 %v4_v1, %v3_v0  ;;  %v16_v7 = vmul.f32 %v161_v4, %v160_v2  ;;  %v26_v8 = vmul.f32 %v164_v6, %v163_v5  ;;  %v166_v9 = vld [vmem:[%s364_s0 + $0x3] sm:$0x1]  ;;  %v169_v11 = vld [vmem:[%s364_s0 + $0x4] sm:$0x1]  ;;  %v172_v14 = vld [vmem:[%s364_s0 + $0x5] sm:$0x1] }
   0x4   :  { %v167_v10 = vld [vmem:[%s365_s1 + $0x3] sm:$0x1]  ;;  %v170_v13 = vld [vmem:[%s365_s1 + $0x4] sm:$0x1]  ;;  %v173_v15 = vld [vmem:[%s365_s1 + $0x5] sm:$0x1] }
   0x5   :  { %9 = vst [vmem:[%s366_s2] sm:$0x1] %v7_v3  ;;  %v36_v12 = vmul.f32 %v167_v10, %v166_v9  ;;  %162 = vst [vmem:[%s366_s2 + $0x1] sm:$0x1] %v16_v7  ;;  %v46_v16 = vmul.f32 %v170_v13, %v169_v11  ;;  %v56_v17 = vmul.f32 %v173_v15, %v172_v14  ;;  %v175_v18 = vld [vmem:[%s364_s0 + $0x6] sm:$0x1] }
   0x6   :  { %165 = vst [vmem:[%s366_s2 + $0x2] sm:$0x1] %v26_v8  ;;  %v176_v19 = vld [vmem:[%s365_s1 + $0x6] sm:$0x1]  ;;  %v178_v20 = vld [vmem:[%s364_s0 + $0x7] sm:$0x1] }
   0x7   :  { %168 = vst [vmem:[%s366_s2 + $0x3] sm:$0x1] %v36_v12  ;;  %v66_v21 = vmul.f32 %v176_v19, %v175_v18  ;;  %v179_v22 = vld [vmem:[%s365_s1 + $0x7] sm:$0x1]  ;;  %v181_v23 = vld [vmem:[%s364_s0 + $0x8] sm:$0x1] }
   0x8   :  { %v182_v24 = vld [vmem:[%s365_s1 + $0x8] sm:$0x1]  ;;  %171 = vst [vmem:[%s366_s2 + $0x4] sm:$0x1] %v46_v16  ;;  %174 = vst [vmem:[%s366_s2 + $0x5] sm:$0x1] %v56_v17  ;;  %v76_v25 = vmul.f32 %v179_v22, %v178_v20 }
   0x9   :  { %v86_v26 = vmul.f32 %v182_v24, %v181_v23  ;;  %v184_v27 = vld [vmem:[%s364_s0 + $0x9] sm:$0x1]  ;;  %v187_v29 = vld [vmem:[%s364_s0 + $0xa] sm:$0x1]  ;;  %177 = vst [vmem:[%s366_s2 + $0x6] sm:$0x1] %v66_v21 }
   0xa   :  { %v185_v28 = vld [vmem:[%s365_s1 + $0x9] sm:$0x1]  ;;  %v188_v31 = vld [vmem:[%s365_s1 + $0xa] sm:$0x1]  ;;  %v190_v32 = vld [vmem:[%s364_s0 + $0xb] sm:$0x1] }
   0xb   :  { %v96_v30 = vmul.f32 %v185_v28, %v184_v27  ;;  %v191_v33 = vld [vmem:[%s365_s1 + $0xb] sm:$0x1]  ;;  %180 = vst [vmem:[%s366_s2 + $0x7] sm:$0x1] %v76_v25  ;;  %183 = vst [vmem:[%s366_s2 + $0x8] sm:$0x1] %v86_v26  ;;  %v106_v34 = vmul.f32 %v188_v31, %v187_v29 }
   0xc   :  { %v116_v35 = vmul.f32 %v191_v33, %v190_v32  ;;  %v193_v36 = vld [vmem:[%s364_s0 + $0xc] sm:$0x1]  ;;  %v196_v38 = vld [vmem:[%s364_s0 + $0xd] sm:$0x1]  ;;  %v199_v41 = vld [vmem:[%s364_s0 + $0xe] sm:$0x1] }
   0xd   :  { %v194_v37 = vld [vmem:[%s365_s1 + $0xc] sm:$0x1]  ;;  %186 = vst [vmem:[%s366_s2 + $0x9] sm:$0x1] %v96_v30  ;;  %v197_v40 = vld [vmem:[%s365_s1 + $0xd] sm:$0x1] }
   0xe   :  { %v126_v39 = vmul.f32 %v194_v37, %v193_v36  ;;  %v200_v42 = vld [vmem:[%s365_s1 + $0xe] sm:$0x1]  ;;  %189 = vst [vmem:[%s366_s2 + $0xa] sm:$0x1] %v106_v34  ;;  %192 = vst [vmem:[%s366_s2 + $0xb] sm:$0x1] %v116_v35  ;;  %v136_v43 = vmul.f32 %v197_v40, %v196_v38 }
   0xf   :  { %v146_v44 = vmul.f32 %v200_v42, %v199_v41  ;;  %v202_v45 = vld [vmem:[%s364_s0 + $0xf] sm:$0x1] }
  0x10   :  { %v203_v46 = vld [vmem:[%s365_s1 + $0xf] sm:$0x1]  ;;  %195 = vst [vmem:[%s366_s2 + $0xc] sm:$0x1] %v126_v39  ;;  %198 = vst [vmem:[%s366_s2 + $0xd] sm:$0x1] %v136_v43 }
  0x11   :  { %v156_v47 = vmul.f32 %v203_v46, %v202_v45  ;;  %201 = vst [vmem:[%s366_s2 + $0xe] sm:$0x1] %v146_v44 }
  0x13   :  { %204 = vst [vmem:[%s366_s2 + $0xf] sm:$0x1] %v156_v47 }

// kernel: net_forward.1
= control target key start
LH: loop header
LB: loop body
LE: loop exit
PB: predicated region body
PF: predicated region fallthrough
CT: control target
= control target key end

     0   :  { %s12195_s0 = inlined_call_operand.vmem [shape: f32[2,4,144,25], index: 0, kind: input, shape index: {}]   ;;  %s12196_s1 = inlined_call_operand.vmem [shape: f32[25,32], index: 1, kind: input, shape index: {}]   ;;  %s12197_s2 = inlined_call_operand.vmem [shape: f32[1,32], index: 2, kind: input, shape index: {}]   ;;  %s12198_s3 = inlined_call_operand.vmem [shape: f32[9,32,64], index: 3, kind: input, shape index: {}]   ;;  %s12199_s4 = inlined_call_operand.vmem [shape: f32[1,64], index: 4, kind: input, shape index: {}]   ;;  %s12200_s5 = inlined_call_operand.vmem [shape: f32[9,64,64], index: 5, kind: input, shape index: {}]   ;;  %s12201_s6 = inlined_call_operand.vmem [shape: f32[1,64], index: 6, kind: input, shape index: {}]   ;;  %s12202_s7 = inlined_call_operand.vmem [shape: f32[9,64,128], index: 7, kind: input, shape index: {}]   ;;  %s12203_s8 = inlined_call_operand.vmem [shape: f32[1,128], index: 8, kind: input, shape index: {}]   ;;  %s12204_s9 = inlined_call_operand.vmem [shape: f32[128,16], index: 9, kind: input, shape index: {}]   ;;  %s12205_s10 = inlined_call_operand.vmem [shape: f32[1,16], index: 10, kind: input, shape index: {}]   ;;  %s12206_s11 = inlined_call_operand.vmem [shape: f32[16,10], index: 11, kind: input, shape index: {}]   ;;  %s12207_s12 = inlined_call_operand.vmem [shape: f32[1,10], index: 12, kind: input, shape index: {}]   ;;  %s12208_s13 = inlined_call_operand.hbm [shape: f32[2,1,10], index: 13, kind: output, shape index: {0}]   ;;  %s12209_s14 = inlined_call_operand.hbm [shape: f32[2,1,16], index: 14, kind: output, shape index: {1}]  }
   0x1   :  { %12211 = sst [smem:[#allocation13_spill]] %s12195_s0 }
   0x2   :  { %12212 = sst [smem:[#allocation14_spill]] %s12196_s1 }
   0x3   :  { %12213 = sst [smem:[#allocation15_spill]] %s12197_s2 }
   0x4   :  { %12214 = sst [smem:[#allocation16_spill]] %s12198_s3 }
   0x5   :  { %20 = vsyncpa [#allocation7], 0 }
   0x6   :  { %22 = vsyncpa [#allocation7 + $0x1], 0 }
   0x7   :  { %23 = vsyncpa [#allocation9], 0 }
   0x8   :  { %25 = vsyncpa [#allocation9 + $0x1], 0  ;;  %s9953_s29 = smov 0   ;;  %s9955_s30 = smov 0  }
   0x9   :  { %s9957_s15 = smov 0   ;;  %s9959_s16 = smov 0  }
   0xa LB: > { %s9974_s17 = sadd.s32 4294967295, %s9870_s16   ;;  %s6858_s18 = sadd.s32 4294967294, %s9870_s16   ;;  %s9870_s16 = sphi %s9959_s16, %s12232_s16   ;;  %s9866_s15 = sphi %s9957_s15, %s12231_s15   ;;  %s9862_s30 = sphi %s9955_s30, %s12230_s30   ;;  %s9858_s29 = sphi %s9953_s29, %s12229_s29  }
   0xb   : > { %s9978_s19 = sadd.s32 1, %s9870_s16   ;;  %s316_s20 = sadd.s32 1, %s9866_s15 }
   0xc   : > { %s313_s21 = ssub.s32 %s9870_s16, %s9978_s19  ;;  %p326_p0 = scmp.ne.s32.totalorder %s9866_s15, %s9862_s30 }
   0xd   : > { %p314_p1 = scmp.eq.s32.totalorder %s313_s21, 0  ;;  %p327_p2 = scmp.eq.s32.totalorder %s9974_s17, 1 }
   0xe   : > { %p332_p3 = scmp.ne.s32.totalorder %s9862_s30, %s9858_s29  ;;  %p333_p4 = scmp.eq.s32.totalorder %s6858_s18, 1 }
   0xf   : > { %s9989_s22 = scalar_select %p314_p1, %s9866_s15, %s316_s20  }
  0x10   : > { %p9991_p5 = por %p327_p2, %p326_p0  ;;  %p9995_p6 = por %p333_p4, %p332_p3 }
  0x11   : > { %12215 = sst [smem:[#allocation12_spill]] %s9989_s22  ;;  %p6861_p7 = scmp.ge.s32.totalorder %s9870_s16, 1 }
  0x12   : > { %p421_p8 = scmp.lt.s32.totalorder %s9870_s16, 3 }
  0x14   : > { %p422_p9 = pnand %p6861_p7, %p421_p8 }
  0x15   : > { %s12218_s1 = sld [smem:[#allocation14_spill]] (!%p422_p9)  ;;  %vm552_vm0 = vcmask (!%p422_p9), 1040384   ;;  %p470_p10 = scmp.lt.s32.totalorder (!%p422_p9), %s9974_s17, 1  ;;  %vm9872_vm1 = vmmov (!%p422_p9), 1   ;;  %vm497_vm3 = vcmask (!%p422_p9), 203776   ;;  %vm1492_vm4 = vcmask (!%p422_p9), 261120  }
  0x16   : > { %425 = sbr.rel (%p422_p9) target bundleno = 2350 (0x92e), region = 72  ;;  %vm10014_vm2 = vmpackc.low (!%p422_p9), %vm552_vm0, %vm9872_vm1  ;;  %s12221_s0 = sld [smem:[#allocation13_spill]] (!%p422_p9)  ;;  %vm9874_vm5 = vmmov (!%p422_p9), 0   ;;  %vm3498_vm6 = vcmask (!%p422_p9), 523264   ;;  %vm6639_vm7 = vcmask (!%p422_p9), 130048   ;;  %vm6643_vm8 = vcmask (!%p422_p9), 124928  }
  0x17   : > { %s12222_s3 = sld [smem:[#allocation16_spill]] (!%p422_p9)  ;;  %s12223_s2 = sld [smem:[#allocation15_spill]] (!%p422_p9)  ;;  %vm6743_vm9 = vcmask (!%p422_p9), 122880   ;;  %vm6729_vm10 = vcmask (!%p422_p9), 73728  }
  0x18   : > { %s12110_s27 = sand.u32 (!%p422_p9), 1, %s9862_s30   ;;  %s12210_s21 = sshll.u32 (!%p422_p9), %s9974_s17, 4 }
  0x19   : > { %s12125_s22 = scalar_lea.hbm (!%p422_p9), %s12209_s14, %s12210_s21  ;;  %s6750_s20 = scalar_lea.sflag (!%p422_p9), [#allocation9], %s12110_s27 }
  0x1b   : > { %v475_v0 = vld [vmem:[%s12218_s1] sm:$0xff] (!%p422_p9)  ;;  %v476_v1 = vld [vmem:[%s12218_s1 + $0x8] sm:$0xff] (!%p422_p9)  ;;  %v477_v2 = vld [vmem:[%s12218_s1 + $0x10] sm:$0xff] (!%p422_p9) }
  0x1c   : > { %v9178_v3 = vpack.c.bf16 (!%p422_p9), %v476_v1, %v475_v0  ;;  %v478_v4 = vld [vmem:[%s12218_s1 + $0x18] sm:$0x1] (!%p422_p9)  ;;  %s9876_s1 = smov (!%p422_p9), [#allocation8]  }
  0x1d   : > { %v9182_v5 = vpack.c.bf16 %v478_v4, %v477_v2  ;;  %s471_s25 = scalar_select %p470_p10, %s9974_s17, 1 }
  0x1e   : > { %9179 = vmatprep.subr.bf16.mxu0 %v9178_v3  ;;  %9189 = vmatprep.subr.bf16.mxu1 %v9178_v3 }
  0x1f   : > { %9181 = vmatpush3.bf16.msra.mxu0 %v9178_v3  ;;  %9191 = vmatpush3.bf16.msra.mxu1 %v9178_v3  ;;  %s9723_s26 = smul.u32 576, %s471_s25 }
  0x20   : > { %9184 = vmatprep.subr.msk.bf16.mxu0 %vm10014_vm2, %v9182_v5  ;;  %9194 = vmatprep.subr.msk.bf16.mxu1 %vm10014_vm2, %v9182_v5 }
  0x21   : > { %s10026_s28 = scalar_lea.vmem %s12221_s0, %s9723_s26 }
  0x22   : > { %v479_v7 = vld [vmem:[%s10026_s28] sm:$0xff]  ;;  %v6882_v8 = vld [vmem:[%s10026_s28 + $0x90] sm:$0xff]  ;;  %v480_v9 = vld [vmem:[%s10026_s28 + $0x8] sm:$0xff] }
  0x23   : > { %9187 = vmatpush3.bf16.msk.msra.mxu0 %vm10014_vm2, %v9182_v5  ;;  %9197 = vmatpush3.bf16.msk.msra.mxu1 %vm10014_vm2, %v9182_v5  ;;  %v6883_v10 = vld [vmem:[%s10026_s28 + $0x98] sm:$0xff]  ;;  %v481_v11 = vld [vmem:[%s10026_s28 + $0x10] sm:$0xff]  ;;  %v6884_v12 = vld [vmem:[%s10026_s28 + $0xa0] sm:$0xff] }
  0x24   : > { %8020 = vmatprep.mubr.msk.f32.mxu0 %vm497_vm3, %v479_v7  ;;  %8055 = vmatprep.mubr.msk.f32.mxu1 %vm497_vm3, %v6882_v8  ;;  %v482_v13 = vld [vmem:[%s10026_s28 + $0x18] sm:$0xff]  ;;  %v6885_v14 = vld [vmem:[%s10026_s28 + $0xa8] sm:$0xff]  ;;  %v483_v15 = vld [vmem:[%s10026_s28 + $0x20] sm:$0xff] }
  0x25   : > { %9199 = vmatprep.subr.bf16.mxu0 %v9178_v3  ;;  %9209 = vmatprep.subr.bf16.mxu1 %v9178_v3  ;;  %v6886_v16 = vld [vmem:[%s10026_s28 + $0xb0] sm:$0xff]  ;;  %v484_v17 = vld [vmem:[%s10026_s28 + $0x28] sm:$0xff]  ;;  %v6887_v18 = vld [vmem:[%s10026_s28 + $0xb8] sm:$0xff] }
  0x26   : > { %8021 = vmatmul.mubr.msk.f32.vlgmr.msra.gmra.mrb[0].mxu0 %vm497_vm3, %v480_v9  ;;  %8056 = vmatmul.mubr.msk.f32.vlgmr.msra.gmra.mrb[0].mxu1 %vm497_vm3, %v6883_v10  ;;  %v485_v19 = vld [vmem:[%s10026_s28 + $0x30] sm:$0xff]  ;;  %v6888_v20 = vld [vmem:[%s10026_s28 + $0xc0] sm:$0xff]  ;;  %v486_v21 = vld [vmem:[%s10026_s28 + $0x38] sm:$0xff] }
  0x27   : > { %9201 = vmatpush3.bf16.msra.mxu0 %v9178_v3  ;;  %8023 = vmatprep.mubr.msk.f32.mxu0 %vm497_vm3, %v481_v11  ;;  %v6889_v22 = vld [vmem:[%s10026_s28 + $0xc8] sm:$0xff]  ;;  %v487_v23 = vld [vmem:[%s10026_s28 + $0x40] sm:$0xff]  ;;  %v6890_v24 = vld [vmem:[%s10026_s28 + $0xd0] sm:$0xff] }
  0x28   : > { %8058 = vmatprep.mubr.msk.f32.mxu1 %vm497_vm3, %v6884_v12  ;;  %9211 = vmatpush3.bf16.msra.mxu1 %v9178_v3  ;;  %v488_v25 = vld [vmem:[%s10026_s28 + $0x48] sm:$0xff]  ;;  %v6891_v26 = vld [vmem:[%s10026_s28 + $0xd8] sm:$0xff]  ;;  %v489_v27 = vld [vmem:[%s10026_s28 + $0x50] sm:$0xff] }
  0x29   : > { %9204 = vmatprep.subr.msk.bf16.mxu0 %vm10014_vm2, %v9182_v5  ;;  %9214 = vmatprep.subr.msk.bf16.mxu1 %vm10014_vm2, %v9182_v5  ;;  %v6892_v28 = vld [vmem:[%s10026_s28 + $0xe0] sm:$0xff]  ;;  %v490_v29 = vld [vmem:[%s10026_s28 + $0x58] sm:$0xff]  ;;  %v6893_v30 = vld [vmem:[%s10026_s28 + $0xe8] sm:$0xff] }
  0x2a   : > { %8024 = vmatmul.mubr.msk.f32.gmra.mrb[2].mxu0 %vm497_vm3, %v482_v13  ;;  %8059 = vmatmul.mubr.msk.f32.gmra.mrb[2].mxu1 %vm497_vm3, %v6885_v14  ;;  %v491_v31 = vld [vmem:[%s10026_s28 + $0x60] sm:$0xff]  ;;  %v6894_v32 = vld [vmem:[%s10026_s28 + $0xf0] sm:$0xff]  ;;  %v492_v33 = vld [vmem:[%s10026_s28 + $0x68] sm:$0xff] }
  0x2b   : > { %8026 = vmatprep.mubr.msk.f32.mxu0 %vm497_vm3, %v483_v15  ;;  %8061 = vmatprep.mubr.msk.f32.mxu1 %vm497_vm3, %v6886_v16  ;;  %v6895_v34 = vld [vmem:[%s10026_s28 + $0xf8] sm:$0xff]  ;;  %v493_v35 = vld [vmem:[%s10026_s28 + $0x70] sm:$0xff]  ;;  %v6896_v36 = vld [vmem:[%s10026_s28 + $0x100] sm:$0xff] }
  0x2c   : > { %9207 = vmatpush3.bf16.msk.msra.mxu0 %vm10014_vm2, %v9182_v5  ;;  %9217 = vmatpush3.bf16.msk.msra.mxu1 %vm10014_vm2, %v9182_v5  ;;  %v494_v37 = vld [vmem:[%s10026_s28 + $0x78] sm:$0xff]  ;;  %v6897_v38 = vld [vmem:[%s10026_s28 + $0x108] sm:$0xff]  ;;  %v495_v39 = vld [vmem:[%s10026_s28 + $0x80] sm:$0xff] }
  0x2d   : > { %v6898_v40 = vld [vmem:[%s10026_s28 + $0x110] sm:$0xff]  ;;  %v496_v41 = vld [vmem:[%s10026_s28 + $0x88] sm:$0xff]  ;;  %v6899_v42 = vld [vmem:[%s10026_s28 + $0x118] sm:$0xff] }
  0x2e   : > { %8027 = vmatmul.mubr.msk.f32.gmra.mrb[4].mxu0 %vm497_vm3, %v484_v17  ;;  %8062 = vmatmul.mubr.msk.f32.gmra.mrb[4].mxu1 %vm497_vm3, %v6887_v18  ;;  %v6919_v43 = vld [vmem:[%s10026_s28 + $0x120] sm:$0xff]  ;;  %v6956_v44 = vld [vmem:[%s10026_s28 + $0x1b0] sm:$0xff]  ;;  %v6920_v45 = vld [vmem:[%s10026_s28 + $0x128] sm:$0xff]  ;;  %v9873_v17 = vmov 0.0|0.0  }
  0x2f   : > { %8029 = vmatprep.mubr.msk.f32.mxu0 %vm497_vm3, %v485_v19  ;;  %8064 = vmatprep.mubr.msk.f32.mxu1 %vm497_vm3, %v6888_v20  ;;  %v6957_v46 = vld [vmem:[%s10026_s28 + $0x1b8] sm:$0xff]  ;;  %v6921_v47 = vld [vmem:[%s10026_s28 + $0x130] sm:$0xff]  ;;  %v6958_v48 = vld [vmem:[%s10026_s28 + $0x1c0] sm:$0xff] }
  0x30   : > { %v6922_v49 = vld [vmem:[%s10026_s28 + $0x138] sm:$0xff]  ;;  %v6959_v50 = vld [vmem:[%s10026_s28 + $0x1c8] sm:$0xff]  ;;  %v6923_v51 = vld [vmem:[%s10026_s28 + $0x140] sm:$0xff]  ;;  %9218 = vmatprep.subr.bf16.mxu0 %v9873_v17  ;;  %9224 = vmatprep.subr.bf16.mxu1 %v9873_v17 }
  0x31   : > { %v6960_v52 = vld [vmem:[%s10026_s28 + $0x1d0] sm:$0xff]  ;;  %v6924_v53 = vld [vmem:[%s10026_s28 + $0x148] sm:$0xff]  ;;  %v6961_v54 = vld [vmem:[%s10026_s28 + $0x1d8] sm:$0xff] }
  0x32   : > { %8030 = vmatmul.mubr.msk.f32.gmra.mrb[6].mxu0 %vm497_vm3, %v486_v21  ;;  %8065 = vmatmul.mubr.msk.f32.gmra.mrb[6].mxu1 %vm497_vm3, %v6889_v22  ;;  %v6925_v55 = vld [vmem:[%s10026_s28 + $0x150] sm:$0xff]  ;;  %v6962_v56 = vld [vmem:[%s10026_s28 + $0x1e0] sm:$0xff]  ;;  %v6926_v57 = vld [vmem:[%s10026_s28 + $0x158] sm:$0xff] }
  0x33   : > { %8032 = vmatprep.mubr.msk.f32.mxu0 %vm497_vm3, %v487_v23  ;;  %8067 = vmatprep.mubr.msk.f32.mxu1 %vm497_vm3, %v6890_v24  ;;  %v6963_v58 = vld [vmem:[%s10026_s28 + $0x1e8] sm:$0xff]  ;;  %v6927_v59 = vld [vmem:[%s10026_s28 + $0x160] sm:$0xff]  ;;  %v6964_v60 = vld [vmem:[%s10026_s28 + $0x1f0] sm:$0xff] }
  0x34   : > { %v6928_v61 = vld [vmem:[%s10026_s28 + $0x168] sm:$0xff]  ;;  %v6965_v62 = vld [vmem:[%s10026_s28 + $0x1f8] sm:$0xff]  ;;  %v6929_v63 = vld [vmem:[%s10026_s28 + $0x170] sm:$0xff] }
  0x35   : > { %v6966_v0 = vld [vmem:[%s10026_s28 + $0x200] sm:$0xff]  ;;  %v6930_v1 = vld [vmem:[%s10026_s28 + $0x178] sm:$0xff]  ;;  %v6967_v2 = vld [vmem:[%s10026_s28 + $0x208] sm:$0xff] }
  0x36   : > { %8033 = vmatmul.mubr.msk.f32.gmra.mrb[8].mxu0 %vm497_vm3, %v488_v25  ;;  %8068 = vmatmul.mubr.msk.f32.gmra.mrb[8].mxu1 %vm497_vm3, %v6891_v26  ;;  %v6931_v3 = vld [vmem:[%s10026_s28 + $0x180] sm:$0xff]  ;;  %v6968_v4 = vld [vmem:[%s10026_s28 + $0x210] sm:$0xff]  ;;  %v6932_v5 = vld [vmem:[%s10026_s28 + $0x188] sm:$0xff] }
  0x37   : > { %8035 = vmatprep.mubr.msk.f32.mxu0 %vm497_vm3, %v489_v27  ;;  %8070 = vmatprep.mubr.msk.f32.mxu1 %vm497_vm3, %v6892_v28  ;;  %v6969_v6 = vld [vmem:[%s10026_s28 + $0x218] sm:$0xff]  ;;  %v6933_v7 = vld [vmem:[%s10026_s28 + $0x190] sm:$0xff]  ;;  %v6970_v8 = vld [vmem:[%s10026_s28 + $0x220] sm:$0xff]  ;;  %v9875_v28 = vmov 0.0  }
  0x38   : > { %v6934_v9 = vld [vmem:[%s10026_s28 + $0x198] sm:$0xff]  ;;  %v6971_v10 = vld [vmem:[%s10026_s28 + $0x228] sm:$0xff]  ;;  %v6935_v11 = vld [vmem:[%s10026_s28 + $0x1a0] sm:$0xff]  ;;  %1511 = vst.msk [vmem:[#allocation2 + $0x90] sm:$0xff] %vm1492_vm4, %v9875_v28 }
  0x39   : > { %v6972_v12 = vld [vmem:[%s10026_s28 + $0x230] sm:$0xff]  ;;  %v6936_v13 = vld [vmem:[%s10026_s28 + $0x1a8] sm:$0xff]  ;;  %v6973_v14 = vld [vmem:[%s10026_s28 + $0x238] sm:$0xff]  ;;  %3514 = vst.msk [vmem:[#allocation3 + $0x78] sm:$0xff] %vm3498_vm6, %v9875_v28  ;;  %s469_s28 = scalar_lea.vmem [#allocation8], %s12110_s27 }
  0x3a   : > { %8036 = vmatmul.mubr.msk.f32.gmra.mrb[10].mxu0 %vm497_vm3, %v490_v29  ;;  %8071 = vmatmul.mubr.msk.f32.gmra.mrb[10].mxu1 %vm497_vm3, %v6893_v30  ;;  %v6994_v15 = vld [vmem:[%s12222_s3 + $0x20] sm:$0xff]  ;;  %v6995_v16 = vld [vmem:[%s12222_s3 + $0x28] sm:$0xff]  ;;  %v6996_v19 = vld [vmem:[%s12222_s3 + $0x30] sm:$0xff]  ;;  %s6775_s18 = sshll.u32 %s469_s28, 4  ;;  %s6776_s18 = int_to_ptr.vmem [resolvable:$true] %s6775_s18 }
  0x3b   : > { %8038 = vmatprep.mubr.msk.f32.mxu0 %vm497_vm3, %v491_v31  ;;  %8073 = vmatprep.mubr.msk.f32.mxu1 %vm497_vm3, %v6894_v32  ;;  %v9219_v18 = vpack.c.bf16 %v6995_v16, %v6994_v15  ;;  %v6997_v20 = vld [vmem:[%s12222_s3 + $0x38] sm:$0xff]  ;;  %v1527_v22 = vld [vmem:[%s12222_s3] sm:$0xff]  ;;  %v1528_v23 = vld [vmem:[%s12222_s3 + $0x8] sm:$0xff]  ;;  %s9776_s0 = scalar_lea.vmem %s6776_s18, 16 }
  0x3c   : > { %v9222_v21 = vpack.c.bf16 %v6997_v20, %v6996_v19  ;;  %v9225_v24 = vpack.c.bf16 %v1528_v23, %v1527_v22  ;;  %v1529_v25 = vld [vmem:[%s12222_s3 + $0x10] sm:$0xff]  ;;  %v1530_v26 = vld [vmem:[%s12222_s3 + $0x18] sm:$0xff]  ;;  %p9777_p11 = scmp.ne.s32.totalorder %s6776_s18, %s9776_s0 }
  0x3d   : > { %v9228_v27 = vpack.c.bf16 %v1530_v26, %v1529_v25  ;;  %v10307_v26 = vld [vmem:[%s12223_s2] ss:$0 sm:$0xff]  ;;  %s9780_s2 = sshll.u32 %s9876_s1, 4  ;;  %s9781_s2 = int_to_ptr.vmem [resolvable:$false] %s9780_s2 }
  0x3e   : > { %8039 = vmatmul.mubr.msk.f32.gmra.mrb[12].mxu0 %vm497_vm3, %v492_v33  ;;  %8074 = vmatmul.mubr.msk.f32.gmra.mrb[12].mxu1 %vm497_vm3, %v6895_v34  ;;  %p9778_p12 = pnand %p9777_p11, %p9991_p5  ;;  %p9783_p0 = scmp.lt.s32.totalorder %s6776_s18, %s9781_s2 }
  0x3f   : > { %8041 = vmatprep.mubr.msk.f32.mxu0 %vm497_vm3, %v493_v35  ;;  %8076 = vmatprep.mubr.msk.f32.mxu1 %vm497_vm3, %v6896_v36 }
  0x40   : > { %p9779_p13 = pneg %p9778_p12 }
  0x42   : > { %8042 = vmatmul.mubr.msk.f32.gmra.mrb[14].mxu0 %vm497_vm3, %v494_v37  ;;  %8077 = vmatmul.mubr.msk.f32.gmra.mrb[14].mxu1 %vm497_vm3, %v6897_v38 }
  0x43   : > { %8044 = vmatprep.mubr.msk.f32.mxu0 %vm497_vm3, %v495_v39  ;;  %8079 = vmatprep.mubr.msk.f32.mxu1 %vm497_vm3, %v6898_v40 }
  0x46   : > { %8045 = vmatmul.mubr.msk.f32.gmra.mrb[16].mxu0 %vm497_vm3, %v496_v41  ;;  %8080 = vmatmul.mubr.msk.f32.gmra.mrb[16].mxu1 %vm497_vm3, %v6899_v42 }
  0x47   : > { %8090 = vmatprep.mubr.msk.f32.mxu0 %vm497_vm3, %v6919_v43  ;;  %8125 = vmatprep.mubr.msk.f32.mxu1 %vm497_vm3, %v6956_v44 }
  0x4a   : > { %8091 = vmatmul.mubr.msk.f32.vlgmr.msra.gmra.mrb[18].mxu0 %vm497_vm3, %v6920_v45  ;;  %8126 = vmatmul.mubr.msk.f32.vlgmr.msra.gmra.mrb[18].mxu1 %vm497_vm3, %v6957_v46 }
  0x4b   : > { %8093 = vmatprep.mubr.msk.f32.mxu0 %vm497_vm3, %v6921_v47  ;;  %8128 = vmatprep.mubr.msk.f32.mxu1 %vm497_vm3, %v6958_v48 }
  0x4c   : > { %9220 = vmatpush3.bf16.msra.mxu0 %v9219_v18  ;;  %9226 = vmatpush3.bf16.msra.mxu1 %v9225_v24 }
  0x4d   : > { %9221 = vmatprep.subr.bf16.mxu0 %v9873_v17  ;;  %9227 = vmatprep.subr.bf16.mxu1 %v9873_v17 }
  0x4e   : > { %8094 = vmatmul.mubr.msk.f32.gmra.mrb[20].mxu0 %vm497_vm3, %v6922_v49  ;;  %8129 = vmatmul.mubr.msk.f32.gmra.mrb[20].mxu1 %vm497_vm3, %v6959_v50 }
  0x4f   : > { %8096 = vmatprep.mubr.msk.f32.mxu0 %vm497_vm3, %v6923_v51  ;;  %8131 = vmatprep.mubr.msk.f32.mxu1 %vm497_vm3, %v6960_v52 }
  0x50   : > { %9223 = vmatpush3.bf16.msra.mxu0 %v9222_v21  ;;  %9229 = vmatpush3.bf16.msra.mxu1 %v9228_v27 }
  0x51   : > { %9230 = vmatprep.subr.bf16.mxu0 %v9873_v17  ;;  %9236 = vmatprep.subr.bf16.mxu1 %v9873_v17 }
  0x52   : > { %8097 = vmatmul.mubr.msk.f32.gmra.mrb[22].mxu0 %vm497_vm3, %v6924_v53  ;;  %8132 = vmatmul.mubr.msk.f32.gmra.mrb[22].mxu1 %vm497_vm3, %v6961_v54 }
  0x53   : > { %8099 = vmatprep.mubr.msk.f32.mxu0 %vm497_vm3, %v6925_v55  ;;  %8134 = vmatprep.mubr.msk.f32.mxu1 %vm497_vm3, %v6962_v56 }
  0x56   : > { %8100 = vmatmul.mubr.msk.f32.gmra.mrb[24].mxu0 %vm497_vm3, %v6926_v57  ;;  %8135 = vmatmul.mubr.msk.f32.gmra.mrb[24].mxu1 %vm497_vm3, %v6963_v58 }
  0x57   : > { %8102 = vmatprep.mubr.msk.f32.mxu0 %vm497_vm3, %v6927_v59  ;;  %8137 = vmatprep.mubr.msk.f32.mxu1 %vm497_vm3, %v6964_v60 }
  0x5a   : > { %8103 = vmatmul.mubr.msk.f32.gmra.mrb[26].mxu0 %vm497_vm3, %v6928_v61  ;;  %8138 = vmatmul.mubr.msk.f32.gmra.mrb[26].mxu1 %vm497_vm3, %v6965_v62 }
  0x5b   : > { %8105 = vmatprep.mubr.msk.f32.mxu0 %vm497_vm3, %v6929_v63  ;;  %8140 = vmatprep.mubr.msk.f32.mxu1 %vm497_vm3, %v6966_v0 }
  0x5e   : > { %8106 = vmatmul.mubr.msk.f32.gmra.mrb[28].mxu0 %vm497_vm3, %v6930_v1  ;;  %8141 = vmatmul.mubr.msk.f32.gmra.mrb[28].mxu1 %vm497_vm3, %v6967_v2 }
  0x5f   : > { %8108 = vmatprep.mubr.msk.f32.mxu0 %vm497_vm3, %v6931_v3  ;;  %8143 = vmatprep.mubr.msk.f32.mxu1 %vm497_vm3, %v6968_v4 }
  0x62   : > { %8109 = vmatmul.mubr.msk.f32.gmra.mrb[30].mxu0 %vm497_vm3, %v6932_v5  ;;  %8144 = vmatmul.mubr.msk.f32.gmra.mrb[30].mxu1 %vm497_vm3, %v6969_v6 }
  0x63   : > { %8111 = vmatprep.mubr.msk.f32.mxu0 %vm497_vm3, %v6933_v7  ;;  %8146 = vmatprep.mubr.msk.f32.mxu1 %vm497_vm3, %v6970_v8 }
  0x66   : > { %8112 = vmatmul.mubr.msk.f32.gmra.mrb[32].mxu0 %vm497_vm3, %v6934_v9  ;;  %8147 = vmatmul.mubr.msk.f32.gmra.mrb[32].mxu1 %vm497_vm3, %v6971_v10 }
  0x67   : > { %8114 = vmatprep.mubr.msk.f32.mxu0 %vm497_vm3, %v6935_v11  ;;  %8149 = vmatprep.mubr.msk.f32.mxu1 %vm497_vm3, %v6972_v12 }
  0x6a   : > { %8115 = vmatmul.mubr.msk.f32.gmra.mrb[34].mxu0 %vm497_vm3, %v6936_v13  ;;  %8150 = vmatmul.mubr.msk.f32.gmra.mrb[34].mxu1 %vm497_vm3, %v6973_v14 }
  0x6b   : > { %8160 = vmatprep.mubr.msk.f32.mxu0 %vm9874_vm5, %v9875_v28  ;;  %8213 = vmatprep.mubr.msk.f32.mxu1 %vm9874_vm5, %v9875_v28 }
  0xf9   : > { %v8022_v29 = vpop.f32.mrb[0].mxu0  ;;  %v8057_v30 = vpop.f32.mrb[0].mxu1 }
  0xfa   : > { %v940_v31 = vmax.f32 %v8022_v29, %v8057_v30  ;;  %v622_v32 = vpop.f32.mrb[1].mxu0  ;;  %v850_v33 = vpop.f32.mrb[1].mxu1 }
  0xfb   : > { %v939_v34 = vmax.f32 %v622_v32, %v850_v33 }
  0xfd   : > { %v8025_v35 = vpop.f32.mrb[2].mxu0  ;;  %v8060_v36 = vpop.f32.mrb[2].mxu1 }
  0xfe   : > { %v942_v37 = vmax.f32 %v8025_v35, %v8060_v36  ;;  %v632_v38 = vpop.f32.mrb[3].mxu0  ;;  %v860_v39 = vpop.f32.mrb[3].mxu1 }
  0xff   : > { %v941_v40 = vmax.f32 %v632_v38, %v860_v39 }
 0x101   : > { %v10220_v41 = vpop.f32.mrb[4].mxu0  ;;  %v10222_v42 = vpop.f32.mrb[4].mxu1 }
 0x102   : > { %v944_v43 = vmax.f32 %v10220_v41, %v10222_v42  ;;  %v10226_v44 = vpop.f32.mrb[5].mxu0  ;;  %v10228_v45 = vpop.f32.mrb[5].mxu1  ;;  %v7028_v41 = vld [vmem:[%s12222_s3 + $0x40] sm:$0xff]  ;;  %v7029_v42 = vld [vmem:[%s12222_s3 + $0x48] sm:$0xff] }
 0x103   : > { %v943_v46 = vmax.f32 %v10226_v44, %v10228_v45 }
 0x105   : > { %v10232_v47 = vpop.f32.mrb[6].mxu0  ;;  %v10234_v48 = vpop.f32.mrb[6].mxu1 }
 0x106   : > { %v946_v49 = vmax.f32 %v10232_v47, %v10234_v48  ;;  %v10238_v50 = vpop.f32.mrb[7].mxu0  ;;  %v10240_v51 = vpop.f32.mrb[7].mxu1 }
 0x107   : > { %v945_v52 = vmax.f32 %v10238_v50, %v10240_v51  ;;  %v7030_v50 = vld [vmem:[%s12222_s3 + $0x50] sm:$0xff] }
 0x109   : > { %v10244_v53 = vpop.f32.mrb[8].mxu0  ;;  %v10246_v54 = vpop.f32.mrb[8].mxu1 }
 0x10a   : > { %v948_v55 = vmax.f32 %v10244_v53, %v10246_v54  ;;  %v10250_v56 = vpop.f32.mrb[9].mxu0  ;;  %v10252_v57 = vpop.f32.mrb[9].mxu1  ;;  %v7049_v53 = vld [vmem:[%s12222_s3 + $0x70] sm:$0xff]  ;;  %v7050_v54 = vld [vmem:[%s12222_s3 + $0x78] sm:$0xff] }
 0x10b   : > { %v947_v58 = vmax.f32 %v10250_v56, %v10252_v57 }
 0x10d   : > { %v10256_v59 = vpop.f32.mrb[10].mxu0  ;;  %v10258_v60 = vpop.f32.mrb[10].mxu1 }
 0x10e   : > { %v950_v61 = vmax.f32 %v10256_v59, %v10258_v60  ;;  %v10262_v62 = vpop.f32.mrb[11].mxu0  ;;  %v10264_v63 = vpop.f32.mrb[11].mxu1 }
 0x10f   : > { %v949_v0 = vmax.f32 %v10262_v62, %v10264_v63 }
 0x111   : > { %v10268_v1 = vpop.f32.mrb[12].mxu0  ;;  %v10270_v2 = vpop.f32.mrb[12].mxu1 }
 0x112   : > { %v952_v3 = vmax.f32 %v10268_v1, %v10270_v2  ;;  %v10274_v4 = vpop.f32.mrb[13].mxu0  ;;  %v10276_v5 = vpop.f32.mrb[13].mxu1 }
 0x113   : > { %v951_v6 = vmax.f32 %v10274_v4, %v10276_v5 }
 0x115   : > { %v10280_v7 = vpop.f32.mrb[14].mxu0  ;;  %v10282_v8 = vpop.f32.mrb[14].mxu1 }
 0x116   : > { %v954_v9 = vmax.f32 %v10280_v7, %v10282_v8  ;;  %v10286_v10 = vpop.f32.mrb[15].mxu0  ;;  %v10288_v11 = vpop.f32.mrb[15].mxu1 }
 0x119   : > { %v10292_v13 = vpop.f32.mrb[16].mxu0  ;;  %v10294_v14 = vpop.f32.mrb[16].mxu1 }
 0x11a   : > { %v10298_v16 = vpop.f32.mrb[17].mxu0  ;;  %v10300_v18 = vpop.f32.mrb[17].mxu1 }
 0x11d   : > { %v8092_v20 = vpop.f32.mrb[18].mxu0  ;;  %v8127_v21 = vpop.f32.mrb[18].mxu1 }
 0x11e   : > { %v1186_v22 = vmax.f32 %v940_v31, %v8092_v20  ;;  %v1096_v23 = vpop.f32.mrb[19].mxu0  ;;  %v1342_v24 = vpop.f32.mrb[19].mxu1 }
 0x11f   : > { %v1185_v25 = vmax.f32 %v939_v34, %v1096_v23 }
 0x120   : > { %v1432_v27 = vmax.f32 %v1186_v22, %v8127_v21 }
 0x121   : > { %v1431_v29 = vmax.f32 %v1185_v25, %v1342_v24  ;;  %v8095_v30 = vpop.f32.mrb[20].mxu0  ;;  %v8130_v32 = vpop.f32.mrb[20].mxu1 }
 0x122   : > { %v1457_v33 = vadd.f32 %v10307_v26, %v1432_v27  ;;  %v1188_v35 = vmax.f32 %v942_v37, %v8095_v30  ;;  %v1106_v36 = vpop.f32.mrb[21].mxu0  ;;  %v1352_v38 = vpop.f32.mrb[21].mxu1 }
 0x123   : > { %v1456_v39 = vadd.f32 %v10307_v26, %v1431_v29  ;;  %v1187_v31 = vmax.f32 %v941_v40, %v1106_v36  ;;  %v7048_v36 = vld [vmem:[%s12222_s3 + $0x68] sm:$0xff] }
 0x124   : > { %v1475_v20 = vmax.f32 %v1457_v33, 0.0  ;;  %v1434_v19 = vmax.f32 %v1188_v35, %v8130_v32  ;;  %v7047_v35 = vld [vmem:[%s12222_s3 + $0x60] sm:$0xff] }
 0x125   : > { %v1474_v34 = vmax.f32 %v1456_v39, 0.0  ;;  %v1433_v23 = vmax.f32 %v1187_v31, %v1352_v38  ;;  %v8098_v15 = vpop.f32.mrb[22].mxu0  ;;  %v8133_v12 = vpop.f32.mrb[22].mxu1 }
 0x126   : > { %1494 = vst.msk [vmem:[#allocation2 + $0x8] sm:$0xff] %vm1492_vm4, %v1475_v20  ;;  %v1459_v21 = vadd.f32 %v10307_v26, %v1434_v19  ;;  %v1190_v22 = vmax.f32 %v944_v43, %v8098_v15  ;;  %v1116_v37 = vpop.f32.mrb[23].mxu0  ;;  %v1362_v24 = vpop.f32.mrb[23].mxu1 }
 0x127   : > { %1493 = vst.msk [vmem:[#allocation2] sm:$0xff] %vm1492_vm4, %v1474_v34  ;;  %v1458_v40 = vadd.f32 %v10307_v26, %v1433_v23  ;;  %v1189_v25 = vmax.f32 %v943_v46, %v1116_v37  ;;  %v7031_v37 = vld [vmem:[%s12222_s3 + $0x58] sm:$0xff] }
 0x128   : > { %v1477_v27 = vmax.f32 %v1459_v21, 0.0  ;;  %v1436_v29 = vmax.f32 %v1190_v22, %v8133_v12 }
 0x129   : > { %v1476_v30 = vmax.f32 %v1458_v40, 0.0  ;;  %v1435_v32 = vmax.f32 %v1189_v25, %v1362_v24  ;;  %v8101_v33 = vpop.f32.mrb[24].mxu0  ;;  %v8136_v19 = vpop.f32.mrb[24].mxu1  ;;  %v9237_v24 = vpack.c.bf16 %v7048_v36, %v7047_v35 }
 0x12a   : > { %1496 = vst.msk [vmem:[#allocation2 + $0x18] sm:$0xff] %vm1492_vm4, %v1477_v27  ;;  %v1461_v43 = vadd.f32 %v10307_v26, %v1436_v29  ;;  %v1192_v44 = vmax.f32 %v946_v49, %v8101_v33  ;;  %v1126_v45 = vpop.f32.mrb[25].mxu0  ;;  %v1372_v46 = vpop.f32.mrb[25].mxu1  ;;  %v9231_v49 = vpack.c.bf16 %v7029_v42, %v7028_v41 }
 0x12b   : > { %1495 = vst.msk [vmem:[#allocation2 + $0x10] sm:$0xff] %vm1492_vm4, %v1476_v30  ;;  %v1460_v12 = vadd.f32 %v10307_v26, %v1435_v32  ;;  %v1191_v15 = vmax.f32 %v945_v52, %v1126_v45  ;;  %v9234_v30 = vpack.c.bf16 %v7031_v37, %v7030_v50 }
 0x12c   : > { %v1479_v47 = vmax.f32 %v1461_v43, 0.0  ;;  %v1438_v48 = vmax.f32 %v1192_v44, %v8136_v19  ;;  %v9240_v44 = vpack.c.bf16 %v7050_v54, %v7049_v53 }
 0x12d   : > { %v1478_v38 = vmax.f32 %v1460_v12, 0.0  ;;  %v1437_v39 = vmax.f32 %v1191_v15, %v1372_v46  ;;  %v8104_v31 = vpop.f32.mrb[26].mxu0  ;;  %v8139_v20 = vpop.f32.mrb[26].mxu1  ;;  %v1513_v42 = vld [vmem:[#allocation2 + $0x8] sm:$0xff] }
 0x12e   : > { %1498 = vst.msk [vmem:[#allocation2 + $0x28] sm:$0xff] %vm1492_vm4, %v1479_v47  ;;  %v1463_v51 = vadd.f32 %v10307_v26, %v1438_v48  ;;  %v1194_v52 = vmax.f32 %v948_v55, %v8104_v31  ;;  %v1136_v34 = vpop.f32.mrb[27].mxu0  ;;  %v1531_v23 = vld [vmem:[#allocation2 + $0x1] sm:$0xff]  ;;  %v1382_v22 = vpop.f32.mrb[27].mxu1 }
 0x12f   : > { %v1512_v21 = vld [vmem:[#allocation2] sm:$0xff]  ;;  %1497 = vst.msk [vmem:[#allocation2 + $0x20] sm:$0xff] %vm1492_vm4, %v1478_v38  ;;  %v1462_v40 = vadd.f32 %v10307_v26, %v1437_v39  ;;  %v1193_v25 = vmax.f32 %v947_v58, %v1136_v34  ;;  %8161 = vmatmul.mubr.msk.f32.vlgmr.msra.gmra.mrb[36].mxu0 %vm1492_vm4, %v1531_v23  ;;  %v12224_v23 = vmax.f32 %v10286_v10, %v10288_v11 }
 0x130   : > { %8214 = vmatmul.mubr.msk.f32.vlgmr.msra.gmra.mrb[36].mxu1 %vm1492_vm4, %v1512_v21  ;;  %v1481_v55 = vmax.f32 %v1463_v51, 0.0  ;;  %v1440_v27 = vmax.f32 %v1194_v52, %v8139_v20  ;;  %9232 = vmatpush3.bf16.msra.mxu0 %v9231_v49  ;;  %v12225_v11 = vmax.f32 %v10292_v13, %v10294_v14 }
 0x131   : > { %8163 = vmatprep.mubr.msk.f32.mxu0 %vm9874_vm5, %v9875_v28  ;;  %v1480_v56 = vmax.f32 %v1462_v40, 0.0  ;;  %v1439_v57 = vmax.f32 %v1193_v25, %v1382_v22  ;;  %v8107_v58 = vpop.f32.mrb[28].mxu0  ;;  %8216 = vmatprep.mubr.msk.f32.mxu1 %vm9874_vm5, %v9875_v28  ;;  %v8142_v29 = vpop.f32.mrb[28].mxu1  ;;  %v10414_v51 = vld [vmem:[#allocation2 + $0x18] sm:$0xff] }
 0x132   : > { %9233 = vmatprep.subr.bf16.mxu0 %v9873_v17  ;;  %1500 = vst.msk [vmem:[#allocation2 + $0x38] sm:$0xff] %vm1492_vm4, %v1481_v55  ;;  %v1465_v32 = vadd.f32 %v10307_v26, %v1440_v27  ;;  %v1196_v33 = vmax.f32 %v950_v61, %v8107_v58  ;;  %v1146_v19 = vpop.f32.mrb[29].mxu0  ;;  %v1532_v41 = vld [vmem:[#allocation2 + $0x9] sm:$0xff]  ;;  %v1392_v43 = vpop.f32.mrb[29].mxu1  ;;  %9238 = vmatpush3.bf16.msra.mxu1 %v9237_v24  ;;  %v1533_v36 = vld [vmem:[#allocation2 + $0x11] sm:$0xff] }
 0x133   : > { %1499 = vst.msk [vmem:[#allocation2 + $0x30] sm:$0xff] %vm1492_vm4, %v1480_v56  ;;  %v1464_v45 = vadd.f32 %v10307_v26, %v1439_v57  ;;  %v1195_v46 = vmax.f32 %v949_v0, %v1146_v19  ;;  %8164 = vmatmul.mubr.msk.f32.gmra.mrb[38].mxu0 %vm1492_vm4, %v1532_v41  ;;  %9239 = vmatprep.subr.bf16.mxu1 %v9873_v17  ;;  %v1514_v47 = vld [vmem:[#allocation2 + $0x10] sm:$0xff] }
 0x134   : > { %8217 = vmatmul.mubr.msk.f32.gmra.mrb[38].mxu1 %vm1492_vm4, %v1513_v42  ;;  %v1483_v59 = vmax.f32 %v1465_v32, 0.0  ;;  %v1442_v60 = vmax.f32 %v1196_v33, %v8142_v29  ;;  %8166 = vmatprep.mubr.msk.f32.mxu0 %vm9874_vm5, %v9875_v28  ;;  %v12226_v56 = vmax.f32 %v10298_v16, %v10300_v18 }
 0x135   : > { %8219 = vmatprep.mubr.msk.f32.mxu1 %vm9874_vm5, %v9875_v28  ;;  %v1482_v61 = vmax.f32 %v1464_v45, 0.0  ;;  %v1441_v12 = vmax.f32 %v1195_v46, %v1392_v43  ;;  %v8110_v15 = vpop.f32.mrb[30].mxu0  ;;  %v8145_v35 = vpop.f32.mrb[30].mxu1  ;;  %9235 = vmatpush3.bf16.msra.mxu0 %v9234_v30  ;;  %v10455_v30 = vld [vmem:[#allocation2 + $0x28] sm:$0xff] }
 0x136   : > { %1502 = vst.msk [vmem:[#allocation2 + $0x48] sm:$0xff] %vm1492_vm4, %v1483_v59  ;;  %v1467_v62 = vadd.f32 %v10307_v26, %v1442_v60  ;;  %v1198_v63 = vmax.f32 %v952_v3, %v8110_v15  ;;  %v1156_v0 = vpop.f32.mrb[31].mxu0  ;;  %v1402_v48 = vpop.f32.mrb[31].mxu1  ;;  %9241 = vmatpush3.bf16.msra.mxu1 %v9240_v44  ;;  %9242 = vmatprep.subr.bf16.mxu0 %v9873_v17  ;;  %v10412_v50 = vld [vmem:[#allocation2 + $0x19] sm:$0xff]  ;;  %v10434_v53 = vld [vmem:[#allocation2 + $0x21] sm:$0xff] }
 0x137   : > { %1501 = vst.msk [vmem:[#allocation2 + $0x40] sm:$0xff] %vm1492_vm4, %v1482_v61  ;;  %v1466_v49 = vadd.f32 %v10307_v26, %v1441_v12  ;;  %v1197_v38 = vmax.f32 %v951_v6, %v1156_v0  ;;  %8167 = vmatmul.mubr.msk.f32.gmra.mrb[40].mxu0 %vm1492_vm4, %v1533_v36  ;;  %9248 = vmatprep.subr.bf16.mxu1 %v9873_v17  ;;  %v10436_v54 = vld [vmem:[#allocation2 + $0x20] sm:$0xff] }
 0x138   : > { %8220 = vmatmul.mubr.msk.f32.gmra.mrb[40].mxu1 %vm1492_vm4, %v1514_v47  ;;  %v1485_v1 = vmax.f32 %v1467_v62, 0.0  ;;  %v1444_v2 = vmax.f32 %v1198_v63, %v8145_v35  ;;  %8169 = vmatprep.mubr.msk.f32.mxu0 %vm9874_vm5, %v9875_v28  ;;  %v7066_v36 = vld [vmem:[%s12222_s3 + $0x80] sm:$0xff]  ;;  %v7067_v47 = vld [vmem:[%s12222_s3 + $0x88] sm:$0xff] }
 0x139   : > { %8222 = vmatprep.mubr.msk.f32.mxu1 %vm9874_vm5, %v9875_v28  ;;  %v1484_v3 = vmax.f32 %v1466_v49, 0.0  ;;  %v1443_v39 = vmax.f32 %v1197_v38, %v1402_v48  ;;  %v8113_v31 = vpop.f32.mrb[32].mxu0  ;;  %v8148_v20 = vpop.f32.mrb[32].mxu1  ;;  %v10483_v43 = vld [vmem:[#allocation2 + $0x38] sm:$0xff]  ;;  %v7085_v38 = vld [vmem:[%s12222_s3 + $0xa0] sm:$0xff] }
 0x13a   : > { %1504 = vst.msk [vmem:[#allocation2 + $0x58] sm:$0xff] %vm1492_vm4, %v1485_v1  ;;  %v1469_v4 = vadd.f32 %v10307_v26, %v1444_v2  ;;  %v1200_v5 = vmax.f32 %v954_v9, %v8113_v31  ;;  %v1166_v6 = vpop.f32.mrb[33].mxu0  ;;  %v1412_v52 = vpop.f32.mrb[33].mxu1  ;;  %v10453_v18 = vld [vmem:[#allocation2 + $0x29] sm:$0xff]  ;;  %v10468_v41 = vld [vmem:[#allocation2 + $0x31] sm:$0xff]  ;;  %v9243_v2 = vpack.c.bf16 %v7067_v47, %v7066_v36 }
 0x13b   : > { %1503 = vst.msk [vmem:[#allocation2 + $0x50] sm:$0xff] %vm1492_vm4, %v1484_v3  ;;  %v1468_v34 = vadd.f32 %v10307_v26, %v1443_v39  ;;  %v1199_v21 = vmax.f32 %v12224_v23, %v1166_v6  ;;  %8170 = vmatmul.mubr.msk.f32.gmra.mrb[42].mxu0 %vm1492_vm4, %v10412_v50  ;;  %v10470_v42 = vld [vmem:[#allocation2 + $0x30] sm:$0xff]  ;;  %v7086_v1 = vld [vmem:[%s12222_s3 + $0xa8] sm:$0xff]  ;;  %v7088_v6 = vld [vmem:[%s12222_s3 + $0xb8] sm:$0xff] }
 0x13c   : > { %8223 = vmatmul.mubr.msk.f32.gmra.mrb[42].mxu1 %vm1492_vm4, %v10414_v51  ;;  %v1487_v7 = vmax.f32 %v1469_v4, 0.0  ;;  %v1446_v8 = vmax.f32 %v1200_v5, %v8148_v20  ;;  %8172 = vmatprep.mubr.msk.f32.mxu0 %vm9874_vm5, %v9875_v28  ;;  %v7068_v3 = vld [vmem:[%s12222_s3 + $0x90] sm:$0xff]  ;;  %v1921_v39 = vld [vmem:[#allocation2 + $0x2] sm:$0xff]  ;;  %v7069_v20 = vld [vmem:[%s12222_s3 + $0x98] sm:$0xff]  ;;  %v9249_v4 = vpack.c.bf16 %v7086_v1, %v7085_v38 }
 0x13d   : > { %8225 = vmatprep.mubr.msk.f32.mxu1 %vm9874_vm5, %v9875_v28  ;;  %v1486_v9 = vmax.f32 %v1468_v34, 0.0  ;;  %v1445_v22 = vmax.f32 %v1199_v21, %v1412_v52  ;;  %v8116_v37 = vpop.f32.mrb[34].mxu0  ;;  %v8151_v24 = vpop.f32.mrb[34].mxu1  ;;  %v10507_v59 = vld [vmem:[#allocation2 + $0x48] sm:$0xff]  ;;  %v7087_v5 = vld [vmem:[%s12222_s3 + $0xb0] sm:$0xff]  ;;  %v9246_v52 = vpack.c.bf16 %v7069_v20, %v7068_v3  ;;  %v7104_v38 = vld [vmem:[%s12222_s3 + $0xc0] sm:$0xff] }
 0x13e   : > { %1506 = vst.msk [vmem:[#allocation2 + $0x68] sm:$0xff] %vm1492_vm4, %v1487_v7  ;;  %v1471_v10 = vadd.f32 %v10307_v26, %v1446_v8  ;;  %v1202_v40 = vmax.f32 %v12225_v11, %v8116_v37  ;;  %v1176_v25 = vpop.f32.mrb[35].mxu0  ;;  %v1422_v55 = vpop.f32.mrb[35].mxu1  ;;  %v10493_v44 = vld [vmem:[#allocation2 + $0x41] sm:$0xff]  ;;  %v2141_v31 = vld [vmem:[#allocation2 + $0xc] sm:$0xff]  ;;  %v2142_v23 = vld [vmem:[#allocation2 + $0x14] sm:$0xff]  ;;  %v9252_v21 = vpack.c.bf16 %v7088_v6, %v7087_v5 }
 0x13f   : > { %1505 = vst.msk [vmem:[#allocation2 + $0x60] sm:$0xff] %vm1492_vm4, %v1486_v9  ;;  %v1470_v27 = vadd.f32 %v10307_v26, %v1445_v22  ;;  %v1201_v57 = vmax.f32 %v12226_v56, %v1176_v25  ;;  %8173 = vmatmul.mubr.msk.f32.gmra.mrb[44].mxu0 %vm1492_vm4, %v10434_v53  ;;  %v10495_v45 = vld [vmem:[#allocation2 + $0x40] sm:$0xff]  ;;  %v1922_v34 = vld [vmem:[#allocation2 + $0xa] sm:$0xff]  ;;  %v1923_v7 = vld [vmem:[#allocation2 + $0x12] sm:$0xff] }
 0x140   : > { %8226 = vmatmul.mubr.msk.f32.gmra.mrb[44].mxu1 %vm1492_vm4, %v10436_v54  ;;  %v1489_v13 = vmax.f32 %v1471_v10, 0.0  ;;  %v1448_v14 = vmax.f32 %v1202_v40, %v8151_v24  ;;  %8175 = vmatprep.mubr.msk.f32.mxu0 %vm9874_vm5, %v9875_v28  ;;  %v2143_v8 = vld [vmem:[#allocation2 + $0x1c] sm:$0xff]  ;;  %v2144_v22 = vld [vmem:[#allocation2 + $0x24] sm:$0xff]  ;;  %v2145_v24 = vld [vmem:[#allocation2 + $0x2c] sm:$0xff] }
 0x141   : > { %8228 = vmatprep.mubr.msk.f32.mxu1 %vm9874_vm5, %v9875_v28  ;;  %v1488_v58 = vmax.f32 %v1470_v27, 0.0  ;;  %v1447_v29 = vmax.f32 %v1201_v57, %v1422_v55  ;;  %v10531_v15 = vld [vmem:[#allocation2 + $0x58] sm:$0xff]  ;;  %v10632_v37 = vld [vmem:[#allocation2 + $0x22] sm:$0xff]  ;;  %v10641_v10 = vld [vmem:[#allocation2 + $0x2a] sm:$0xff] }
 0x142   : > { %1508 = vst.msk [vmem:[#allocation2 + $0x78] sm:$0xff] %vm1492_vm4, %v1489_v13  ;;  %v1473_v16 = vadd.f32 %v10307_v26, %v1448_v14  ;;  %v10505_v46 = vld [vmem:[#allocation2 + $0x49] sm:$0xff]  ;;  %v10517_v60 = vld [vmem:[#allocation2 + $0x51] sm:$0xff]  ;;  %v10623_v9 = vld [vmem:[#allocation2 + $0x1a] sm:$0xff] }
 0x143   : > { %1507 = vst.msk [vmem:[#allocation2 + $0x70] sm:$0xff] %vm1492_vm4, %v1488_v58  ;;  %v1472_v32 = vadd.f32 %v10307_v26, %v1447_v29  ;;  %8176 = vmatmul.mubr.msk.f32.gmra.mrb[46].mxu0 %vm1492_vm4, %v10453_v18  ;;  %v10481_v26 = vld [vmem:[#allocation2 + $0x39] sm:$0xff]  ;;  %v10519_v61 = vld [vmem:[#allocation2 + $0x50] sm:$0xff]  ;;  %v2148_v27 = vld [vmem:[#allocation2 + $0x44] sm:$0xff] }
 0x144   : > { %8229 = vmatmul.mubr.msk.f32.gmra.mrb[46].mxu1 %vm1492_vm4, %v10455_v30  ;;  %v1491_v33 = vmax.f32 %v1473_v16, 0.0  ;;  %8178 = vmatprep.mubr.msk.f32.mxu0 %vm9874_vm5, %v9875_v28  ;;  %v2146_v11 = vld [vmem:[#allocation2 + $0x34] sm:$0xff]  ;;  %v2147_v25 = vld [vmem:[#allocation2 + $0x3c] sm:$0xff]  ;;  %v2149_v57 = vld [vmem:[#allocation2 + $0x4c] sm:$0xff] }
 0x145   : > { %8231 = vmatprep.mubr.msk.f32.mxu1 %vm9874_vm5, %v9875_v28  ;;  %v1490_v19 = vmax.f32 %v1472_v32, 0.0  ;;  %v10555_v0 = vld [vmem:[#allocation2 + $0x68] sm:$0xff]  ;;  %v10650_v40 = vld [vmem:[#allocation2 + $0x32] sm:$0xff]  ;;  %v10659_v55 = vld [vmem:[#allocation2 + $0x3a] sm:$0xff] }
 0x146   : > { %1510 = vst.msk [vmem:[#allocation2 + $0x88] sm:$0xff] %vm1492_vm4, %v1491_v33  ;;  %v10529_v12 = vld [vmem:[#allocation2 + $0x59] sm:$0xff]  ;;  %v10541_v35 = vld [vmem:[#allocation2 + $0x61] sm:$0xff]  ;;  %v10677_v13 = vld [vmem:[#allocation2 + $0x4a] sm:$0xff] }
 0x147   : > { %1509 = vst.msk [vmem:[#allocation2 + $0x80] sm:$0xff] %vm1492_vm4, %v1490_v19  ;;  %8179 = vmatmul.mubr.msk.f32.gmra.mrb[48].mxu0 %vm1492_vm4, %v10468_v41  ;;  %v10543_v62 = vld [vmem:[#allocation2 + $0x60] sm:$0xff]  ;;  %v2150_v14 = vld [vmem:[#allocation2 + $0x54] sm:$0xff]  ;;  %v7105_v1 = vld [vmem:[%s12222_s3 + $0xc8] sm:$0xff] }
 0x148   : > { %8232 = vmatmul.mubr.msk.f32.gmra.mrb[48].mxu1 %vm1492_vm4, %v10470_v42  ;;  %8181 = vmatprep.mubr.msk.f32.mxu0 %vm9874_vm5, %v9875_v28  ;;  %v10668_v56 = vld [vmem:[#allocation2 + $0x42] sm:$0xff]  ;;  %v10686_v58 = vld [vmem:[#allocation2 + $0x52] sm:$0xff]  ;;  %v10695_v16 = vld [vmem:[#allocation2 + $0x5a] sm:$0xff]  ;;  %v9255_v20 = vpack.c.bf16 %v7105_v1, %v7104_v38 }
 0x149   : > { %8234 = vmatprep.mubr.msk.f32.mxu1 %vm9874_vm5, %v9875_v28  ;;  %v2151_v29 = vld [vmem:[#allocation2 + $0x5c] sm:$0xff]  ;;  %v2152_v32 = vld [vmem:[#allocation2 + $0x64] sm:$0xff]  ;;  %v2581_v5 = vld [vmem:[#allocation2 + $0xe] sm:$0xff] }
 0x14a   : > { %v10553_v63 = vld [vmem:[#allocation2 + $0x69] sm:$0xff]  ;;  %v10571_v48 = vld [vmem:[#allocation2 + $0x71] sm:$0xff]  ;;  %v2587_v38 = vld [vmem:[#allocation2 + $0x3e] sm:$0xff] }
 0x14b   : > { %8182 = vmatmul.mubr.msk.f32.gmra.mrb[50].mxu0 %vm1492_vm4, %v10481_v26  ;;  %v10573_v49 = vld [vmem:[#allocation2 + $0x70] sm:$0xff]  ;;  %v10704_v33 = vld [vmem:[#allocation2 + $0x62] sm:$0xff] }
 0x14c   : > { %8235 = vmatmul.mubr.msk.f32.gmra.mrb[50].mxu1 %vm1492_vm4, %v10483_v43  ;;  %8184 = vmatprep.mubr.msk.f32.mxu0 %vm9874_vm5, %v9875_v28  ;;  %v2153_v19 = vld [vmem:[#allocation2 + $0x6c] sm:$0xff]  ;;  %v2154_v47 = vld [vmem:[#allocation2 + $0x74] sm:$0xff] }
 0x14d   : > { %8237 = vmatprep.mubr.msk.f32.mxu1 %vm9874_vm5, %v9875_v28  ;;  %v10713_v36 = vld [vmem:[#allocation2 + $0x6a] sm:$0xff] }
 0x14e   : > { %v2155_v3 = vld [vmem:[#allocation2 + $0x7c] sm:$0xff]  ;;  %v7106_v6 = vld [vmem:[%s12222_s3 + $0xd0] sm:$0xff]  ;;  %v2368_v1 = vld [vmem:[#allocation2 + $0x45] sm:$0xff] }
 0x14f   : > { %8185 = vmatmul.mubr.msk.f32.gmra.mrb[52].mxu0 %vm1492_vm4, %v10493_v44 }
 0x150   : > { %8238 = vmatmul.mubr.msk.f32.gmra.mrb[52].mxu1 %vm1492_vm4, %v10495_v45  ;;  %8187 = vmatprep.mubr.msk.f32.mxu0 %vm9874_vm5, %v9875_v28 }
 0x151   : > { %8240 = vmatprep.mubr.msk.f32.mxu1 %vm9874_vm5, %v9875_v28 }
 0x153   : > { %8188 = vmatmul.mubr.msk.f32.gmra.mrb[54].mxu0 %vm1492_vm4, %v10505_v46 }
 0x154   : > { %8241 = vmatmul.mubr.msk.f32.gmra.mrb[54].mxu1 %vm1492_vm4, %v10507_v59  ;;  %8190 = vmatprep.mubr.msk.f32.mxu0 %vm9874_vm5, %v9875_v28 }
 0x155   : > { %8243 = vmatprep.mubr.msk.f32.mxu1 %vm9874_vm5, %v9875_v28 }
 0x157   : > { %8191 = vmatmul.mubr.msk.f32.gmra.mrb[56].mxu0 %vm1492_vm4, %v10517_v60 }
 0x158   : > { %8244 = vmatmul.mubr.msk.f32.gmra.mrb[56].mxu1 %vm1492_vm4, %v10519_v61  ;;  %8193 = vmatprep.mubr.msk.f32.mxu0 %vm9874_vm5, %v9875_v28 }
 0x159   : > { %8246 = vmatprep.mubr.msk.f32.mxu1 %vm9874_vm5, %v9875_v28 }
 0x15b   : > { %8194 = vmatmul.mubr.msk.f32.gmra.mrb[58].mxu0 %vm1492_vm4, %v10529_v12 }
 0x15c   : > { %8247 = vmatmul.mubr.msk.f32.gmra.mrb[58].mxu1 %vm1492_vm4, %v10531_v15  ;;  %8196 = vmatprep.mubr.msk.f32.mxu0 %vm9874_vm5, %v9875_v28 }
 0x15d   : > { %8249 = vmatprep.mubr.msk.f32.mxu1 %vm9874_vm5, %v9875_v28 }
 0x15f   : > { %8197 = vmatmul.mubr.msk.f32.gmra.mrb[60].mxu0 %vm1492_vm4, %v10541_v35 }
 0x160   : > { %8250 = vmatmul.mubr.msk.f32.gmra.mrb[60].mxu1 %vm1492_vm4, %v10543_v62  ;;  %8199 = vmatprep.mubr.msk.f32.mxu0 %vm9874_vm5, %v9875_v28 }
 0x161   : > { %8252 = vmatprep.mubr.msk.f32.mxu1 %vm9874_vm5, %v9875_v28 }
 0x163   : > { %8200 = vmatmul.mubr.msk.f32.gmra.mrb[62].mxu0 %vm1492_vm4, %v10553_v63 }
 0x164   : > { %8253 = vmatmul.mubr.msk.f32.gmra.mrb[62].mxu1 %vm1492_vm4, %v10555_v0  ;;  %8202 = vmatprep.mubr.msk.f32.mxu0 %vm9874_vm5, %v9875_v28 }
 0x165   : > { %8255 = vmatprep.mubr.msk.f32.mxu1 %vm9874_vm5, %v9875_v28 }
 0x167   : > { %8203 = vmatmul.mubr.msk.f32.gmra.mrb[64].mxu0 %vm1492_vm4, %v10571_v48 }
 0x168   : > { %8256 = vmatmul.mubr.msk.f32.gmra.mrb[64].mxu1 %vm1492_vm4, %v10573_v49  ;;  %8266 = vmatprep.mubr.msk.f32.mxu0 %vm9874_vm5, %v9875_v28 }
 0x169   : > { %8319 = vmatprep.mubr.msk.f32.mxu1 %vm9874_vm5, %v9875_v28 }
 0x16b   : > { %8267 = vmatmul.mubr.msk.f32.vlgmr.msra.gmra.mrb[66].mxu0 %vm1492_vm4, %v1921_v39  ;;  %v7123_v39 = vld [vmem:[%s12222_s3 + $0xe0] sm:$0xff] }
 0x16c   : > { %8320 = vmatmul.mubr.msk.f32.vlgmr.msra.gmra.mrb[66].mxu1 %vm1492_vm4, %v2141_v31  ;;  %9244 = vmatpush3.bf16.msra.mxu0 %v9243_v2  ;;  %v10728_v2 = vld [vmem:[#allocation2 + $0x72] sm:$0xff]  ;;  %v7124_v31 = vld [vmem:[%s12222_s3 + $0xe8] sm:$0xff] }
 0x16d   : > { %8269 = vmatprep.mubr.msk.f32.mxu0 %vm9874_vm5, %v9875_v28  ;;  %8322 = vmatprep.mubr.msk.f32.mxu1 %vm9874_vm5, %v9875_v28 }
 0x16e   : > { %9245 = vmatprep.subr.bf16.mxu0 %v9873_v17  ;;  %9250 = vmatpush3.bf16.msra.mxu1 %v9249_v4  ;;  %v2361_v4 = vld [vmem:[#allocation2 + $0xd] sm:$0xff] }
 0x16f   : > { %8270 = vmatmul.mubr.msk.f32.gmra.mrb[68].mxu0 %vm1492_vm4, %v1922_v34  ;;  %9251 = vmatprep.subr.bf16.mxu1 %v9873_v17  ;;  %v9261_v34 = vpack.c.bf16 %v7124_v31, %v7123_v39  ;;  %v2369_v39 = vld [vmem:[#allocation2 + $0x4d] sm:$0xff] }
 0x170   : > { %8323 = vmatmul.mubr.msk.f32.gmra.mrb[68].mxu1 %vm1492_vm4, %v2142_v23  ;;  %8272 = vmatprep.mubr.msk.f32.mxu0 %vm9874_vm5, %v9875_v28  ;;  %v7125_v23 = vld [vmem:[%s12222_s3 + $0xf0] sm:$0xff] }
 0x171   : > { %8325 = vmatprep.mubr.msk.f32.mxu1 %vm9874_vm5, %v9875_v28  ;;  %9247 = vmatpush3.bf16.msra.mxu0 %v9246_v52  ;;  %v7107_v52 = vld [vmem:[%s12222_s3 + $0xd8] sm:$0xff]  ;;  %v2589_v31 = vld [vmem:[#allocation2 + $0x4e] sm:$0xff] }
 0x172   : > { %9253 = vmatpush3.bf16.msra.mxu1 %v9252_v21  ;;  %9254 = vmatprep.subr.bf16.mxu0 %v9873_v17  ;;  %v7126_v21 = vld [vmem:[%s12222_s3 + $0xf8] sm:$0xff] }
 0x173   : > { %8273 = vmatmul.mubr.msk.f32.gmra.mrb[70].mxu0 %vm1492_vm4, %v1923_v7  ;;  %9260 = vmatprep.subr.bf16.mxu1 %v9873_v17  ;;  %v9258_v7 = vpack.c.bf16 %v7107_v52, %v7106_v6  ;;  %v2591_v6 = vld [vmem:[#allocation2 + $0x5e] sm:$0xff] }
 0x174   : > { %8326 = vmatmul.mubr.msk.f32.gmra.mrb[70].mxu1 %vm1492_vm4, %v2143_v8  ;;  %8275 = vmatprep.mubr.msk.f32.mxu0 %vm9874_vm5, %v9875_v28  ;;  %v2362_v8 = vld [vmem:[#allocation2 + $0x15] sm:$0xff]  ;;  %v2372_v52 = vld [vmem:[#allocation2 + $0x65] sm:$0xff] }
 0x175   : > { %8328 = vmatprep.mubr.msk.f32.mxu1 %vm9874_vm5, %v9875_v28 }
 0x177   : > { %8276 = vmatmul.mubr.msk.f32.gmra.mrb[72].mxu0 %vm1492_vm4, %v10623_v9 }
 0x178   : > { %8329 = vmatmul.mubr.msk.f32.gmra.mrb[72].mxu1 %vm1492_vm4, %v2144_v22  ;;  %8278 = vmatprep.mubr.msk.f32.mxu0 %vm9874_vm5, %v9875_v28  ;;  %v2582_v22 = vld [vmem:[#allocation2 + $0x16] sm:$0xff] }
 0x179   : > { %8331 = vmatprep.mubr.msk.f32.mxu1 %vm9874_vm5, %v9875_v28 }
 0x17b   : > { %8279 = vmatmul.mubr.msk.f32.gmra.mrb[74].mxu0 %vm1492_vm4, %v10632_v37 }
 0x17c   : > { %8332 = vmatmul.mubr.msk.f32.gmra.mrb[74].mxu1 %vm1492_vm4, %v2145_v24  ;;  %8281 = vmatprep.mubr.msk.f32.mxu0 %vm9874_vm5, %v9875_v28  ;;  %v9264_v24 = vpack.c.bf16 %v7126_v21, %v7125_v23  ;;  %v2373_v23 = vld [vmem:[#allocation2 + $0x6d] sm:$0xff] }
 0x17d   : > { %8334 = vmatprep.mubr.msk.f32.mxu1 %vm9874_vm5, %v9875_v28  ;;  %v2593_v21 = vld [vmem:[#allocation2 + $0x6e] sm:$0xff] }
 0x17f   : > { %8282 = vmatmul.mubr.msk.f32.gmra.mrb[76].mxu0 %vm1492_vm4, %v10641_v10 }
 0x180   : > { %8335 = vmatmul.mubr.msk.f32.gmra.mrb[76].mxu1 %vm1492_vm4, %v2146_v11  ;;  %8284 = vmatprep.mubr.msk.f32.mxu0 %vm9874_vm5, %v9875_v28  ;;  %v2363_v11 = vld [vmem:[#allocation2 + $0x1d] sm:$0xff] }
 0x181   : > { %8337 = vmatprep.mubr.msk.f32.mxu1 %vm9874_vm5, %v9875_v28 }
 0x183   : > { %8285 = vmatmul.mubr.msk.f32.gmra.mrb[78].mxu0 %vm1492_vm4, %v10650_v40 }
 0x184   : > { %8338 = vmatmul.mubr.msk.f32.gmra.mrb[78].mxu1 %vm1492_vm4, %v2147_v25  ;;  %8287 = vmatprep.mubr.msk.f32.mxu0 %vm9874_vm5, %v9875_v28  ;;  %v2583_v25 = vld [vmem:[#allocation2 + $0x1e] sm:$0xff] }
 0x185   : > { %8340 = vmatprep.mubr.msk.f32.mxu1 %vm9874_vm5, %v9875_v28 }
 0x187   : > { %8288 = vmatmul.mubr.msk.f32.gmra.mrb[80].mxu0 %vm1492_vm4, %v10659_v55 }
 0x188   : > { %8341 = vmatmul.mubr.msk.f32.gmra.mrb[80].mxu1 %vm1492_vm4, %v2148_v27  ;;  %8290 = vmatprep.mubr.msk.f32.mxu0 %vm9874_vm5, %v9875_v28  ;;  %v2364_v27 = vld [vmem:[#allocation2 + $0x25] sm:$0xff] }
 0x189   : > { %8343 = vmatprep.mubr.msk.f32.mxu1 %vm9874_vm5, %v9875_v28 }
 0x18b   : > { %8291 = vmatmul.mubr.msk.f32.gmra.mrb[82].mxu0 %vm1492_vm4, %v10668_v56 }
 0x18c   : > { %8344 = vmatmul.mubr.msk.f32.gmra.mrb[82].mxu1 %vm1492_vm4, %v2149_v57  ;;  %8293 = vmatprep.mubr.msk.f32.mxu0 %vm9874_vm5, %v9875_v28  ;;  %v2584_v57 = vld [vmem:[#allocation2 + $0x26] sm:$0xff] }
 0x18d   : > { %8346 = vmatprep.mubr.msk.f32.mxu1 %vm9874_vm5, %v9875_v28 }
 0x18f   : > { %8294 = vmatmul.mubr.msk.f32.gmra.mrb[84].mxu0 %vm1492_vm4, %v10677_v13 }
 0x190   : > { %8347 = vmatmul.mubr.msk.f32.gmra.mrb[84].mxu1 %vm1492_vm4, %v2150_v14  ;;  %8296 = vmatprep.mubr.msk.f32.mxu0 %vm9874_vm5, %v9875_v28  ;;  %v2365_v14 = vld [vmem:[#allocation2 + $0x2d] sm:$0xff] }
 0x191   : > { %8349 = vmatprep.mubr.msk.f32.mxu1 %vm9874_vm5, %v9875_v28 }
 0x193   : > { %8297 = vmatmul.mubr.msk.f32.gmra.mrb[86].mxu0 %vm1492_vm4, %v10686_v58 }
 0x194   : > { %8350 = vmatmul.mubr.msk.f32.gmra.mrb[86].mxu1 %vm1492_vm4, %v2151_v29  ;;  %8299 = vmatprep.mubr.msk.f32.mxu0 %vm9874_vm5, %v9875_v28  ;;  %v2585_v29 = vld [vmem:[#allocation2 + $0x2e] sm:$0xff] }
 0x195   : > { %8352 = vmatprep.mubr.msk.f32.mxu1 %vm9874_vm5, %v9875_v28 }
 0x197   : > { %8300 = vmatmul.mubr.msk.f32.gmra.mrb[88].mxu0 %vm1492_vm4, %v10695_v16 }
 0x198   : > { %8353 = vmatmul.mubr.msk.f32.gmra.mrb[88].mxu1 %vm1492_vm4, %v2152_v32  ;;  %8302 = vmatprep.mubr.msk.f32.mxu0 %vm9874_vm5, %v9875_v28  ;;  %v2366_v32 = vld [vmem:[#allocation2 + $0x35] sm:$0xff] }
 0x199   : > { %8355 = vmatprep.mubr.msk.f32.mxu1 %vm9874_vm5, %v9875_v28 }
 0x19b   : > { %8303 = vmatmul.mubr.msk.f32.gmra.mrb[90].mxu0 %vm1492_vm4, %v10704_v33 }
 0x19c   : > { %8356 = vmatmul.mubr.msk.f32.gmra.mrb[90].mxu1 %vm1492_vm4, %v2153_v19  ;;  %8305 = vmatprep.mubr.msk.f32.mxu0 %vm9874_vm5, %v9875_v28  ;;  %v2586_v19 = vld [vmem:[#allocation2 + $0x36] sm:$0xff] }
 0x19d   : > { %8358 = vmatprep.mubr.msk.f32.mxu1 %vm9874_vm5, %v9875_v28 }
 0x19f   : > { %8306 = vmatmul.mubr.msk.f32.gmra.mrb[92].mxu0 %vm1492_vm4, %v10713_v36 }
 0x1a0   : > { %8359 = vmatmul.mubr.msk.f32.gmra.mrb[92].mxu1 %vm1492_vm4, %v2154_v47  ;;  %8308 = vmatprep.mubr.msk.f32.mxu0 %vm9874_vm5, %v9875_v28  ;;  %v2367_v47 = vld [vmem:[#allocation2 + $0x3d] sm:$0xff] }
 0x1a1   : > { %8361 = vmatprep.mubr.msk.f32.mxu1 %vm9874_vm5, %v9875_v28 }
 0x1a3   : > { %8309 = vmatmul.mubr.msk.f32.gmra.mrb[94].mxu0 %vm1492_vm4, %v10728_v2 }
 0x1a4   : > { %8362 = vmatmul.mubr.msk.f32.gmra.mrb[94].mxu1 %vm1492_vm4, %v2155_v3  ;;  %8372 = vmatprep.mubr.msk.f32.mxu0 %vm9874_vm5, %v9875_v28  ;;  %v2588_v3 = vld [vmem:[#allocation2 + $0x46] sm:$0xff] }
 0x1a5   : > { %8425 = vmatprep.mubr.msk.f32.mxu1 %vm9874_vm5, %v9875_v28 }
 0x1a7   : > { %8373 = vmatmul.mubr.msk.f32.vlgmr.msra.gmra.mrb[96].mxu0 %vm1492_vm4, %v2361_v4  ;;  %v2590_v4 = vld [vmem:[#allocation2 + $0x56] sm:$0xff] }
 0x1a8   : > { %8426 = vmatmul.mubr.msk.f32.vlgmr.msra.gmra.mrb[96].mxu1 %vm1492_vm4, %v2581_v5  ;;  %9256 = vmatpush3.bf16.msra.mxu0 %v9255_v20  ;;  %v2370_v20 = vld [vmem:[#allocation2 + $0x55] sm:$0xff]  ;;  %v2371_v5 = vld [vmem:[#allocation2 + $0x5d] sm:$0xff] }
 0x1a9   : > { %8375 = vmatprep.mubr.msk.f32.mxu0 %vm9874_vm5, %v9875_v28  ;;  %8428 = vmatprep.mubr.msk.f32.mxu1 %vm9874_vm5, %v9875_v28 }
 0x1aa   : > { %9257 = vmatprep.subr.bf16.mxu0 %v9873_v17  ;;  %9262 = vmatpush3.bf16.msra.mxu1 %v9261_v34  ;;  %v2592_v34 = vld [vmem:[#allocation2 + $0x66] sm:$0xff] }
 0x1ab   : > { %8376 = vmatmul.mubr.msk.f32.gmra.mrb[98].mxu0 %vm1492_vm4, %v2362_v8  ;;  %9263 = vmatprep.subr.bf16.mxu1 %v9873_v17  ;;  %v2594_v8 = vld [vmem:[#allocation2 + $0x76] sm:$0xff] }
 0x1ac   : > { %8429 = vmatmul.mubr.msk.f32.gmra.mrb[98].mxu1 %vm1492_vm4, %v2582_v22  ;;  %8378 = vmatprep.mubr.msk.f32.mxu0 %vm9874_vm5, %v9875_v28  ;;  %v7142_v22 = vld [vmem:[%s12222_s3 + $0x100] sm:$0xff] }
 0x1ad   : > { %8431 = vmatprep.mubr.msk.f32.mxu1 %vm9874_vm5, %v9875_v28  ;;  %9259 = vmatpush3.bf16.msra.mxu0 %v9258_v7  ;;  %v2374_v7 = vld [vmem:[#allocation2 + $0x75] sm:$0xff] }
 0x1ae   : > { %9265 = vmatpush3.bf16.msra.mxu1 %v9264_v24  ;;  %9266 = vmatprep.subr.bf16.mxu0 %v9873_v17  ;;  %v7143_v24 = vld [vmem:[%s12222_s3 + $0x108] sm:$0xff] }
 0x1af   : > { %8379 = vmatmul.mubr.msk.f32.gmra.mrb[100].mxu0 %vm1492_vm4, %v2363_v11  ;;  %v2375_v11 = vld [vmem:[#allocation2 + $0x7d] sm:$0xff] }
 0x1b0   : > { %8432 = vmatmul.mubr.msk.f32.gmra.mrb[100].mxu1 %vm1492_vm4, %v2583_v25  ;;  %8381 = vmatprep.mubr.msk.f32.mxu0 %vm9874_vm5, %v9875_v28  ;;  %v2595_v25 = vld [vmem:[#allocation2 + $0x7e] sm:$0xff] }
 0x1b1   : > { %8434 = vmatprep.mubr.msk.f32.mxu1 %vm9874_vm5, %v9875_v28 }
 0x1b3   : > { %8382 = vmatmul.mubr.msk.f32.gmra.mrb[102].mxu0 %vm1492_vm4, %v2364_v27  ;;  %v9267_v27 = vpack.c.bf16 %v7143_v24, %v7142_v22 }
 0x1b4   : > { %8435 = vmatmul.mubr.msk.f32.gmra.mrb[102].mxu1 %vm1492_vm4, %v2584_v57  ;;  %8384 = vmatprep.mubr.msk.f32.mxu0 %vm9874_vm5, %v9875_v28  ;;  %v7144_v57 = vld [vmem:[%s12222_s3 + $0x110] sm:$0xff] }
 0x1b5   : > { %8437 = vmatprep.mubr.msk.f32.mxu1 %vm9874_vm5, %v9875_v28 }
 0x1b7   : > { %8385 = vmatmul.mubr.msk.f32.gmra.mrb[104].mxu0 %vm1492_vm4, %v2365_v14  ;;  %v7145_v14 = vld [vmem:[%s12222_s3 + $0x118] sm:$0xff]  ;;  %s9782_s3 = scalar_lea.vmem %s9781_s2, 32 }
 0x1b8   : > { %8438 = vmatmul.mubr.msk.f32.gmra.mrb[104].mxu1 %vm1492_vm4, %v2585_v29  ;;  %8387 = vmatprep.mubr.msk.f32.mxu0 %vm9874_vm5, %v9875_v28  ;;  %v9270_v29 = vpack.c.bf16 %v7145_v14, %v7144_v57  ;;  %p9784_p1 = scmp.lt.s32.totalorder %s9782_s3, %s9776_s0 }
 0x1b9   : > { %8440 = vmatprep.mubr.msk.f32.mxu1 %vm9874_vm5, %v9875_v28 }
 0x1ba   : > { %p9785_p2 = por %p9784_p1, %p9783_p0 }
 0x1bb   : > { %8388 = vmatmul.mubr.msk.f32.gmra.mrb[106].mxu0 %vm1492_vm4, %v2366_v32  ;;  %v2813_v32 = vld [vmem:[#allocation2 + $0x78] sm:$0xff] }
 0x1bc   : > { %8441 = vmatmul.mubr.msk.f32.gmra.mrb[106].mxu1 %vm1492_vm4, %v2586_v19  ;;  %8390 = vmatprep.mubr.msk.f32.mxu0 %vm9874_vm5, %v9875_v28  ;;  %v3033_v19 = vld [vmem:[#allocation2 + $0x79] sm:$0xff]  ;;  %p9786_p3 = pnand %p9785_p2, %p9779_p13 }
 0x1bd   : > { %8443 = vmatprep.mubr.msk.f32.mxu1 %vm9874_vm5, %v9875_v28 }
 0x1bf   : > { %8391 = vmatmul.mubr.msk.f32.gmra.mrb[108].mxu0 %vm1492_vm4, %v2367_v47 }
 0x1c0   : > { %8444 = vmatmul.mubr.msk.f32.gmra.mrb[108].mxu1 %vm1492_vm4, %v2587_v38  ;;  %8393 = vmatprep.mubr.msk.f32.mxu0 %vm9874_vm5, %v9875_v28 }
 0x1c1   : > { %8446 = vmatprep.mubr.msk.f32.mxu1 %vm9874_vm5, %v9875_v28 }
 0x1c3   : > { %8394 = vmatmul.mubr.msk.f32.gmra.mrb[110].mxu0 %vm1492_vm4, %v2368_v1 }
 0x1c4   : > { %8447 = vmatmul.mubr.msk.f32.gmra.mrb[110].mxu1 %vm1492_vm4, %v2588_v3  ;;  %8396 = vmatprep.mubr.msk.f32.mxu0 %vm9874_vm5, %v9875_v28  ;;  %v2814_v3 = vld [vmem:[#allocation2 + $0x80] sm:$0xff] }
 0x1c5   : > { %8449 = vmatprep.mubr.msk.f32.mxu1 %vm9874_vm5, %v9875_v28 }
 0x1c7   : > { %8397 = vmatmul.mubr.msk.f32.gmra.mrb[112].mxu0 %vm1492_vm4, %v2369_v39  ;;  %v3034_v39 = vld [vmem:[#allocation2 + $0x81] sm:$0xff] }
 0x1c8   : > { %8450 = vmatmul.mubr.msk.f32.gmra.mrb[112].mxu1 %vm1492_vm4, %v2589_v31  ;;  %8399 = vmatprep.mubr.msk.f32.mxu0 %vm9874_vm5, %v9875_v28 }
 0x1c9   : > { %8452 = vmatprep.mubr.msk.f32.mxu1 %vm9874_vm5, %v9875_v28 }
 0x1cb   : > { %8400 = vmatmul.mubr.msk.f32.gmra.mrb[114].mxu0 %vm1492_vm4, %v2370_v20 }
 0x1cc   : > { %8453 = vmatmul.mubr.msk.f32.gmra.mrb[114].mxu1 %vm1492_vm4, %v2590_v4  ;;  %8402 = vmatprep.mubr.msk.f32.mxu0 %vm9874_vm5, %v9875_v28 }
 0x1cd   : > { %8455 = vmatprep.mubr.msk.f32.mxu1 %vm9874_vm5, %v9875_v28 }
 0x1cf   : > { %8403 = vmatmul.mubr.msk.f32.gmra.mrb[116].mxu0 %vm1492_vm4, %v2371_v5 }
 0x1d0   : > { %8456 = vmatmul.mubr.msk.f32.gmra.mrb[116].mxu1 %vm1492_vm4, %v2591_v6  ;;  %8405 = vmatprep.mubr.msk.f32.mxu0 %vm9874_vm5, %v9875_v28 }
 0x1d1   : > { %8458 = vmatprep.mubr.msk.f32.mxu1 %vm9874_vm5, %v9875_v28 }
 0x1d3   : > { %8406 = vmatmul.mubr.msk.f32.gmra.mrb[118].mxu0 %vm1492_vm4, %v2372_v52  ;;  %v2815_v52 = vld [vmem:[#allocation2 + $0x88] sm:$0xff] }
 0x1d4   : > { %8459 = vmatmul.mubr.msk.f32.gmra.mrb[118].mxu1 %vm1492_vm4, %v2592_v34  ;;  %8408 = vmatprep.mubr.msk.f32.mxu0 %vm9874_vm5, %v9875_v28  ;;  %v3035_v34 = vld [vmem:[#allocation2 + $0x89] sm:$0xff] }
 0x1d5   : > { %8461 = vmatprep.mubr.msk.f32.mxu1 %vm9874_vm5, %v9875_v28 }
 0x1d7   : > { %8409 = vmatmul.mubr.msk.f32.gmra.mrb[120].mxu0 %vm1492_vm4, %v2373_v23 }
 0x1d8   : > { %8462 = vmatmul.mubr.msk.f32.gmra.mrb[120].mxu1 %vm1492_vm4, %v2593_v21  ;;  %8411 = vmatprep.mubr.msk.f32.mxu0 %vm9874_vm5, %v9875_v28 }
 0x1d9   : > { %8464 = vmatprep.mubr.msk.f32.mxu1 %vm9874_vm5, %v9875_v28 }
 0x1db   : > { %8412 = vmatmul.mubr.msk.f32.gmra.mrb[122].mxu0 %vm1492_vm4, %v2374_v7 }
 0x1dc   : > { %8465 = vmatmul.mubr.msk.f32.gmra.mrb[122].mxu1 %vm1492_vm4, %v2594_v8  ;;  %8414 = vmatprep.mubr.msk.f32.mxu0 %vm9874_vm5, %v9875_v28 }
 0x1dd   : > { %8467 = vmatprep.mubr.msk.f32.mxu1 %vm9874_vm5, %v9875_v28 }
 0x1df   : > { %8415 = vmatmul.mubr.msk.f32.gmra.mrb[124].mxu0 %vm1492_vm4, %v2375_v11 }
 0x1e0   : > { %8468 = vmatmul.mubr.msk.f32.gmra.mrb[124].mxu1 %vm1492_vm4, %v2595_v25  ;;  %8478 = vmatprep.mubr.msk.f32.mxu0 %vm9874_vm5, %v9875_v28 }
 0x1e1   : > { %8531 = vmatprep.mubr.msk.f32.mxu1 %vm9874_vm5, %v9875_v28 }
 0x1e3   : > { %8479 = vmatmul.mubr.msk.f32.vlgmr.msra.gmra.mrb[126].mxu0 %vm1492_vm4, %v10414_v51 }
 0x1e4   : > { %8532 = vmatmul.mubr.msk.f32.vlgmr.msra.gmra.mrb[126].mxu1 %vm1492_vm4, %v10412_v50  ;;  %9268 = vmatpush3.bf16.msra.mxu0 %v9267_v27 }
 0x1e5   : > { %8481 = vmatprep.mubr.msk.f32.mxu0 %vm9874_vm5, %v9875_v28  ;;  %8534 = vmatprep.mubr.msk.f32.mxu1 %vm9874_vm5, %v9875_v28 }
 0x1e6   : > { %9269 = vmatprep.subr.bf16.mxu0 %v9873_v17 }
 0x1e7   : > { %8482 = vmatmul.mubr.msk.f32.gmra.mrb[128].mxu0 %vm1492_vm4, %v10436_v54 }
 0x1e8   : > { %8535 = vmatmul.mubr.msk.f32.gmra.mrb[128].mxu1 %vm1492_vm4, %v10434_v53  ;;  %8484 = vmatprep.mubr.msk.f32.mxu0 %vm9874_vm5, %v9875_v28 }
 0x1e9   : > { %8537 = vmatprep.mubr.msk.f32.mxu1 %vm9874_vm5, %v9875_v28  ;;  %9271 = vmatpush3.bf16.msra.mxu0 %v9270_v29 }
 0x1eb   : > { %8485 = vmatmul.mubr.msk.f32.gmra.mrb[130].mxu0 %vm1492_vm4, %v10455_v30 }
 0x1ec   : > { %8538 = vmatmul.mubr.msk.f32.gmra.mrb[130].mxu1 %vm1492_vm4, %v10453_v18  ;;  %8487 = vmatprep.mubr.msk.f32.mxu0 %vm9874_vm5, %v9875_v28 }
 0x1ed   : > { %8540 = vmatprep.mubr.msk.f32.mxu1 %vm9874_vm5, %v9875_v28 }
 0x1ef   : > { %8488 = vmatmul.mubr.msk.f32.gmra.mrb[132].mxu0 %vm1492_vm4, %v10470_v42 }
 0x1f0   : > { %8541 = vmatmul.mubr.msk.f32.gmra.mrb[132].mxu1 %vm1492_vm4, %v10468_v41  ;;  %8490 = vmatprep.mubr.msk.f32.mxu0 %vm9874_vm5, %v9875_v28 }
 0x1f1   : > { %8543 = vmatprep.mubr.msk.f32.mxu1 %vm9874_vm5, %v9875_v28 }
 0x1f3   : > { %8491 = vmatmul.mubr.msk.f32.gmra.mrb[134].mxu0 %vm1492_vm4, %v10483_v43 }
 0x1f4   : > { %8544 = vmatmul.mubr.msk.f32.gmra.mrb[134].mxu1 %vm1492_vm4, %v10481_v26  ;;  %8493 = vmatprep.mubr.msk.f32.mxu0 %vm9874_vm5, %v9875_v28 }
 0x1f5   : > { %8546 = vmatprep.mubr.msk.f32.mxu1 %vm9874_vm5, %v9875_v28 }
 0x1f7   : > { %8494 = vmatmul.mubr.msk.f32.gmra.mrb[136].mxu0 %vm1492_vm4, %v10495_v45 }
 0x1f8   : > { %8547 = vmatmul.mubr.msk.f32.gmra.mrb[136].mxu1 %vm1492_vm4, %v10493_v44  ;;  %8496 = vmatprep.mubr.msk.f32.mxu0 %vm9874_vm5, %v9875_v28 }
 0x1f9   : > { %8549 = vmatprep.mubr.msk.f32.mxu1 %vm9874_vm5, %v9875_v28 }
 0x1fb   : > { %8497 = vmatmul.mubr.msk.f32.gmra.mrb[138].mxu0 %vm1492_vm4, %v10507_v59 }
 0x1fc   : > { %8550 = vmatmul.mubr.msk.f32.gmra.mrb[138].mxu1 %vm1492_vm4, %v10505_v46  ;;  %8499 = vmatprep.mubr.msk.f32.mxu0 %vm9874_vm5, %v9875_v28 }
 0x1fd   : > { %8552 = vmatprep.mubr.msk.f32.mxu1 %vm9874_vm5, %v9875_v28 }
 0x1ff   : > { %8500 = vmatmul.mubr.msk.f32.gmra.mrb[140].mxu0 %vm1492_vm4, %v10519_v61 }
 0x200   : > { %8553 = vmatmul.mubr.msk.f32.gmra.mrb[140].mxu1 %vm1492_vm4, %v10517_v60  ;;  %8502 = vmatprep.mubr.msk.f32.mxu0 %vm9874_vm5, %v9875_v28 }
 0x201   : > { %8555 = vmatprep.mubr.msk.f32.mxu1 %vm9874_vm5, %v9875_v28 }
 0x202   : > { %v1662_v50 = vpop.f32.mrb[36].mxu0 }
 0x203   : > { %v1847_v51 = vpop.f32.mrb[36].mxu1  ;;  %v8162_v54 = vpop.f32.mrb[37].mxu0  ;;  %8503 = vmatmul.mubr.msk.f32.gmra.mrb[142].mxu0 %vm1492_vm4, %v10531_v15 }
 0x204   : > { %v10925_v53 = vadd.f32 %v1847_v51, %v1662_v50  ;;  %v8215_v18 = vpop.f32.mrb[37].mxu1  ;;  %8556 = vmatmul.mubr.msk.f32.gmra.mrb[142].mxu1 %vm1492_vm4, %v10529_v12  ;;  %8505 = vmatprep.mubr.msk.f32.mxu0 %vm9874_vm5, %v9875_v28 }
 0x205   : > { %8558 = vmatprep.mubr.msk.f32.mxu1 %vm9874_vm5, %v9875_v28 }
 0x206   : > { %v1667_v30 = vpop.f32.mrb[38].mxu0 }
 0x207   : > { %v1852_v41 = vpop.f32.mrb[38].mxu1  ;;  %v8165_v26 = vpop.f32.mrb[39].mxu0  ;;  %8506 = vmatmul.mubr.msk.f32.gmra.mrb[144].mxu0 %vm1492_vm4, %v10543_v62 }
 0x208   : > { %v10935_v42 = vadd.f32 %v1852_v41, %v1667_v30  ;;  %v8218_v43 = vpop.f32.mrb[39].mxu1  ;;  %8559 = vmatmul.mubr.msk.f32.gmra.mrb[144].mxu1 %vm1492_vm4, %v10541_v35  ;;  %8508 = vmatprep.mubr.msk.f32.mxu0 %vm9874_vm5, %v9875_v28 }
 0x209   : > { %8561 = vmatprep.mubr.msk.f32.mxu1 %vm9874_vm5, %v9875_v28 }
 0x20a   : > { %v1672_v44 = vpop.f32.mrb[40].mxu0 }
 0x20b   : > { %v1857_v45 = vpop.f32.mrb[40].mxu1  ;;  %v8168_v59 = vpop.f32.mrb[41].mxu0  ;;  %8509 = vmatmul.mubr.msk.f32.gmra.mrb[146].mxu0 %vm1492_vm4, %v10555_v0 }
 0x20c   : > { %v10945_v46 = vadd.f32 %v1857_v45, %v1672_v44  ;;  %v8221_v60 = vpop.f32.mrb[41].mxu1  ;;  %8562 = vmatmul.mubr.msk.f32.gmra.mrb[146].mxu1 %vm1492_vm4, %v10553_v63  ;;  %8511 = vmatprep.mubr.msk.f32.mxu0 %vm9874_vm5, %v9875_v28 }
 0x20d   : > { %8564 = vmatprep.mubr.msk.f32.mxu1 %vm9874_vm5, %v9875_v28 }
 0x20e   : > { %v1677_v61 = vpop.f32.mrb[42].mxu0 }
 0x20f   : > { %v1862_v12 = vpop.f32.mrb[42].mxu1  ;;  %v8171_v35 = vpop.f32.mrb[43].mxu0  ;;  %8512 = vmatmul.mubr.msk.f32.gmra.mrb[148].mxu0 %vm1492_vm4, %v10573_v49 }
 0x210   : > { %v10955_v15 = vadd.f32 %v1862_v12, %v1677_v61  ;;  %v8224_v62 = vpop.f32.mrb[43].mxu1  ;;  %8565 = vmatmul.mubr.msk.f32.gmra.mrb[148].mxu1 %vm1492_vm4, %v10571_v48  ;;  %8514 = vmatprep.mubr.msk.f32.mxu0 %vm9874_vm5, %v9875_v28 }
 0x211   : > { %8567 = vmatprep.mubr.msk.f32.mxu1 %vm9874_vm5, %v9875_v28 }
 0x212   : > { %v1682_v63 = vpop.f32.mrb[44].mxu0 }
 0x213   : > { %v1867_v0 = vpop.f32.mrb[44].mxu1  ;;  %v8174_v38 = vpop.f32.mrb[45].mxu0  ;;  %8515 = vmatmul.mubr.msk.f32.gmra.mrb[150].mxu0 %vm1492_vm4, %v2813_v32 }
 0x214   : > { %v10965_v47 = vadd.f32 %v1867_v0, %v1682_v63  ;;  %v8227_v1 = vpop.f32.mrb[45].mxu1  ;;  %8568 = vmatmul.mubr.msk.f32.gmra.mrb[150].mxu1 %vm1492_vm4, %v3033_v19  ;;  %8517 = vmatprep.mubr.msk.f32.mxu0 %vm9874_vm5, %v9875_v28 }
 0x215   : > { %8570 = vmatprep.mubr.msk.f32.mxu1 %vm9874_vm5, %v9875_v28 }
 0x216   : > { %v1687_v48 = vpop.f32.mrb[46].mxu0 }
 0x217   : > { %v1872_v49 = vpop.f32.mrb[46].mxu1  ;;  %v8177_v20 = vpop.f32.mrb[47].mxu0  ;;  %8518 = vmatmul.mubr.msk.f32.gmra.mrb[152].mxu0 %vm1492_vm4, %v2814_v3 }
 0x218   : > { %v10973_v31 = vadd.f32 %v1872_v49, %v1687_v48  ;;  %v8230_v4 = vpop.f32.mrb[47].mxu1  ;;  %8571 = vmatmul.mubr.msk.f32.gmra.mrb[152].mxu1 %vm1492_vm4, %v3034_v39  ;;  %8520 = vmatprep.mubr.msk.f32.mxu0 %vm9874_vm5, %v9875_v28 }
 0x219   : > { %8573 = vmatprep.mubr.msk.f32.mxu1 %vm9874_vm5, %v9875_v28 }
 0x21a   : > { %v1692_v5 = vpop.f32.mrb[48].mxu0 }
 0x21b   : > { %v1877_v6 = vpop.f32.mrb[48].mxu1  ;;  %v8180_v21 = vpop.f32.mrb[49].mxu0  ;;  %8521 = vmatmul.mubr.msk.f32.gmra.mrb[154].mxu0 %vm1492_vm4, %v2815_v52 }
 0x21c   : > { %v10981_v23 = vadd.f32 %v1877_v6, %v1692_v5  ;;  %v8233_v7 = vpop.f32.mrb[49].mxu1  ;;  %8574 = vmatmul.mubr.msk.f32.gmra.mrb[154].mxu1 %vm1492_vm4, %v3035_v34  ;;  %8584 = vmatprep.mubr.msk.f32.mxu0 %vm9874_vm5, %v9875_v28 }
 0x21e   : > { %v1697_v8 = vpop.f32.mrb[50].mxu0 }
 0x21f   : > { %v1882_v22 = vpop.f32.mrb[50].mxu1  ;;  %v8183_v11 = vpop.f32.mrb[51].mxu0  ;;  %8585 = vmatmul.mubr.msk.f32.vlgmr.msra.gmra.mrb[156].mxu0 %vm1492_vm4, %v10623_v9 }
 0x220   : > { %v10987_v24 = vadd.f32 %v1882_v22, %v1697_v8  ;;  %v8236_v25 = vpop.f32.mrb[51].mxu1  ;;  %8587 = vmatprep.mubr.msk.f32.mxu0 %vm9874_vm5, %v9875_v28 }
 0x222   : > { %v1702_v27 = vpop.f32.mrb[52].mxu0 }
 0x223   : > { %v1887_v57 = vpop.f32.mrb[52].mxu1  ;;  %v8186_v29 = vpop.f32.mrb[53].mxu0  ;;  %8588 = vmatmul.mubr.msk.f32.gmra.mrb[158].mxu0 %vm1492_vm4, %v10632_v37 }
 0x224   : > { %v10993_v14 = vadd.f32 %v1887_v57, %v1702_v27  ;;  %v8239_v50 = vpop.f32.mrb[53].mxu1  ;;  %8590 = vmatprep.mubr.msk.f32.mxu0 %vm9874_vm5, %v9875_v28 }
 0x226   : > { %v1707_v51 = vpop.f32.mrb[54].mxu0 }
 0x227   : > { %v1892_v54 = vpop.f32.mrb[54].mxu1  ;;  %v8189_v9 = vpop.f32.mrb[55].mxu0  ;;  %8591 = vmatmul.mubr.msk.f32.gmra.mrb[160].mxu0 %vm1492_vm4, %v10641_v10 }
 0x228   : > { %v10999_v18 = vadd.f32 %v1892_v54, %v1707_v51  ;;  %v8242_v30 = vpop.f32.mrb[55].mxu1  ;;  %8593 = vmatprep.mubr.msk.f32.mxu0 %vm9874_vm5, %v9875_v28  ;;  %v3253_v54 = vld [vmem:[#allocation2 + $0x7a] sm:$0xff] }
 0x22a   : > { %v1712_v41 = vpop.f32.mrb[56].mxu0 }
 0x22b   : > { %v1897_v26 = vpop.f32.mrb[56].mxu1  ;;  %v8192_v37 = vpop.f32.mrb[57].mxu0  ;;  %8594 = vmatmul.mubr.msk.f32.gmra.mrb[162].mxu0 %vm1492_vm4, %v10650_v40 }
 0x22c   : > { %v11005_v43 = vadd.f32 %v1897_v26, %v1712_v41  ;;  %v8245_v44 = vpop.f32.mrb[57].mxu1  ;;  %8596 = vmatprep.mubr.msk.f32.mxu0 %vm9874_vm5, %v9875_v28  ;;  %v3254_v37 = vld [vmem:[#allocation2 + $0x82] sm:$0xff] }
 0x22e   : > { %v1717_v45 = vpop.f32.mrb[58].mxu0 }
 0x22f   : > { %v1902_v59 = vpop.f32.mrb[58].mxu1  ;;  %v8195_v10 = vpop.f32.mrb[59].mxu0  ;;  %8597 = vmatmul.mubr.msk.f32.gmra.mrb[164].mxu0 %vm1492_vm4, %v10659_v55 }
 0x230   : > { %v11011_v60 = vadd.f32 %v1902_v59, %v1717_v45  ;;  %v8248_v61 = vpop.f32.mrb[59].mxu1  ;;  %8599 = vmatprep.mubr.msk.f32.mxu0 %vm9874_vm5, %v9875_v28 }
 0x232   : > { %v1722_v12 = vpop.f32.mrb[60].mxu0 }
 0x233   : > { %v1907_v35 = vpop.f32.mrb[60].mxu1  ;;  %v8198_v40 = vpop.f32.mrb[61].mxu0  ;;  %8600 = vmatmul.mubr.msk.f32.gmra.mrb[166].mxu0 %vm1492_vm4, %v10668_v56 }
 0x234   : > { %v11017_v62 = vadd.f32 %v1907_v35, %v1722_v12  ;;  %v8251_v63 = vpop.f32.mrb[61].mxu1  ;;  %8602 = vmatprep.mubr.msk.f32.mxu0 %vm9874_vm5, %v9875_v28  ;;  %v3255_v12 = vld [vmem:[#allocation2 + $0x8a] sm:$0xff] }
 0x236   : > { %v1727_v0 = vpop.f32.mrb[62].mxu0 }
 0x237   : > { %v1912_v32 = vpop.f32.mrb[62].mxu1  ;;  %v8201_v55 = vpop.f32.mrb[63].mxu0  ;;  %8603 = vmatmul.mubr.msk.f32.gmra.mrb[168].mxu0 %vm1492_vm4, %v10677_v13 }
 0x238   : > { %v11023_v19 = vadd.f32 %v1912_v32, %v1727_v0  ;;  %v8254_v38 = vpop.f32.mrb[63].mxu1  ;;  %8605 = vmatprep.mubr.msk.f32.mxu0 %vm9874_vm5, %v9875_v28 }
 0x23a   : > { %v1732_v1 = vpop.f32.mrb[64].mxu0 }
 0x23b   : > { %v1917_v48 = vpop.f32.mrb[64].mxu1  ;;  %v8204_v56 = vpop.f32.mrb[65].mxu0  ;;  %8606 = vmatmul.mubr.msk.f32.gmra.mrb[170].mxu0 %vm1492_vm4, %v10686_v58 }
 0x23c   : > { %v11029_v49 = vadd.f32 %v1917_v48, %v1732_v1  ;;  %v8257_v3 = vpop.f32.mrb[65].mxu1  ;;  %8608 = vmatprep.mubr.msk.f32.mxu0 %vm9874_vm5, %v9875_v28 }
 0x23e   : > { %v2052_v39 = vpop.f32.mrb[66].mxu0 }
 0x23f   : > { %v2272_v20 = vpop.f32.mrb[66].mxu1  ;;  %v2126_v4 = vadd.f32 %v2052_v39, %v10925_v53  ;;  %v8268_v13 = vpop.f32.mrb[67].mxu0  ;;  %8609 = vmatmul.mubr.msk.f32.gmra.mrb[172].mxu0 %vm1492_vm4, %v10695_v16 }
 0x240   : > { %v8321_v5 = vpop.f32.mrb[67].mxu1  ;;  %8611 = vmatprep.mubr.msk.f32.mxu0 %vm9874_vm5, %v9875_v28  ;;  %v7162_v13 = vld [vmem:[%s12200_s5 + $0x40] sm:$0xff] }
 0x241   : > { %v11040_v6 = vadd.f32 %v2272_v20, %v2126_v4 }
 0x242   : > { %v2057_v52 = vpop.f32.mrb[68].mxu0 }
 0x243   : > { %v2277_v34 = vpop.f32.mrb[68].mxu1  ;;  %v2127_v58 = vadd.f32 %v2057_v52, %v10935_v42  ;;  %v8271_v21 = vpop.f32.mrb[69].mxu0  ;;  %8612 = vmatmul.mubr.msk.f32.gmra.mrb[174].mxu0 %vm1492_vm4, %v10704_v33 }
 0x244   : > { %v8324_v7 = vpop.f32.mrb[69].mxu1  ;;  %8614 = vmatprep.mubr.msk.f32.mxu0 %vm9874_vm5, %v9875_v28 }
 0x245   : > { %v11047_v53 = vadd.f32 %v2277_v34, %v2127_v58 }
 0x246   : > { %v2062_v16 = vpop.f32.mrb[70].mxu0 }
 0x247   : > { %v2282_v8 = vpop.f32.mrb[70].mxu1  ;;  %v2128_v22 = vadd.f32 %v2062_v16, %v10945_v46  ;;  %v8274_v11 = vpop.f32.mrb[71].mxu0  ;;  %8615 = vmatmul.mubr.msk.f32.gmra.mrb[176].mxu0 %vm1492_vm4, %v10713_v36 }
 0x248   : > { %v8327_v25 = vpop.f32.mrb[71].mxu1  ;;  %8617 = vmatprep.mubr.msk.f32.mxu0 %vm9874_vm5, %v9875_v28 }
 0x249   : > { %v11054_v42 = vadd.f32 %v2282_v8, %v2128_v22 }
 0x24a   : > { %v2067_v33 = vpop.f32.mrb[72].mxu0 }
 0x24b   : > { %v2287_v27 = vpop.f32.mrb[72].mxu1  ;;  %v2129_v57 = vadd.f32 %v2067_v33, %v10955_v15  ;;  %v8277_v29 = vpop.f32.mrb[73].mxu0  ;;  %8618 = vmatmul.mubr.msk.f32.gmra.mrb[178].mxu0 %vm1492_vm4, %v10728_v2 }
 0x24c   : > { %v8330_v50 = vpop.f32.mrb[73].mxu1  ;;  %8620 = vmatprep.mubr.msk.f32.mxu0 %vm9874_vm5, %v9875_v28 }
 0x24d   : > { %v11061_v46 = vadd.f32 %v2287_v27, %v2129_v57 }
 0x24e   : > { %v2072_v36 = vpop.f32.mrb[74].mxu0 }
 0x24f   : > { %v2292_v51 = vpop.f32.mrb[74].mxu1  ;;  %v2130_v9 = vadd.f32 %v2072_v36, %v10965_v47  ;;  %v8280_v30 = vpop.f32.mrb[75].mxu0  ;;  %8621 = vmatmul.mubr.msk.f32.gmra.mrb[180].mxu0 %vm1492_vm4, %v3253_v54 }
 0x250   : > { %v8333_v41 = vpop.f32.mrb[75].mxu1  ;;  %8623 = vmatprep.mubr.msk.f32.mxu0 %vm9874_vm5, %v9875_v28 }
 0x251   : > { %v11067_v15 = vadd.f32 %v2292_v51, %v2130_v9 }
 0x252   : > { %v2077_v2 = vpop.f32.mrb[76].mxu0 }
 0x253   : > { %v2297_v26 = vpop.f32.mrb[76].mxu1  ;;  %v2131_v44 = vadd.f32 %v2077_v2, %v10973_v31  ;;  %v8283_v45 = vpop.f32.mrb[77].mxu0  ;;  %8624 = vmatmul.mubr.msk.f32.gmra.mrb[182].mxu0 %vm1492_vm4, %v3254_v37 }
 0x254   : > { %v8336_v59 = vpop.f32.mrb[77].mxu1  ;;  %8626 = vmatprep.mubr.msk.f32.mxu0 %vm9874_vm5, %v9875_v28 }
 0x255   : > { %v11073_v47 = vadd.f32 %v2297_v26, %v2131_v44 }
 0x256   : > { %v2082_v10 = vpop.f32.mrb[78].mxu0 }
 0x257   : > { %v2302_v61 = vpop.f32.mrb[78].mxu1  ;;  %v2132_v35 = vadd.f32 %v2082_v10, %v10981_v23  ;;  %v8286_v40 = vpop.f32.mrb[79].mxu0  ;;  %8627 = vmatmul.mubr.msk.f32.gmra.mrb[184].mxu0 %vm1492_vm4, %v3255_v12 }
 0x258   : > { %v8339_v63 = vpop.f32.mrb[79].mxu1 }
 0x259   : > { %v11077_v0 = vadd.f32 %v2302_v61, %v2132_v35 }
 0x25a   : > { %v2087_v31 = vpop.f32.mrb[80].mxu0 }
 0x25b   : > { %v2307_v32 = vpop.f32.mrb[80].mxu1  ;;  %v2133_v55 = vadd.f32 %v2087_v31, %v10987_v24  ;;  %v8289_v38 = vpop.f32.mrb[81].mxu0  ;;  %v7163_v24 = vld [vmem:[%s12200_s5 + $0x48] sm:$0xff] }
 0x25c   : > { %v8342_v1 = vpop.f32.mrb[81].mxu1  ;;  %v9272_v34 = vpack.c.bf16 %v7163_v24, %v7162_v13 }
 0x25d   : > { %v11080_v48 = vadd.f32 %v2307_v32, %v2133_v55 }
 0x25e   : > { %v2092_v56 = vpop.f32.mrb[82].mxu0  ;;  %9273 = vmatprep.subr.bf16.mxu1 %v9272_v34 }
 0x25f   : > { %v2312_v3 = vpop.f32.mrb[82].mxu1  ;;  %v2134_v39 = vadd.f32 %v2092_v56, %v10993_v14  ;;  %v8292_v20 = vpop.f32.mrb[83].mxu0  ;;  %9275 = vmatpush3.bf16.msra.mxu1 %v9272_v34 }
 0x260   : > { %v8345_v23 = vpop.f32.mrb[83].mxu1 }
 0x261   : > { %v11083_v4 = vadd.f32 %v2312_v3, %v2134_v39 }
 0x262   : > { %v2097_v5 = vpop.f32.mrb[84].mxu0 }
 0x263   : > { %v2317_v52 = vpop.f32.mrb[84].mxu1  ;;  %v2135_v58 = vadd.f32 %v2097_v5, %v10999_v18  ;;  %v8295_v21 = vpop.f32.mrb[85].mxu0 }
 0x264   : > { %v8348_v7 = vpop.f32.mrb[85].mxu1  ;;  %v7167_v21 = vld [vmem:[%s12200_s5 + $0x68] sm:$0xff] }
 0x265   : > { %v11092_v14 = vadd.f32 %v2317_v52, %v2135_v58 }
 0x266   : > { %v2102_v16 = vpop.f32.mrb[86].mxu0 }
 0x267   : > { %v2322_v8 = vpop.f32.mrb[86].mxu1  ;;  %v2136_v22 = vadd.f32 %v2102_v16, %v11005_v43  ;;  %v8298_v11 = vpop.f32.mrb[87].mxu0  ;;  %v7164_v43 = vld [vmem:[%s12200_s5 + $0x50] sm:$0xff] }
 0x268   : > { %v8351_v25 = vpop.f32.mrb[87].mxu1 }
 0x269   : > { %v11095_v33 = vadd.f32 %v2322_v8, %v2136_v22 }
 0x26a   : > { %v2107_v27 = vpop.f32.mrb[88].mxu0 }
 0x26b   : > { %v2327_v57 = vpop.f32.mrb[88].mxu1  ;;  %v2137_v29 = vadd.f32 %v2107_v27, %v11011_v60  ;;  %v8301_v50 = vpop.f32.mrb[89].mxu0  ;;  %v7165_v60 = vld [vmem:[%s12200_s5 + $0x58] sm:$0xff] }
 0x26c   : > { %v8354_v18 = vpop.f32.mrb[89].mxu1  ;;  %v9276_v44 = vpack.c.bf16 %v7165_v60, %v7164_v43  ;;  %v7169_v27 = vld [vmem:[%s12200_s5 + $0x78] sm:$0xff] }
 0x26d   : > { %v11098_v36 = vadd.f32 %v2327_v57, %v2137_v29 }
 0x26e   : > { %v2112_v51 = vpop.f32.mrb[90].mxu0  ;;  %9277 = vmatprep.subr.bf16.mxu1 %v9276_v44 }
 0x26f   : > { %v2332_v54 = vpop.f32.mrb[90].mxu1  ;;  %v2138_v9 = vadd.f32 %v2112_v51, %v11017_v62  ;;  %v8304_v30 = vpop.f32.mrb[91].mxu0  ;;  %9279 = vmatpush3.bf16.msra.mxu1 %v9276_v44 }
 0x270   : > { %v8357_v41 = vpop.f32.mrb[91].mxu1 }
 0x271   : > { %v11101_v2 = vadd.f32 %v2332_v54, %v2138_v9 }
 0x272   : > { %v2117_v26 = vpop.f32.mrb[92].mxu0 }
 0x273   : > { %v2337_v37 = vpop.f32.mrb[92].mxu1  ;;  %v2139_v45 = vadd.f32 %v2117_v26, %v11023_v19  ;;  %v8307_v59 = vpop.f32.mrb[93].mxu0 }
 0x274   : > { %v8360_v10 = vpop.f32.mrb[93].mxu1 }
 0x275   : > { %v11110_v62 = vadd.f32 %v2337_v37, %v2139_v45 }
 0x276   : > { %v2122_v61 = vpop.f32.mrb[94].mxu0 }
 0x277   : > { %v2342_v12 = vpop.f32.mrb[94].mxu1  ;;  %v2140_v35 = vadd.f32 %v2122_v61, %v11029_v49  ;;  %v8310_v40 = vpop.f32.mrb[95].mxu0 }
 0x278   : > { %v8363_v63 = vpop.f32.mrb[95].mxu1 }
 0x279   : > { %v11115_v31 = vadd.f32 %v2342_v12, %v2140_v35 }
 0x27a   : > { %v2492_v32 = vpop.f32.mrb[96].mxu0 }
 0x27b   : > { %v2712_v19 = vpop.f32.mrb[96].mxu1  ;;  %v2566_v55 = vadd.f32 %v2492_v32, %v11040_v6  ;;  %v8374_v38 = vpop.f32.mrb[97].mxu0  ;;  %v7166_v6 = vld [vmem:[%s12200_s5 + $0x60] sm:$0xff] }
 0x27c   : > { %v8427_v1 = vpop.f32.mrb[97].mxu1 }
 0x27d   : > { %v11118_v56 = vadd.f32 %v2712_v19, %v2566_v55 }
 0x27e   : > { %v2497_v3 = vpop.f32.mrb[98].mxu0 }
 0x27f   : > { %v2717_v39 = vpop.f32.mrb[98].mxu1  ;;  %v2567_v49 = vadd.f32 %v2497_v3, %v11047_v53  ;;  %v8377_v20 = vpop.f32.mrb[99].mxu0  ;;  %v9280_v53 = vpack.c.bf16 %v7167_v21, %v7166_v6 }
 0x280   : > { %v8430_v23 = vpop.f32.mrb[99].mxu1 }
 0x281   : > { %v11121_v13 = vadd.f32 %v2717_v39, %v2567_v49  ;;  %9281 = vmatprep.subr.bf16.mxu1 %v9280_v53 }
 0x282   : > { %v2502_v24 = vpop.f32.mrb[100].mxu0  ;;  %9283 = vmatpush3.bf16.msra.mxu1 %v9280_v53 }
 0x283   : > { %v2722_v5 = vpop.f32.mrb[100].mxu1  ;;  %v2568_v52 = vadd.f32 %v2502_v24, %v11054_v42  ;;  %v8380_v34 = vpop.f32.mrb[101].mxu0  ;;  %v7168_v42 = vld [vmem:[%s12200_s5 + $0x70] sm:$0xff] }
 0x284   : > { %v8433_v58 = vpop.f32.mrb[101].mxu1  ;;  %v9284_v29 = vpack.c.bf16 %v7169_v27, %v7168_v42 }
 0x285   : > { %v11130_v7 = vadd.f32 %v2722_v5, %v2568_v52 }
 0x286   : > { %v2507_v16 = vpop.f32.mrb[102].mxu0  ;;  %9285 = vmatprep.subr.bf16.mxu1 %v9284_v29 }
 0x287   : > { %v2727_v8 = vpop.f32.mrb[102].mxu1  ;;  %v2569_v22 = vadd.f32 %v2507_v16, %v11061_v46  ;;  %v8383_v11 = vpop.f32.mrb[103].mxu0  ;;  %9287 = vmatpush3.bf16.msra.mxu1 %v9284_v29 }
 0x288   : > { %v8436_v25 = vpop.f32.mrb[103].mxu1 }
 0x289   : > { %v11139_v57 = vadd.f32 %v2727_v8, %v2569_v22 }
 0x28a   : > { %v2512_v50 = vpop.f32.mrb[104].mxu0 }
 0x28b   : > { %v2732_v18 = vpop.f32.mrb[104].mxu1  ;;  %v2570_v51 = vadd.f32 %v2512_v50, %v11067_v15  ;;  %v8386_v46 = vpop.f32.mrb[105].mxu0 }
 0x28c   : > { %v8439_v54 = vpop.f32.mrb[105].mxu1 }
 0x28d   : > { %v11142_v9 = vadd.f32 %v2732_v18, %v2570_v51 }
 0x28e   : > { %v2517_v30 = vpop.f32.mrb[106].mxu0 }
 0x28f   : > { %v2737_v41 = vpop.f32.mrb[106].mxu1  ;;  %v2571_v43 = vadd.f32 %v2517_v30, %v11073_v47  ;;  %v8389_v60 = vpop.f32.mrb[107].mxu0 }
 0x290   : > { %v8442_v26 = vpop.f32.mrb[107].mxu1 }
 0x291   : > { %v11145_v37 = vadd.f32 %v2737_v41, %v2571_v43 }
 0x292   : > { %v2522_v44 = vpop.f32.mrb[108].mxu0 }
 0x293   : > { %v2742_v45 = vpop.f32.mrb[108].mxu1  ;;  %v2572_v59 = vadd.f32 %v2522_v44, %v11077_v0  ;;  %v8392_v10 = vpop.f32.mrb[109].mxu0 }
 0x294   : > { %v8445_v15 = vpop.f32.mrb[109].mxu1 }
 0x295   : > { %v11148_v61 = vadd.f32 %v2742_v45, %v2572_v59 }
 0x296   : > { %v2527_v12 = vpop.f32.mrb[110].mxu0 }
 0x297   : > { %v2747_v35 = vpop.f32.mrb[110].mxu1  ;;  %v2573_v40 = vadd.f32 %v2527_v12, %v11080_v48  ;;  %v8395_v63 = vpop.f32.mrb[111].mxu0  ;;  %v3527_v48 = vld [vmem:[%s12200_s5] sm:$0xff] }
 0x298   : > { %v8448_v32 = vpop.f32.mrb[111].mxu1 }
 0x299   : > { %v11151_v19 = vadd.f32 %v2747_v35, %v2573_v40 }
 0x29a   : > { %v2532_v47 = vpop.f32.mrb[112].mxu0 }
 0x29b   : > { %v2752_v55 = vpop.f32.mrb[112].mxu1  ;;  %v2574_v38 = vadd.f32 %v2532_v47, %v11083_v4  ;;  %v8398_v1 = vpop.f32.mrb[113].mxu0  ;;  %v3528_v4 = vld [vmem:[%s12200_s5 + $0x8] sm:$0xff] }
 0x29c   : > { %v8451_v3 = vpop.f32.mrb[113].mxu1  ;;  %v11165_v58 = vpack.c.bf16 %v3528_v4, %v3527_v48 }
 0x29d   : > { %v11154_v39 = vadd.f32 %v2752_v55, %v2574_v38 }
 0x29e   : > { %v2537_v0 = vpop.f32.mrb[114].mxu0  ;;  %9289 = vmatprep.subr.bf16.mxu1 %v11165_v58 }
 0x29f   : > { %v2757_v49 = vpop.f32.mrb[114].mxu1  ;;  %v2575_v20 = vadd.f32 %v2537_v0, %v11092_v14  ;;  %v8401_v23 = vpop.f32.mrb[115].mxu0 }
 0x2a0   : > { %v8454_v24 = vpop.f32.mrb[115].mxu1 }
 0x2a1   : > { %v11157_v5 = vadd.f32 %v2757_v49, %v2575_v20 }
 0x2a2   : > { %v2542_v52 = vpop.f32.mrb[116].mxu0 }
 0x2a3   : > { %v2762_v34 = vpop.f32.mrb[116].mxu1  ;;  %v2576_v6 = vadd.f32 %v2542_v52, %v11095_v33  ;;  %v8404_v21 = vpop.f32.mrb[117].mxu0 }
 0x2a4   : > { %v8457_v14 = vpop.f32.mrb[117].mxu1 }
 0x2a5   : > { %v11169_v53 = vadd.f32 %v2762_v34, %v2576_v6 }
 0x2a6   : > { %v2547_v16 = vpop.f32.mrb[118].mxu0 }
 0x2a7   : > { %v2767_v8 = vpop.f32.mrb[118].mxu1  ;;  %v2577_v22 = vadd.f32 %v2547_v16, %v11098_v36  ;;  %v8407_v11 = vpop.f32.mrb[119].mxu0 }
 0x2a8   : > { %v8460_v25 = vpop.f32.mrb[119].mxu1 }
 0x2a9   : > { %v11172_v42 = vadd.f32 %v2767_v8, %v2577_v22 }
 0x2aa   : > { %v2552_v27 = vpop.f32.mrb[120].mxu0 }
 0x2ab   : > { %v2772_v29 = vpop.f32.mrb[120].mxu1  ;;  %v2578_v50 = vadd.f32 %v2552_v27, %v11101_v2  ;;  %v8410_v18 = vpop.f32.mrb[121].mxu0 }
 0x2ac   : > { %v8463_v33 = vpop.f32.mrb[121].mxu1 }
 0x2ad   : > { %v11175_v51 = vadd.f32 %v2772_v29, %v2578_v50 }
 0x2ae   : > { %v2557_v46 = vpop.f32.mrb[122].mxu0 }
 0x2af   : > { %v2777_v54 = vpop.f32.mrb[122].mxu1  ;;  %v2579_v30 = vadd.f32 %v2557_v46, %v11110_v62  ;;  %v8413_v41 = vpop.f32.mrb[123].mxu0 }
 0x2b0   : > { %v8466_v43 = vpop.f32.mrb[123].mxu1 }
 0x2b1   : > { %v11178_v60 = vadd.f32 %v2777_v54, %v2579_v30 }
 0x2b2   : > { %v2562_v36 = vpop.f32.mrb[124].mxu0 }
 0x2b3   : > { %v2782_v26 = vpop.f32.mrb[124].mxu1  ;;  %v2580_v44 = vadd.f32 %v2562_v36, %v11115_v31  ;;  %v8416_v45 = vpop.f32.mrb[125].mxu0 }
 0x2b4   : > { %v8469_v59 = vpop.f32.mrb[125].mxu1 }
 0x2b5   : > { %v11181_v10 = vadd.f32 %v2782_v26, %v2580_v44 }
 0x2b6   : > { %v2932_v2 = vpop.f32.mrb[126].mxu0 }
 0x2b7   : > { %v3152_v15 = vpop.f32.mrb[126].mxu1  ;;  %v3006_v12 = vadd.f32 %v2932_v2, %v11118_v56  ;;  %v8480_v35 = vpop.f32.mrb[127].mxu0 }
 0x2b8   : > { %v8533_v40 = vpop.f32.mrb[127].mxu1 }
 0x2b9   : > { %v11184_v63 = vadd.f32 %v3152_v15, %v3006_v12 }
 0x2ba   : > { %v2937_v62 = vpop.f32.mrb[128].mxu0 }
 0x2bb   : > { %v3157_v32 = vpop.f32.mrb[128].mxu1  ;;  %v3007_v47 = vadd.f32 %v2937_v62, %v11121_v13  ;;  %v8483_v55 = vpop.f32.mrb[129].mxu0 }
 0x2bc   : > { %v8536_v38 = vpop.f32.mrb[129].mxu1 }
 0x2bd   : > { %v11187_v1 = vadd.f32 %v3157_v32, %v3007_v47 }
 0x2be   : > { %v2942_v31 = vpop.f32.mrb[130].mxu0 }
 0x2bf   : > { %v3162_v3 = vpop.f32.mrb[130].mxu1  ;;  %v3008_v0 = vadd.f32 %v2942_v31, %v11130_v7  ;;  %v8486_v49 = vpop.f32.mrb[131].mxu0 }
 0x2c0   : > { %v8539_v20 = vpop.f32.mrb[131].mxu1 }
 0x2c1   : > { %v11190_v23 = vadd.f32 %v3162_v3, %v3008_v0 }
 0x2c2   : > { %v2947_v56 = vpop.f32.mrb[132].mxu0 }
 0x2c3   : > { %v3167_v24 = vpop.f32.mrb[132].mxu1  ;;  %v3009_v48 = vadd.f32 %v2947_v56, %v11139_v57  ;;  %v8489_v4 = vpop.f32.mrb[133].mxu0 }
 0x2c4   : > { %v8542_v52 = vpop.f32.mrb[133].mxu1 }
 0x2c5   : > { %v11193_v34 = vadd.f32 %v3167_v24, %v3009_v48 }
 0x2c6   : > { %v2952_v13 = vpop.f32.mrb[134].mxu0 }
 0x2c7   : > { %v3172_v6 = vpop.f32.mrb[134].mxu1  ;;  %v3010_v21 = vadd.f32 %v2952_v13, %v11142_v9  ;;  %v8492_v14 = vpop.f32.mrb[135].mxu0 }
 0x2c8   : > { %v8545_v16 = vpop.f32.mrb[135].mxu1 }
 0x2c9   : > { %v11196_v8 = vadd.f32 %v3172_v6, %v3010_v21 }
 0x2ca   : > { %v2957_v7 = vpop.f32.mrb[136].mxu0 }
 0x2cb   : > { %v3177_v22 = vpop.f32.mrb[136].mxu1  ;;  %v3011_v11 = vadd.f32 %v2957_v7, %v11145_v37  ;;  %v8495_v25 = vpop.f32.mrb[137].mxu0 }
 0x2cc   : > { %v8548_v27 = vpop.f32.mrb[137].mxu1 }
 0x2cd   : > { %v11199_v29 = vadd.f32 %v3177_v22, %v3011_v11 }
 0x2ce   : > { %v2962_v57 = vpop.f32.mrb[138].mxu0 }
 0x2cf   : > { %v3182_v50 = vpop.f32.mrb[138].mxu1  ;;  %v3012_v18 = vadd.f32 %v2962_v57, %v11148_v61  ;;  %v8498_v33 = vpop.f32.mrb[139].mxu0 }
 0x2d0   : > { %v8551_v46 = vpop.f32.mrb[139].mxu1 }
 0x2d1   : > { %v11202_v54 = vadd.f32 %v3182_v50, %v3012_v18  ;;  %v11231_v18 = vld [vmem:[%s12199_s4] ss:$0 sm:$0xff] }
 0x2d2   : > { %v2967_v9 = vpop.f32.mrb[140].mxu0 }
 0x2d3   : > { %v3187_v30 = vpop.f32.mrb[140].mxu1  ;;  %v3013_v41 = vadd.f32 %v2967_v9, %v11151_v19  ;;  %v8501_v43 = vpop.f32.mrb[141].mxu0 }
 0x2d4   : > { %v8554_v36 = vpop.f32.mrb[141].mxu1 }
 0x2d5   : > { %v11205_v26 = vadd.f32 %v3187_v30, %v3013_v41 }
 0x2d6   : > { %v2972_v37 = vpop.f32.mrb[142].mxu0 }
 0x2d7   : > { %v3192_v44 = vpop.f32.mrb[142].mxu1  ;;  %v3014_v45 = vadd.f32 %v2972_v37, %v11154_v39  ;;  %v8504_v59 = vpop.f32.mrb[143].mxu0 }
 0x2d8   : > { %v8557_v2 = vpop.f32.mrb[143].mxu1 }
 0x2d9   : > { %v11208_v15 = vadd.f32 %v3192_v44, %v3014_v45 }
 0x2da   : > { %v2977_v61 = vpop.f32.mrb[144].mxu0 }
 0x2db   : > { %v3197_v12 = vpop.f32.mrb[144].mxu1  ;;  %v3015_v35 = vadd.f32 %v2977_v61, %v11157_v5  ;;  %v8507_v40 = vpop.f32.mrb[145].mxu0 }
 0x2dc   : > { %v8560_v62 = vpop.f32.mrb[145].mxu1 }
 0x2dd   : > { %v11211_v32 = vadd.f32 %v3197_v12, %v3015_v35 }
 0x2de   : > { %v2982_v19 = vpop.f32.mrb[146].mxu0 }
 0x2df   : > { %v3202_v47 = vpop.f32.mrb[146].mxu1  ;;  %v3016_v55 = vadd.f32 %v2982_v19, %v11169_v53  ;;  %v8510_v38 = vpop.f32.mrb[147].mxu0 }
 0x2e0   : > { %v8563_v31 = vpop.f32.mrb[147].mxu1 }
 0x2e1   : > { %v11214_v3 = vadd.f32 %v3202_v47, %v3016_v55  ;;  %v3529_v47 = vld [vmem:[%s12200_s5 + $0x10] sm:$0xff]  ;;  %v3530_v55 = vld [vmem:[%s12200_s5 + $0x18] sm:$0xff] }
 0x2e2   : > { %v2987_v39 = vpop.f32.mrb[148].mxu0 }
 0x2e3   : > { %v3207_v0 = vpop.f32.mrb[148].mxu1  ;;  %v3017_v49 = vadd.f32 %v2987_v39, %v11172_v42  ;;  %v8513_v20 = vpop.f32.mrb[149].mxu0 }
 0x2e4   : > { %v8566_v56 = vpop.f32.mrb[149].mxu1  ;;  %v3531_v20 = vld [vmem:[%s12200_s5 + $0x20] sm:$0xff] }
 0x2e5   : > { %v11217_v24 = vadd.f32 %v3207_v0, %v3017_v49  ;;  %v9292_v0 = vpack.c.bf16 %v3530_v55, %v3529_v47  ;;  %v3532_v56 = vld [vmem:[%s12200_s5 + $0x28] sm:$0xff] }
 0x2e6   : > { %v2992_v5 = vpop.f32.mrb[150].mxu0 }
 0x2e7   : > { %v3212_v48 = vpop.f32.mrb[150].mxu1  ;;  %v3018_v4 = vadd.f32 %v2992_v5, %v11175_v51  ;;  %v8516_v52 = vpop.f32.mrb[151].mxu0 }
 0x2e8   : > { %v8569_v13 = vpop.f32.mrb[151].mxu1 }
 0x2e9   : > { %v11220_v6 = vadd.f32 %v3212_v48, %v3018_v4  ;;  %v9296_v13 = vpack.c.bf16 %v3532_v56, %v3531_v20 }
 0x2ea   : > { %v2997_v53 = vpop.f32.mrb[152].mxu0 }
 0x2eb   : > { %v3217_v21 = vpop.f32.mrb[152].mxu1  ;;  %v3019_v14 = vadd.f32 %v2997_v53, %v11178_v60  ;;  %v8519_v16 = vpop.f32.mrb[153].mxu0 }
 0x2ec   : > { %v8572_v7 = vpop.f32.mrb[153].mxu1 }
 0x2ed   : > { %v11223_v22 = vadd.f32 %v3217_v21, %v3019_v14  ;;  %v3533_v21 = vld [vmem:[%s12200_s5 + $0x30] sm:$0xff]  ;;  %v3534_v14 = vld [vmem:[%s12200_s5 + $0x38] sm:$0xff] }
 0x2ee   : > { %v3002_v42 = vpop.f32.mrb[154].mxu0 }
 0x2ef   : > { %v3222_v11 = vpop.f32.mrb[154].mxu1  ;;  %v3020_v25 = vadd.f32 %v3002_v42, %v11181_v10  ;;  %v8522_v27 = vpop.f32.mrb[155].mxu0 }
 0x2f0   : > { %v8575_v57 = vpop.f32.mrb[155].mxu1  ;;  %v7194_v27 = vld [vmem:[%s12200_s5 + $0x80] sm:$0xff] }
 0x2f1   : > { %v11226_v50 = vadd.f32 %v3222_v11, %v3020_v25  ;;  %v9300_v11 = vpack.c.bf16 %v3534_v14, %v3533_v21  ;;  %v7195_v57 = vld [vmem:[%s12200_s5 + $0x88] sm:$0xff]  ;;  %v7198_v21 = vld [vmem:[%s12200_s5 + $0xa0] sm:$0xff] }
 0x2f2   : > { %v3372_v51 = vpop.f32.mrb[156].mxu0  ;;  %v7199_v14 = vld [vmem:[%s12200_s5 + $0xa8] sm:$0xff] }
 0x2f3   : > { %v3446_v60 = vadd.f32 %v3372_v51, %v11184_v63  ;;  %v8586_v33 = vpop.f32.mrb[157].mxu0 }
 0x2f5   : > { %v3468_v46 = vadd.f32 %v11231_v18, %v3446_v60 }
 0x2f6   : > { %v3377_v9 = vpop.f32.mrb[158].mxu0 }
 0x2f7   : > { %v3483_v30 = vmax.f32 %v3468_v46, 0.0  ;;  %v3447_v41 = vadd.f32 %v3377_v9, %v11187_v1  ;;  %v8589_v10 = vpop.f32.mrb[159].mxu0  ;;  %v11289_v9 = vpack.c.bf16 %v7195_v57, %v7194_v27 }
 0x2f9   : > { %3499 = vst.msk [vmem:[#allocation3] sm:$0xff] %vm3498_vm6, %v3483_v30  ;;  %v3469_v43 = vadd.f32 %v11231_v18, %v3447_v41 }
 0x2fa   : > { %v3382_v36 = vpop.f32.mrb[160].mxu0 }
 0x2fb   : > { %v3484_v37 = vmax.f32 %v3469_v43, 0.0  ;;  %v3448_v44 = vadd.f32 %v3382_v36, %v11190_v23  ;;  %v8592_v45 = vpop.f32.mrb[161].mxu0 }
 0x2fd   : > { %3500 = vst.msk [vmem:[#allocation3 + $0x8] sm:$0xff] %vm3498_vm6, %v3484_v37  ;;  %v3470_v63 = vadd.f32 %v11231_v18, %v3448_v44 }
 0x2fe   : > { %v3387_v59 = vpop.f32.mrb[162].mxu0 }
 0x2ff   : > { %v3485_v2 = vmax.f32 %v3470_v63, 0.0  ;;  %v3449_v61 = vadd.f32 %v3387_v59, %v11193_v34  ;;  %v8595_v12 = vpop.f32.mrb[163].mxu0 }
 0x301   : > { %3501 = vst.msk [vmem:[#allocation3 + $0x10] sm:$0xff] %vm3498_vm6, %v3485_v2  ;;  %v3471_v1 = vadd.f32 %v11231_v18, %v3449_v61 }
 0x302   : > { %v3392_v35 = vpop.f32.mrb[164].mxu0 }
 0x303   : > { %v3486_v40 = vmax.f32 %v3471_v1, 0.0  ;;  %v3450_v62 = vadd.f32 %v3392_v35, %v11196_v8  ;;  %v8598_v19 = vpop.f32.mrb[165].mxu0 }
 0x304   : > { %v3535_v23 = vld [vmem:[#allocation3 + $0x1] sm:$0xff] }
 0x305   : > { %3502 = vst.msk [vmem:[#allocation3 + $0x18] sm:$0xff] %vm3498_vm6, %v3486_v40  ;;  %v3472_v34 = vadd.f32 %v11231_v18, %v3450_v62  ;;  %8645 = vmatprep.mubr.msk.f32.mxu1 %vm3498_vm6, %v3535_v23 }
 0x306   : > { %v3397_v38 = vpop.f32.mrb[166].mxu0 }
 0x307   : > { %v3487_v31 = vmax.f32 %v3472_v34, 0.0  ;;  %v3451_v8 = vadd.f32 %v3397_v38, %v11199_v29  ;;  %v8601_v39 = vpop.f32.mrb[167].mxu0 }
 0x308   : > { %v3536_v49 = vld [vmem:[#allocation3 + $0x9] sm:$0xff] }
 0x309   : > { %3503 = vst.msk [vmem:[#allocation3 + $0x20] sm:$0xff] %vm3498_vm6, %v3487_v31  ;;  %v3473_v5 = vadd.f32 %v11231_v18, %v3451_v8  ;;  %8646 = vmatmul.mubr.msk.f32.vlgmr.msra.gmra.mrb[156].mxu1 %vm3498_vm6, %v3536_v49 }
 0x30a   : > { %v3402_v48 = vpop.f32.mrb[168].mxu0  ;;  %9291 = vmatpush3.bf16.msra.mxu1 %v11165_v58 }
 0x30b   : > { %v3488_v29 = vmax.f32 %v3473_v5, 0.0  ;;  %v3452_v4 = vadd.f32 %v3402_v48, %v11202_v54  ;;  %v8604_v52 = vpop.f32.mrb[169].mxu0  ;;  %9293 = vmatprep.subr.bf16.mxu1 %v9292_v0 }
 0x30c   : > { %v3537_v53 = vld [vmem:[#allocation3 + $0x11] sm:$0xff] }
 0x30d   : > { %3504 = vst.msk [vmem:[#allocation3 + $0x28] sm:$0xff] %vm3498_vm6, %v3488_v29  ;;  %v3474_v16 = vadd.f32 %v11231_v18, %v3452_v4  ;;  %8648 = vmatprep.mubr.msk.f32.mxu1 %vm3498_vm6, %v3537_v53  ;;  %v7196_v52 = vld [vmem:[%s12200_s5 + $0x90] sm:$0xff]  ;;  %v3516_v53 = vld [vmem:[#allocation3 + $0x8] sm:$0xff] }
 0x30e   : > { %v3407_v58 = vpop.f32.mrb[170].mxu0  ;;  %9295 = vmatpush3.bf16.msra.mxu1 %v9292_v0 }
 0x30f   : > { %v3489_v54 = vmax.f32 %v3474_v16, 0.0  ;;  %v3453_v7 = vadd.f32 %v3407_v58, %v11205_v26  ;;  %v8607_v42 = vpop.f32.mrb[171].mxu0  ;;  %9297 = vmatprep.subr.bf16.mxu1 %v9296_v13  ;;  %v3517_v16 = vld [vmem:[#allocation3 + $0x10] sm:$0xff]  ;;  %v9312_v58 = vpack.c.bf16 %v7199_v14, %v7198_v21  ;;  %v7240_v21 = vld [vmem:[%s12200_s5 + $0x130] sm:$0xff]  ;;  %v7241_v14 = vld [vmem:[%s12200_s5 + $0x138] sm:$0xff] }
 0x310   : > { %v11276_v25 = vld [vmem:[#allocation3 + $0x19] sm:$0xff] }
 0x311   : > { %3505 = vst.msk [vmem:[#allocation3 + $0x30] sm:$0xff] %vm3498_vm6, %v3489_v54  ;;  %v3475_v51 = vadd.f32 %v11231_v18, %v3453_v7  ;;  %8649 = vmatmul.mubr.msk.f32.gmra.mrb[158].mxu1 %vm3498_vm6, %v11276_v25  ;;  %v11361_v54 = vld [vmem:[#allocation3 + $0x18] sm:$0xff]  ;;  %v7201_v42 = vld [vmem:[%s12200_s5 + $0xb8] sm:$0xff] }
 0x312   : > { %v3412_v26 = vpop.f32.mrb[172].mxu0  ;;  %9299 = vmatpush3.bf16.msra.mxu1 %v9296_v13  ;;  %v7200_v7 = vld [vmem:[%s12200_s5 + $0xb0] sm:$0xff] }
 0x313   : > { %v3490_v60 = vmax.f32 %v3475_v51, 0.0  ;;  %v3454_v33 = vadd.f32 %v3412_v26, %v11208_v15  ;;  %v8610_v46 = vpop.f32.mrb[173].mxu0  ;;  %9301 = vmatprep.subr.bf16.mxu1 %v9300_v11  ;;  %v9316_v27 = vpack.c.bf16 %v7201_v42, %v7200_v7  ;;  %v7214_v51 = vld [vmem:[%s12200_s5 + $0xc0] sm:$0xff]  ;;  %v7215_v26 = vld [vmem:[%s12200_s5 + $0xc8] sm:$0xff] }
 0x314   : > { %v11291_v30 = vld [vmem:[#allocation3 + $0x21] sm:$0xff] }
 0x315   : > { %3506 = vst.msk [vmem:[#allocation3 + $0x38] sm:$0xff] %vm3498_vm6, %v3490_v60  ;;  %v3476_v41 = vadd.f32 %v11231_v18, %v3454_v33  ;;  %8651 = vmatprep.mubr.msk.f32.mxu1 %vm3498_vm6, %v11291_v30  ;;  %v11375_v57 = vld [vmem:[#allocation3 + $0x28] sm:$0xff]  ;;  %v9320_v33 = vpack.c.bf16 %v7215_v26, %v7214_v51 }
 0x316   : > { %v3417_v10 = vpop.f32.mrb[174].mxu0  ;;  %9303 = vmatpush3.bf16.msra.mxu1 %v9300_v11  ;;  %v11371_v11 = vld [vmem:[#allocation3 + $0x20] sm:$0xff]  ;;  %v7254_v42 = vld [vmem:[%s12200_s5 + $0x140] sm:$0xff] }
 0x317   : > { %v3491_v43 = vmax.f32 %v3476_v41, 0.0  ;;  %v3455_v36 = vadd.f32 %v3417_v10, %v11211_v32  ;;  %v8613_v37 = vpop.f32.mrb[175].mxu0  ;;  %9305 = vmatprep.subr.bf16.mxu1 %v11289_v9 }
 0x318   : > { %v11299_v15 = vld [vmem:[#allocation3 + $0x29] sm:$0xff]  ;;  %v7217_v37 = vld [vmem:[%s12200_s5 + $0xd8] sm:$0xff] }
 0x319   : > { %3507 = vst.msk [vmem:[#allocation3 + $0x40] sm:$0xff] %vm3498_vm6, %v3491_v43  ;;  %v3477_v44 = vadd.f32 %v11231_v18, %v3455_v36  ;;  %8652 = vmatmul.mubr.msk.f32.gmra.mrb[160].mxu1 %vm3498_vm6, %v11299_v15  ;;  %v11385_v60 = vld [vmem:[#allocation3 + $0x30] sm:$0xff]  ;;  %v7216_v36 = vld [vmem:[%s12200_s5 + $0xd0] sm:$0xff] }
 0x31a   : > { %v3422_v45 = vpop.f32.mrb[176].mxu0 }
 0x31b   : > { %v3492_v63 = vmax.f32 %v3477_v44, 0.0  ;;  %v3456_v59 = vadd.f32 %v3422_v45, %v11214_v3  ;;  %v8616_v2 = vpop.f32.mrb[177].mxu0  ;;  %v3878_v44 = vld [vmem:[#allocation3 + $0x2] sm:$0xff]  ;;  %v9324_v45 = vpack.c.bf16 %v7217_v37, %v7216_v36 }
 0x31c   : > { %v11306_v61 = vld [vmem:[#allocation3 + $0x31] sm:$0xff]  ;;  %v7335_v37 = vld [vmem:[%s12202_s7 + $0x40] sm:$0xff] }
 0x31d   : > { %3508 = vst.msk [vmem:[#allocation3 + $0x48] sm:$0xff] %vm3498_vm6, %v3492_v63  ;;  %v3478_v32 = vadd.f32 %v11231_v18, %v3456_v59  ;;  %8654 = vmatprep.mubr.msk.f32.mxu1 %vm3498_vm6, %v11306_v61  ;;  %v11389_v46 = vld [vmem:[#allocation3 + $0x38] sm:$0xff]  ;;  %v3879_v63 = vld [vmem:[#allocation3 + $0xa] sm:$0xff] }
 0x31e   : > { %v3427_v12 = vpop.f32.mrb[178].mxu0  ;;  %v7218_v59 = vld [vmem:[%s12200_s5 + $0xe0] sm:$0xff]  ;;  %v7219_v2 = vld [vmem:[%s12200_s5 + $0xe8] sm:$0xff] }
 0x31f   : > { %v3493_v1 = vmax.f32 %v3478_v32, 0.0  ;;  %v3457_v35 = vadd.f32 %v3427_v12, %v11217_v24  ;;  %v8619_v40 = vpop.f32.mrb[179].mxu0  ;;  %v3880_v32 = vld [vmem:[#allocation3 + $0x12] sm:$0xff]  ;;  %v9328_v12 = vpack.c.bf16 %v7219_v2, %v7218_v59  ;;  %v7338_v59 = vld [vmem:[%s12202_s7 + $0x58] sm:$0xff] }
 0x320   : > { %v11313_v62 = vld [vmem:[#allocation3 + $0x39] sm:$0xff] }
 0x321   : > { %3509 = vst.msk [vmem:[#allocation3 + $0x50] sm:$0xff] %vm3498_vm6, %v3493_v1  ;;  %v3479_v3 = vadd.f32 %v11231_v18, %v3457_v35  ;;  %8655 = vmatmul.mubr.msk.f32.gmra.mrb[162].mxu1 %vm3498_vm6, %v11313_v62  ;;  %v11424_v1 = vld [vmem:[#allocation3 + $0x1a] sm:$0xff] }
 0x322   : > { %v3432_v19 = vpop.f32.mrb[180].mxu0  ;;  %v7220_v35 = vld [vmem:[%s12200_s5 + $0xf0] sm:$0xff]  ;;  %v7221_v40 = vld [vmem:[%s12200_s5 + $0xf8] sm:$0xff] }
 0x323   : > { %v3494_v23 = vmax.f32 %v3479_v3, 0.0  ;;  %v3458_v47 = vadd.f32 %v3432_v19, %v11220_v6  ;;  %v8622_v55 = vpop.f32.mrb[181].mxu0  ;;  %v11434_v3 = vld [vmem:[#allocation3 + $0x22] sm:$0xff]  ;;  %v9332_v19 = vpack.c.bf16 %v7221_v40, %v7220_v35  ;;  %v4077_v7 = vld [vmem:[#allocation3 + $0x34] sm:$0xff] }
 0x324   : > { %v11320_v34 = vld [vmem:[#allocation3 + $0x41] sm:$0xff]  ;;  %v7235_v55 = vld [vmem:[%s12200_s5 + $0x108] sm:$0xff] }
 0x325   : > { %3510 = vst.msk [vmem:[#allocation3 + $0x58] sm:$0xff] %vm3498_vm6, %v3494_v23  ;;  %v3480_v24 = vadd.f32 %v11231_v18, %v3458_v47  ;;  %8657 = vmatprep.mubr.msk.f32.mxu1 %vm3498_vm6, %v11320_v34  ;;  %v11397_v41 = vld [vmem:[#allocation3 + $0x48] sm:$0xff]  ;;  %v4078_v51 = vld [vmem:[#allocation3 + $0x3c] sm:$0xff] }
 0x326   : > { %v3437_v38 = vpop.f32.mrb[182].mxu0  ;;  %v11438_v23 = vld [vmem:[#allocation3 + $0x2a] sm:$0xff] }
 0x327   : > { %v3495_v31 = vmax.f32 %v3480_v24, 0.0  ;;  %v3459_v8 = vadd.f32 %v3437_v38, %v11223_v22  ;;  %v8625_v39 = vpop.f32.mrb[183].mxu0  ;;  %v7234_v47 = vld [vmem:[%s12200_s5 + $0x100] sm:$0xff]  ;;  %v11448_v24 = vld [vmem:[#allocation3 + $0x32] sm:$0xff] }
 0x328   : > { %v11327_v0 = vld [vmem:[#allocation3 + $0x49] sm:$0xff]  ;;  %v9336_v38 = vpack.c.bf16 %v7235_v55, %v7234_v47  ;;  %v7256_v55 = vld [vmem:[%s12200_s5 + $0x150] sm:$0xff] }
 0x329   : > { %3511 = vst.msk [vmem:[#allocation3 + $0x60] sm:$0xff] %vm3498_vm6, %v3495_v31  ;;  %v3481_v6 = vadd.f32 %v11231_v18, %v3459_v8  ;;  %8658 = vmatmul.mubr.msk.f32.gmra.mrb[164].mxu1 %vm3498_vm6, %v11327_v0  ;;  %v11401_v10 = vld [vmem:[#allocation3 + $0x50] sm:$0xff]  ;;  %v11452_v31 = vld [vmem:[#allocation3 + $0x3a] sm:$0xff]  ;;  %v11456_v8 = vld [vmem:[#allocation3 + $0x42] sm:$0xff] }
 0x32a   : > { %v3442_v49 = vpop.f32.mrb[184].mxu0  ;;  %v11460_v39 = vld [vmem:[#allocation3 + $0x4a] sm:$0xff] }
 0x32b   : > { %v3496_v20 = vmax.f32 %v3481_v6, 0.0  ;;  %v3460_v56 = vadd.f32 %v3442_v49, %v11226_v50  ;;  %v8628_v5 = vpop.f32.mrb[185].mxu0  ;;  %v7197_v50 = vld [vmem:[%s12200_s5 + $0x98] sm:$0xff]  ;;  %v4080_v36 = vld [vmem:[#allocation3 + $0x4c] sm:$0xff] }
 0x32c   : > { %v11334_v48 = vld [vmem:[#allocation3 + $0x51] sm:$0xff]  ;;  %v9308_v13 = vpack.c.bf16 %v7197_v50, %v7196_v52  ;;  %v7238_v52 = vld [vmem:[%s12200_s5 + $0x120] sm:$0xff] }
 0x32d   : > { %3512 = vst.msk [vmem:[#allocation3 + $0x68] sm:$0xff] %vm3498_vm6, %v3496_v20  ;;  %v3482_v22 = vadd.f32 %v11231_v18, %v3460_v56  ;;  %8660 = vmatprep.mubr.msk.f32.mxu1 %vm3498_vm6, %v11334_v48  ;;  %v3515_v18 = vld [vmem:[#allocation3] sm:$0xff]  ;;  %v11405_v43 = vld [vmem:[#allocation3 + $0x58] sm:$0xff]  ;;  %v4072_v5 = vld [vmem:[#allocation3 + $0xc] sm:$0xff] }
 0x32e   : > { %v11464_v6 = vld [vmem:[#allocation3 + $0x52] sm:$0xff]  ;;  %v7237_v56 = vld [vmem:[%s12200_s5 + $0x118] sm:$0xff] }
 0x32f   : > { %v3497_v29 = vmax.f32 %v3482_v22, 0.0  ;;  %v7236_v20 = vld [vmem:[%s12200_s5 + $0x110] sm:$0xff]  ;;  %v7239_v50 = vld [vmem:[%s12200_s5 + $0x128] sm:$0xff] }
 0x330   : > { %v11340_v4 = vld [vmem:[#allocation3 + $0x59] sm:$0xff]  ;;  %v9340_v22 = vpack.c.bf16 %v7237_v56, %v7236_v20  ;;  %v4266_v20 = vld [vmem:[#allocation3 + $0xd] sm:$0xff] }
 0x331   : > { %3513 = vst.msk [vmem:[#allocation3 + $0x70] sm:$0xff] %vm3498_vm6, %v3497_v29  ;;  %8661 = vmatmul.mubr.msk.f32.gmra.mrb[166].mxu1 %vm3498_vm6, %v11340_v4  ;;  %v11468_v49 = vld [vmem:[#allocation3 + $0x5a] sm:$0xff] }
 0x332   : > { %8679 = vmatprep.mubr.msk.f32.mxu1 %vm3498_vm6, %v3515_v18  ;;  %v4073_v29 = vld [vmem:[#allocation3 + $0x14] sm:$0xff]  ;;  %v4074_v18 = vld [vmem:[#allocation3 + $0x1c] sm:$0xff] }
 0x333   : > { %v4081_v35 = vld [vmem:[#allocation3 + $0x54] sm:$0xff]  ;;  %v4082_v40 = vld [vmem:[#allocation3 + $0x5c] sm:$0xff] }
 0x334   : > { %v4083_v47 = vld [vmem:[#allocation3 + $0x64] sm:$0xff] }
 0x335   : > { %8680 = vmatmul.mubr.msk.f32.vlgmr.msra.gmra.mrb[156].mxu1 %vm3498_vm6, %v3516_v53  ;;  %v4075_v53 = vld [vmem:[#allocation3 + $0x24] sm:$0xff] }
 0x336   : > { %8682 = vmatprep.mubr.msk.f32.mxu1 %vm3498_vm6, %v3517_v16  ;;  %9307 = vmatpush3.bf16.msra.mxu1 %v11289_v9  ;;  %v11393_v9 = vld [vmem:[#allocation3 + $0x40] sm:$0xff]  ;;  %v4076_v16 = vld [vmem:[#allocation3 + $0x2c] sm:$0xff] }
 0x337   : > { %9309 = vmatprep.subr.bf16.mxu1 %v9308_v13 }
 0x339   : > { %8683 = vmatmul.mubr.msk.f32.gmra.mrb[158].mxu1 %vm3498_vm6, %v11361_v54 }
 0x33a   : > { %8685 = vmatprep.mubr.msk.f32.mxu1 %vm3498_vm6, %v11371_v11  ;;  %9311 = vmatpush3.bf16.msra.mxu1 %v9308_v13  ;;  %v9344_v13 = vpack.c.bf16 %v7239_v50, %v7238_v52  ;;  %v4268_v52 = vld [vmem:[#allocation3 + $0x1d] sm:$0xff] }
 0x33b   : > { %9313 = vmatprep.subr.bf16.mxu1 %v9312_v58 }
 0x33d   : > { %8686 = vmatmul.mubr.msk.f32.gmra.mrb[160].mxu1 %vm3498_vm6, %v11375_v57 }
 0x33e   : > { %8688 = vmatprep.mubr.msk.f32.mxu1 %vm3498_vm6, %v11385_v60  ;;  %9315 = vmatpush3.bf16.msra.mxu1 %v9312_v58  ;;  %v9348_v58 = vpack.c.bf16 %v7241_v14, %v7240_v21  ;;  %v4270_v21 = vld [vmem:[#allocation3 + $0x2d] sm:$0xff] }
 0x33f   : > { %9317 = vmatprep.subr.bf16.mxu1 %v9316_v27 }
 0x341   : > { %8689 = vmatmul.mubr.msk.f32.gmra.mrb[162].mxu1 %vm3498_vm6, %v11389_v46 }
 0x342   : > { %8691 = vmatprep.mubr.msk.f32.mxu1 %vm3498_vm6, %v11393_v9  ;;  %9319 = vmatpush3.bf16.msra.mxu1 %v9316_v27  ;;  %v7255_v27 = vld [vmem:[%s12200_s5 + $0x148] sm:$0xff] }
 0x343   : > { %9321 = vmatprep.subr.bf16.mxu1 %v9320_v33  ;;  %v9352_v26 = vpack.c.bf16 %v7255_v27, %v7254_v42  ;;  %v4272_v42 = vld [vmem:[#allocation3 + $0x3d] sm:$0xff] }
 0x345   : > { %8692 = vmatmul.mubr.msk.f32.gmra.mrb[164].mxu1 %vm3498_vm6, %v11397_v41 }
 0x346   : > { %8694 = vmatprep.mubr.msk.f32.mxu1 %vm3498_vm6, %v11401_v10 }
 0x349   : > { %8695 = vmatmul.mubr.msk.f32.gmra.mrb[166].mxu1 %vm3498_vm6, %v11405_v43 }
 0x34a   : > { %8713 = vmatprep.mubr.msk.f32.mxu1 %vm3498_vm6, %v3878_v44  ;;  %v7336_v44 = vld [vmem:[%s12202_s7 + $0x48] sm:$0xff] }
 0x34d   : > { %8714 = vmatmul.mubr.msk.f32.vlgmr.msra.gmra.mrb[156].mxu1 %vm3498_vm6, %v3879_v63  ;;  %v9416_v63 = vpack.c.bf16 %v7336_v44, %v7335_v37  ;;  %v4277_v37 = vld [vmem:[#allocation3 + $0x65] sm:$0xff]  ;;  %v7276_v44 = vld [vmem:[%s12200_s5 + $0x190] sm:$0xff] }
 0x34e   : > { %8716 = vmatprep.mubr.msk.f32.mxu1 %vm3498_vm6, %v3880_v32  ;;  %9323 = vmatpush3.bf16.msra.mxu1 %v9320_v33  ;;  %v4079_v33 = vld [vmem:[#allocation3 + $0x44] sm:$0xff] }
 0x34f   : > { %9325 = vmatprep.subr.bf16.mxu1 %v9324_v45  ;;  %v7339_v32 = vld [vmem:[%s12202_s7 + $0x60] sm:$0xff]  ;;  %9417 = vmatprep.subr.bf16.mxu0 %v9416_v63 }
 0x350   : > { %9419 = vmatpush3.bf16.msra.mxu0 %v9416_v63  ;;  %v4460_v63 = vld [vmem:[#allocation3 + $0xe] sm:$0xff] }
 0x351   : > { %8717 = vmatmul.mubr.msk.f32.gmra.mrb[158].mxu1 %vm3498_vm6, %v11424_v1 }
 0x352   : > { %8719 = vmatprep.mubr.msk.f32.mxu1 %vm3498_vm6, %v11434_v3  ;;  %9327 = vmatpush3.bf16.msra.mxu1 %v9324_v45  ;;  %v7337_v45 = vld [vmem:[%s12202_s7 + $0x50] sm:$0xff] }
 0x353   : > { %9329 = vmatprep.subr.bf16.mxu1 %v9328_v12  ;;  %v9420_v2 = vpack.c.bf16 %v7338_v59, %v7337_v45  ;;  %v7277_v45 = vld [vmem:[%s12200_s5 + $0x198] sm:$0xff] }
 0x354   : > { %v9372_v59 = vpack.c.bf16 %v7277_v45, %v7276_v44  ;;  %v7321_v45 = vld [vmem:[%s12200_s5 + $0x238] sm:$0xff] }
 0x355   : > { %8720 = vmatmul.mubr.msk.f32.gmra.mrb[160].mxu1 %vm3498_vm6, %v11438_v23  ;;  %9421 = vmatprep.subr.bf16.mxu0 %v9420_v2 }
 0x356   : > { %8722 = vmatprep.mubr.msk.f32.mxu1 %vm3498_vm6, %v11448_v24  ;;  %9331 = vmatpush3.bf16.msra.mxu1 %v9328_v12  ;;  %v7340_v12 = vld [vmem:[%s12202_s7 + $0x68] sm:$0xff] }
 0x357   : > { %9333 = vmatprep.subr.bf16.mxu1 %v9332_v19  ;;  %9423 = vmatpush3.bf16.msra.mxu0 %v9420_v2  ;;  %v4461_v2 = vld [vmem:[#allocation3 + $0x16] sm:$0xff] }
 0x359   : > { %8723 = vmatmul.mubr.msk.f32.gmra.mrb[162].mxu1 %vm3498_vm6, %v11452_v31 }
 0x35a   : > { %8725 = vmatprep.mubr.msk.f32.mxu1 %vm3498_vm6, %v11456_v8  ;;  %9335 = vmatpush3.bf16.msra.mxu1 %v9332_v19  ;;  %v9424_v19 = vpack.c.bf16 %v7340_v12, %v7339_v32  ;;  %v7278_v32 = vld [vmem:[%s12200_s5 + $0x1a0] sm:$0xff]  ;;  %v7279_v12 = vld [vmem:[%s12200_s5 + $0x1a8] sm:$0xff] }
 0x35b   : > { %9337 = vmatprep.subr.bf16.mxu1 %v9336_v38 }
 0x35c   : > { %9425 = vmatprep.subr.bf16.mxu0 %v9424_v19 }
 0x35d   : > { %8726 = vmatmul.mubr.msk.f32.gmra.mrb[164].mxu1 %vm3498_vm6, %v11460_v39  ;;  %9427 = vmatpush3.bf16.msra.mxu0 %v9424_v19  ;;  %v4463_v19 = vld [vmem:[#allocation3 + $0x26] sm:$0xff] }
 0x35e   : > { %8728 = vmatprep.mubr.msk.f32.mxu1 %vm3498_vm6, %v11464_v6 }
 0x361   : > { %8729 = vmatmul.mubr.msk.f32.gmra.mrb[166].mxu1 %vm3498_vm6, %v11468_v49 }
 0x362   : > { %8747 = vmatprep.mubr.msk.f32.mxu1 %vm3498_vm6, %v4072_v5  ;;  %v4267_v5 = vld [vmem:[#allocation3 + $0x15] sm:$0xff] }
 0x365   : > { %8748 = vmatmul.mubr.msk.f32.vlgmr.msra.gmra.mrb[156].mxu1 %vm3498_vm6, %v4073_v29  ;;  %v7259_v29 = vld [vmem:[%s12200_s5 + $0x168] sm:$0xff] }
 0x366   : > { %8750 = vmatprep.mubr.msk.f32.mxu1 %vm3498_vm6, %v4074_v18  ;;  %9339 = vmatpush3.bf16.msra.mxu1 %v9336_v38  ;;  %v7257_v38 = vld [vmem:[%s12200_s5 + $0x158] sm:$0xff] }
 0x367   : > { %9341 = vmatprep.subr.bf16.mxu1 %v9340_v22  ;;  %v9356_v56 = vpack.c.bf16 %v7257_v38, %v7256_v55  ;;  %v4269_v18 = vld [vmem:[#allocation3 + $0x25] sm:$0xff]  ;;  %v4464_v38 = vld [vmem:[#allocation3 + $0x2e] sm:$0xff] }
 0x368   : > { %v7281_v55 = vld [vmem:[%s12200_s5 + $0x1b8] sm:$0xff] }
 0x369   : > { %8751 = vmatmul.mubr.msk.f32.gmra.mrb[158].mxu1 %vm3498_vm6, %v4075_v53  ;;  %v7261_v53 = vld [vmem:[%s12200_s5 + $0x178] sm:$0xff] }
 0x36a   : > { %8753 = vmatprep.mubr.msk.f32.mxu1 %vm3498_vm6, %v4076_v16  ;;  %9343 = vmatpush3.bf16.msra.mxu1 %v9340_v22  ;;  %v7258_v22 = vld [vmem:[%s12200_s5 + $0x160] sm:$0xff]  ;;  %v4271_v16 = vld [vmem:[#allocation3 + $0x35] sm:$0xff] }
 0x36b   : > { %9345 = vmatprep.subr.bf16.mxu1 %v9344_v13  ;;  %v9360_v50 = vpack.c.bf16 %v7259_v29, %v7258_v22  ;;  %v7295_v22 = vld [vmem:[%s12200_s5 + $0x1c8] sm:$0xff]  ;;  %v4466_v29 = vld [vmem:[#allocation3 + $0x3e] sm:$0xff] }
 0x36d   : > { %8754 = vmatmul.mubr.msk.f32.gmra.mrb[160].mxu1 %vm3498_vm6, %v4077_v7  ;;  %v7275_v7 = vld [vmem:[%s12200_s5 + $0x188] sm:$0xff] }
 0x36e   : > { %8756 = vmatprep.mubr.msk.f32.mxu1 %vm3498_vm6, %v4078_v51  ;;  %9347 = vmatpush3.bf16.msra.mxu1 %v9344_v13  ;;  %v7260_v13 = vld [vmem:[%s12200_s5 + $0x170] sm:$0xff]  ;;  %v4273_v51 = vld [vmem:[#allocation3 + $0x45] sm:$0xff] }
 0x36f   : > { %9349 = vmatprep.subr.bf16.mxu1 %v9348_v58  ;;  %v9364_v14 = vpack.c.bf16 %v7261_v53, %v7260_v13  ;;  %v4469_v13 = vld [vmem:[#allocation3 + $0x56] sm:$0xff]  ;;  %v4470_v53 = vld [vmem:[#allocation3 + $0x5e] sm:$0xff] }
 0x371   : > { %8757 = vmatmul.mubr.msk.f32.gmra.mrb[162].mxu1 %vm3498_vm6, %v4079_v33  ;;  %v4275_v33 = vld [vmem:[#allocation3 + $0x55] sm:$0xff] }
 0x372   : > { %8759 = vmatprep.mubr.msk.f32.mxu1 %vm3498_vm6, %v4080_v36  ;;  %9351 = vmatpush3.bf16.msra.mxu1 %v9348_v58  ;;  %v7274_v58 = vld [vmem:[%s12200_s5 + $0x180] sm:$0xff]  ;;  %v4276_v36 = vld [vmem:[#allocation3 + $0x5d] sm:$0xff] }
 0x373   : > { %9353 = vmatprep.subr.bf16.mxu1 %v9352_v26  ;;  %v9368_v27 = vpack.c.bf16 %v7275_v7, %v7274_v58  ;;  %v7298_v7 = vld [vmem:[%s12200_s5 + $0x1e0] sm:$0xff] }
 0x375   : > { %8760 = vmatmul.mubr.msk.f32.gmra.mrb[164].mxu1 %vm3498_vm6, %v4081_v35  ;;  %v4462_v35 = vld [vmem:[#allocation3 + $0x1e] sm:$0xff] }
 0x376   : > { %8762 = vmatprep.mubr.msk.f32.mxu1 %vm3498_vm6, %v4082_v40  ;;  %v9376_v40 = vpack.c.bf16 %v7279_v12, %v7278_v32 }
 0x379   : > { %8763 = vmatmul.mubr.msk.f32.gmra.mrb[166].mxu1 %vm3498_vm6, %v4083_v47  ;;  %v7280_v47 = vld [vmem:[%s12200_s5 + $0x1b0] sm:$0xff] }
 0x37a   : > { %8781 = vmatprep.mubr.msk.f32.mxu1 %vm3498_vm6, %v4266_v20  ;;  %v9380_v20 = vpack.c.bf16 %v7281_v55, %v7280_v47 }
 0x37d   : > { %8782 = vmatmul.mubr.msk.f32.vlgmr.msra.gmra.mrb[156].mxu1 %vm3498_vm6, %v4267_v5  ;;  %v7294_v5 = vld [vmem:[%s12200_s5 + $0x1c0] sm:$0xff] }
 0x37e   : > { %8784 = vmatprep.mubr.msk.f32.mxu1 %vm3498_vm6, %v4268_v52  ;;  %9355 = vmatpush3.bf16.msra.mxu1 %v9352_v26  ;;  %v4274_v26 = vld [vmem:[#allocation3 + $0x4d] sm:$0xff]  ;;  %v9384_v52 = vpack.c.bf16 %v7295_v22, %v7294_v5 }
 0x37f   : > { %9357 = vmatprep.subr.bf16.mxu1 %v9356_v56 }
 0x381   : > { %8785 = vmatmul.mubr.msk.f32.gmra.mrb[158].mxu1 %vm3498_vm6, %v4269_v18  ;;  %v4468_v18 = vld [vmem:[#allocation3 + $0x4e] sm:$0xff] }
 0x382   : > { %8787 = vmatprep.mubr.msk.f32.mxu1 %vm3498_vm6, %v4270_v21  ;;  %9359 = vmatpush3.bf16.msra.mxu1 %v9356_v56  ;;  %v4465_v56 = vld [vmem:[#allocation3 + $0x36] sm:$0xff]  ;;  %v4471_v21 = vld [vmem:[#allocation3 + $0x66] sm:$0xff] }
 0x383   : > { %9361 = vmatprep.subr.bf16.mxu1 %v9360_v50 }
 0x385   : > { %8788 = vmatmul.mubr.msk.f32.gmra.mrb[160].mxu1 %vm3498_vm6, %v4271_v16  ;;  %v7297_v16 = vld [vmem:[%s12200_s5 + $0x1d8] sm:$0xff] }
 0x386   : > { %8790 = vmatprep.mubr.msk.f32.mxu1 %vm3498_vm6, %v4272_v42  ;;  %9363 = vmatpush3.bf16.msra.mxu1 %v9360_v50  ;;  %v4467_v50 = vld [vmem:[#allocation3 + $0x46] sm:$0xff]  ;;  %v7299_v42 = vld [vmem:[%s12200_s5 + $0x1e8] sm:$0xff] }
 0x387   : > { %9365 = vmatprep.subr.bf16.mxu1 %v9364_v14 }
 0x389   : > { %8791 = vmatmul.mubr.msk.f32.gmra.mrb[162].mxu1 %vm3498_vm6, %v4273_v51  ;;  %v7301_v51 = vld [vmem:[%s12200_s5 + $0x1f8] sm:$0xff] }
 0x38a   : > { %8793 = vmatprep.mubr.msk.f32.mxu1 %vm3498_vm6, %v4274_v26  ;;  %9367 = vmatpush3.bf16.msra.mxu1 %v9364_v14  ;;  %v7296_v14 = vld [vmem:[%s12200_s5 + $0x1d0] sm:$0xff]  ;;  %v7315_v26 = vld [vmem:[%s12200_s5 + $0x208] sm:$0xff] }
 0x38b   : > { %9369 = vmatprep.subr.bf16.mxu1 %v9368_v27  ;;  %v9388_v58 = vpack.c.bf16 %v7297_v16, %v7296_v14 }
 0x38d   : > { %8794 = vmatmul.mubr.msk.f32.gmra.mrb[164].mxu1 %vm3498_vm6, %v4275_v33  ;;  %v4664_v33 = vld [vmem:[#allocation3 + $0x68] sm:$0xff] }
 0x38e   : > { %8796 = vmatprep.mubr.msk.f32.mxu1 %vm3498_vm6, %v4276_v36  ;;  %v7318_v36 = vld [vmem:[%s12200_s5 + $0x220] sm:$0xff] }
 0x391   : > { %8797 = vmatmul.mubr.msk.f32.gmra.mrb[166].mxu1 %vm3498_vm6, %v4277_v37  ;;  %v7319_v37 = vld [vmem:[%s12200_s5 + $0x228] sm:$0xff] }
 0x392   : > { %8815 = vmatprep.mubr.msk.f32.mxu1 %vm3498_vm6, %v4460_v63  ;;  %v9408_v44 = vpack.c.bf16 %v7319_v37, %v7318_v36 }
 0x395   : > { %8816 = vmatmul.mubr.msk.f32.vlgmr.msra.gmra.mrb[156].mxu1 %vm3498_vm6, %v4461_v2 }
 0x396   : > { %8818 = vmatprep.mubr.msk.f32.mxu1 %vm3498_vm6, %v4462_v35  ;;  %9371 = vmatpush3.bf16.msra.mxu1 %v9368_v27  ;;  %v9392_v27 = vpack.c.bf16 %v7299_v42, %v7298_v7 }
 0x397   : > { %9373 = vmatprep.subr.bf16.mxu1 %v9372_v59 }
 0x399   : > { %8819 = vmatmul.mubr.msk.f32.gmra.mrb[158].mxu1 %vm3498_vm6, %v4463_v19 }
 0x39a   : > { %8821 = vmatprep.mubr.msk.f32.mxu1 %vm3498_vm6, %v4464_v38  ;;  %9375 = vmatpush3.bf16.msra.mxu1 %v9372_v59 }
 0x39b   : > { %9377 = vmatprep.subr.bf16.mxu1 %v9376_v40 }
 0x39d   : > { %8822 = vmatmul.mubr.msk.f32.gmra.mrb[160].mxu1 %vm3498_vm6, %v4465_v56 }
 0x39e   : > { %8824 = vmatprep.mubr.msk.f32.mxu1 %vm3498_vm6, %v4466_v29  ;;  %9379 = vmatpush3.bf16.msra.mxu1 %v9376_v40 }
 0x39f   : > { %9381 = vmatprep.subr.bf16.mxu1 %v9380_v20 }
 0x3a1   : > { %8825 = vmatmul.mubr.msk.f32.gmra.mrb[162].mxu1 %vm3498_vm6, %v4467_v50 }
 0x3a2   : > { %8827 = vmatprep.mubr.msk.f32.mxu1 %vm3498_vm6, %v4468_v18  ;;  %9383 = vmatpush3.bf16.msra.mxu1 %v9380_v20 }
 0x3a3   : > { %9385 = vmatprep.subr.bf16.mxu1 %v9384_v52 }
 0x3a5   : > { %8828 = vmatmul.mubr.msk.f32.gmra.mrb[164].mxu1 %vm3498_vm6, %v4469_v13 }
 0x3a6   : > { %8830 = vmatprep.mubr.msk.f32.mxu1 %vm3498_vm6, %v4470_v53 }
 0x3a9   : > { %8831 = vmatmul.mubr.msk.f32.gmra.mrb[166].mxu1 %vm3498_vm6, %v4471_v21 }
 0x3aa   : > { %8849 = vmatprep.mubr.msk.f32.mxu1 %vm3498_vm6, %v11361_v54  ;;  %v7300_v54 = vld [vmem:[%s12200_s5 + $0x1f0] sm:$0xff] }
 0x3ad   : > { %8850 = vmatmul.mubr.msk.f32.vlgmr.msra.gmra.mrb[156].mxu1 %vm3498_vm6, %v11371_v11  ;;  %v9396_v11 = vpack.c.bf16 %v7301_v51, %v7300_v54 }
 0x3ae   : > { %8852 = vmatprep.mubr.msk.f32.mxu1 %vm3498_vm6, %v11375_v57  ;;  %9387 = vmatpush3.bf16.msra.mxu1 %v9384_v52  ;;  %v7314_v57 = vld [vmem:[%s12200_s5 + $0x200] sm:$0xff] }
 0x3af   : > { %9389 = vmatprep.subr.bf16.mxu1 %v9388_v58 }
 0x3b1   : > { %8853 = vmatmul.mubr.msk.f32.gmra.mrb[158].mxu1 %vm3498_vm6, %v11385_v60  ;;  %v9400_v60 = vpack.c.bf16 %v7315_v26, %v7314_v57 }
 0x3b2   : > { %8855 = vmatprep.mubr.msk.f32.mxu1 %vm3498_vm6, %v11389_v46  ;;  %9391 = vmatpush3.bf16.msra.mxu1 %v9388_v58  ;;  %v4663_v46 = vld [vmem:[#allocation3 + $0x60] sm:$0xff] }
 0x3b3   : > { %9393 = vmatprep.subr.bf16.mxu1 %v9392_v27 }
 0x3b5   : > { %8856 = vmatmul.mubr.msk.f32.gmra.mrb[160].mxu1 %vm3498_vm6, %v11393_v9  ;;  %v4665_v9 = vld [vmem:[#allocation3 + $0x70] sm:$0xff] }
 0x3b6   : > { %8858 = vmatprep.mubr.msk.f32.mxu1 %vm3498_vm6, %v11397_v41  ;;  %9395 = vmatpush3.bf16.msra.mxu1 %v9392_v27  ;;  %v7316_v41 = vld [vmem:[%s12200_s5 + $0x210] sm:$0xff] }
 0x3b7   : > { %9397 = vmatprep.subr.bf16.mxu1 %v9396_v11 }
 0x3b9   : > { %8859 = vmatmul.mubr.msk.f32.gmra.mrb[162].mxu1 %vm3498_vm6, %v11401_v10  ;;  %v7317_v10 = vld [vmem:[%s12200_s5 + $0x218] sm:$0xff] }
 0x3ba   : > { %8861 = vmatprep.mubr.msk.f32.mxu1 %vm3498_vm6, %v11405_v43  ;;  %9399 = vmatpush3.bf16.msra.mxu1 %v9396_v11  ;;  %v9404_v43 = vpack.c.bf16 %v7317_v10, %v7316_v41 }
 0x3bb   : > { %9401 = vmatprep.subr.bf16.mxu1 %v9400_v60 }
 0x3bd   : > { %8862 = vmatmul.mubr.msk.f32.gmra.mrb[164].mxu1 %vm3498_vm6, %v4663_v46 }
 0x3be   : > { %8864 = vmatprep.mubr.msk.f32.mxu1 %vm3498_vm6, %v4664_v33 }
 0x3c1   : > { %8865 = vmatmul.mubr.msk.f32.gmra.mrb[166].mxu1 %vm3498_vm6, %v4665_v9 }
 0x3c2   : > { %8883 = vmatprep.mubr.msk.f32.mxu1 %vm3498_vm6, %v11276_v25  ;;  %v7320_v25 = vld [vmem:[%s12200_s5 + $0x230] sm:$0xff] }
 0x3c5   : > { %8884 = vmatmul.mubr.msk.f32.vlgmr.msra.gmra.mrb[156].mxu1 %vm3498_vm6, %v11291_v30  ;;  %v9412_v30 = vpack.c.bf16 %v7321_v45, %v7320_v25  ;;  %v5309_v45 = vld [vmem:[%s12202_s7 + $0x10] sm:$0xff] }
 0x3c6   : > { %8886 = vmatprep.mubr.msk.f32.mxu1 %vm3498_vm6, %v11299_v15  ;;  %9403 = vmatpush3.bf16.msra.mxu1 %v9400_v60  ;;  %v4857_v15 = vld [vmem:[#allocation3 + $0x61] sm:$0xff] }
 0x3c7   : > { %9405 = vmatprep.subr.bf16.mxu1 %v9404_v43 }
 0x3c9   : > { %8887 = vmatmul.mubr.msk.f32.gmra.mrb[158].mxu1 %vm3498_vm6, %v11306_v61  ;;  %v4858_v61 = vld [vmem:[#allocation3 + $0x69] sm:$0xff] }
 0x3ca   : > { %8889 = vmatprep.mubr.msk.f32.mxu1 %vm3498_vm6, %v11313_v62  ;;  %9407 = vmatpush3.bf16.msra.mxu1 %v9404_v43  ;;  %v4859_v62 = vld [vmem:[#allocation3 + $0x71] sm:$0xff] }
 0x3cb   : > { %9409 = vmatprep.subr.bf16.mxu1 %v9408_v44 }
 0x3cd   : > { %8890 = vmatmul.mubr.msk.f32.gmra.mrb[160].mxu1 %vm3498_vm6, %v11320_v34  ;;  %v5052_v34 = vld [vmem:[#allocation3 + $0x6a] sm:$0xff] }
 0x3ce   : > { %8892 = vmatprep.mubr.msk.f32.mxu1 %vm3498_vm6, %v11327_v0  ;;  %9411 = vmatpush3.bf16.msra.mxu1 %v9408_v44  ;;  %v5053_v0 = vld [vmem:[#allocation3 + $0x72] sm:$0xff] }
 0x3cf   : > { %9413 = vmatprep.subr.bf16.mxu1 %v9412_v30 }
 0x3d1   : > { %8893 = vmatmul.mubr.msk.f32.gmra.mrb[162].mxu1 %vm3498_vm6, %v11334_v48  ;;  %v7341_v48 = vld [vmem:[%s12202_s7 + $0x70] sm:$0xff] }
 0x3d2   : > { %8895 = vmatprep.mubr.msk.f32.mxu1 %vm3498_vm6, %v11340_v4  ;;  %9415 = vmatpush3.bf16.msra.mxu1 %v9412_v30  ;;  %v7342_v4 = vld [vmem:[%s12202_s7 + $0x78] sm:$0xff] }
 0x3d3   : > { %9592 = vmatprep.subr.bf16.mxu1 %v9873_v17  ;;  %v5051_v17 = vld [vmem:[#allocation3 + $0x62] sm:$0xff] }
 0x3d4   : > { %v5310_v30 = vld [vmem:[%s12202_s7 + $0x18] sm:$0xff] }
 0x3d5   : > { %8896 = vmatmul.mubr.msk.f32.gmra.mrb[164].mxu1 %vm3498_vm6, %v4857_v15 }
 0x3d6   : > { %8898 = vmatprep.mubr.msk.f32.mxu1 %vm3498_vm6, %v4858_v61 }
 0x3d9   : > { %8899 = vmatmul.mubr.msk.f32.gmra.mrb[166].mxu1 %vm3498_vm6, %v4859_v62 }
 0x3da   : > { %8917 = vmatprep.mubr.msk.f32.mxu1 %vm3498_vm6, %v11424_v1  ;;  %v9428_v1 = vpack.c.bf16 %v7342_v4, %v7341_v48 }
 0x3dc   : > { %9429 = vmatprep.subr.bf16.mxu0 %v9428_v1 }
 0x3dd   : > { %8918 = vmatmul.mubr.msk.f32.vlgmr.msra.gmra.mrb[156].mxu1 %vm3498_vm6, %v11434_v3  ;;  %9431 = vmatpush3.bf16.msra.mxu0 %v9428_v1  ;;  %v5307_v3 = vld [vmem:[%s12202_s7] sm:$0xff] }
 0x3de   : > { %8920 = vmatprep.mubr.msk.f32.mxu1 %vm3498_vm6, %v11438_v23  ;;  %v5308_v23 = vld [vmem:[%s12202_s7 + $0x8] sm:$0xff] }
 0x3e1   : > { %8921 = vmatmul.mubr.msk.f32.gmra.mrb[158].mxu1 %vm3498_vm6, %v11448_v24  ;;  %v11724_v24 = vld [vmem:[%s12201_s6] ss:$0 sm:$0xff] }
 0x3e2   : > { %8923 = vmatprep.mubr.msk.f32.mxu1 %vm3498_vm6, %v11452_v31 }
 0x3e5   : > { %8924 = vmatmul.mubr.msk.f32.gmra.mrb[160].mxu1 %vm3498_vm6, %v11456_v8 }
 0x3e6   : > { %8926 = vmatprep.mubr.msk.f32.mxu1 %vm3498_vm6, %v11460_v39 }
 0x3e9   : > { %8927 = vmatmul.mubr.msk.f32.gmra.mrb[162].mxu1 %vm3498_vm6, %v11464_v6 }
 0x3ea   : > { %8929 = vmatprep.mubr.msk.f32.mxu1 %vm3498_vm6, %v11468_v49 }
 0x3ed   : > { %8930 = vmatmul.mubr.msk.f32.gmra.mrb[164].mxu1 %vm3498_vm6, %v5051_v17 }
 0x3ee   : > { %8932 = vmatprep.mubr.msk.f32.mxu1 %vm3498_vm6, %v5052_v34 }
 0x3f1   : > { %8933 = vmatmul.mubr.msk.f32.gmra.mrb[166].mxu1 %vm3498_vm6, %v5053_v0 }
 0x3f2   : > { %9175 = vmatprep.mubr.msk.f32.mxu1 %vm9874_vm5, %v9875_v28  ;;  %v11718_v28 = vpack.c.bf16 %v5308_v23, %v5307_v3 }
 0x3f4   : > { %9433 = vmatprep.subr.bf16.mxu0 %v11718_v28 }
 0x4b0   : > { %v8919_v31 = vpop.f32.mrb[156].mxu1 }
 0x4b1   : > { %v5244_v8 = vadd.f32 %v8919_v31, %v11724_v24  ;;  %v5165_v39 = vpop.f32.mrb[157].mxu1 }
 0x4b2   : > { %v5243_v6 = vadd.f32 %v11724_v24, %v5165_v39 }
 0x4b3   : > { %v5256_v49 = vmax.f32 %v5244_v8, 0.0 }
 0x4b4   : > { %v5255_v63 = vmax.f32 %v5243_v6, 0.0  ;;  %v8922_v59 = vpop.f32.mrb[158].mxu1  ;;  %v9436_v6 = vpack.c.bf16 %v5310_v30, %v5309_v45  ;;  %v7356_v45 = vld [vmem:[%s12202_s7 + $0xa8] sm:$0xff] }
 0x4b5   : > { %5268 = vst.msk [vmem:[#allocation4 + $0x8] sm:$0xff] %vm3498_vm6, %v5256_v49  ;;  %v5246_v2 = vadd.f32 %v8922_v59, %v11724_v24  ;;  %v5175_v32 = vpop.f32.mrb[159].mxu1 }
 0x4b6   : > { %5267 = vst.msk [vmem:[#allocation4] sm:$0xff] %vm3498_vm6, %v5255_v63  ;;  %v5245_v12 = vadd.f32 %v11724_v24, %v5175_v32  ;;  %v5311_v32 = vld [vmem:[%s12202_s7 + $0x20] sm:$0xff] }
 0x4b7   : > { %v5258_v35 = vmax.f32 %v5246_v2, 0.0 }
 0x4b8   : > { %v5257_v40 = vmax.f32 %v5245_v12, 0.0  ;;  %v8925_v19 = vpop.f32.mrb[160].mxu1 }
 0x4b9   : > { %5270 = vst.msk [vmem:[#allocation4 + $0x18] sm:$0xff] %vm3498_vm6, %v5258_v35  ;;  %v5248_v47 = vadd.f32 %v8925_v19, %v11724_v24  ;;  %v5185_v55 = vpop.f32.mrb[161].mxu1 }
 0x4ba   : > { %5269 = vst.msk [vmem:[#allocation4 + $0x10] sm:$0xff] %vm3498_vm6, %v5257_v40  ;;  %v5247_v38 = vadd.f32 %v11724_v24, %v5185_v55  ;;  %v5313_v55 = vld [vmem:[%s12202_s7 + $0x30] sm:$0xff] }
 0x4bb   : > { %v5260_v20 = vmax.f32 %v5248_v47, 0.0 }
 0x4bc   : > { %v5259_v56 = vmax.f32 %v5247_v38, 0.0  ;;  %v8928_v5 = vpop.f32.mrb[162].mxu1  ;;  %v5314_v38 = vld [vmem:[%s12202_s7 + $0x38] sm:$0xff] }
 0x4bd   : > { %5272 = vst.msk [vmem:[#allocation4 + $0x28] sm:$0xff] %vm3498_vm6, %v5260_v20  ;;  %v5250_v22 = vadd.f32 %v8928_v5, %v11724_v24  ;;  %v5195_v29 = vpop.f32.mrb[163].mxu1  ;;  %v5315_v52 = vld [vmem:[#allocation4 + $0x2] sm:$0xff] }
 0x4be   : > { %v5319_v50 = vld [vmem:[#allocation4 + $0x3] sm:$0xff]  ;;  %5271 = vst.msk [vmem:[#allocation4 + $0x20] sm:$0xff] %vm3498_vm6, %v5259_v56  ;;  %v5249_v18 = vadd.f32 %v11724_v24, %v5195_v29 }
 0x4bf   : > { %v5262_v13 = vmax.f32 %v5250_v22, 0.0  ;;  %v5323_v14 = vmax.f32 %v5315_v52, %v5319_v50  ;;  %v5279_v27 = vld [vmem:[#allocation4] sm:$0xff]  ;;  %v9444_v22 = vpack.c.bf16 %v5314_v38, %v5313_v55 }
 0x4c0   : > { %v5261_v53 = vmax.f32 %v5249_v18, 0.0  ;;  %v8931_v21 = vpop.f32.mrb[164].mxu1  ;;  %v5283_v54 = vld [vmem:[#allocation4 + $0x1] sm:$0xff]  ;;  %v5318_v26 = vld [vmem:[#allocation4 + $0x1a] sm:$0x7] }
 0x4c1   : > { %5274 = vst.msk [vmem:[#allocation4 + $0x38] sm:$0xff] %vm3498_vm6, %v5262_v13  ;;  %v5252_v16 = vadd.f32 %v8931_v21, %v11724_v24  ;;  %v5205_v58 = vpop.f32.mrb[165].mxu1  ;;  %v5327_v7 = vld [vmem:[#allocation4 + $0xe] sm:$0xff]  ;;  %v5322_v60 = vld [vmem:[#allocation4 + $0x1b] sm:$0x7]  ;;  %v5287_v23 = vmax.f32 %v5279_v27, %v5283_v54  ;;  %v5546_v54 = vld [vmem:[#allocation4 + $0x4] sm:$0xff] }
 0x4c2   : > { %v5316_v42 = vld [vmem:[#allocation4 + $0xa] sm:$0xff]  ;;  %5273 = vst.msk [vmem:[#allocation4 + $0x30] sm:$0xff] %vm3498_vm6, %v5261_v53  ;;  %v5251_v51 = vadd.f32 %v11724_v24, %v5205_v58  ;;  %v5331_v11 = vmax.f32 %v5323_v14, %v5327_v7  ;;  %v5317_v41 = vld [vmem:[#allocation4 + $0x12] sm:$0xff]  ;;  %v5326_v34 = vmax.f32 %v5318_v26, %v5322_v60  ;;  %v7354_v60 = vld [vmem:[%s12202_s7 + $0x98] sm:$0xff] }
 0x4c3   : > { %v5320_v57 = vld [vmem:[#allocation4 + $0xb] sm:$0xff]  ;;  %v5264_v46 = vmax.f32 %v5252_v16, 0.0  ;;  %v5321_v10 = vld [vmem:[#allocation4 + $0x13] sm:$0xff] }
 0x4c4   : > { %v5335_v33 = vld [vmem:[#allocation4 + $0xf] sm:$0xff]  ;;  %v5324_v9 = vmax.f32 %v5316_v42, %v5320_v57  ;;  %v5263_v43 = vmax.f32 %v5251_v51, 0.0  ;;  %v8934_v36 = vpop.f32.mrb[166].mxu1  ;;  %v5325_v25 = vmax.f32 %v5317_v41, %v5321_v10  ;;  %v5336_v1 = vld [vmem:[#allocation4 + $0x17] sm:$0xff]  ;;  %v5550_v51 = vld [vmem:[#allocation4 + $0x5] sm:$0xff] }
 0x4c5   : > { %v5339_v37 = vmax.f32 %v5331_v11, %v5335_v33  ;;  %v5328_v44 = vld [vmem:[#allocation4 + $0x16] sm:$0xff]  ;;  %5276 = vst.msk [vmem:[#allocation4 + $0x48] sm:$0xff] %vm3498_vm6, %v5264_v46  ;;  %v5254_v15 = vadd.f32 %v8934_v36, %v11724_v24  ;;  %v5215_v61 = vpop.f32.mrb[167].mxu1  ;;  %v5329_v17 = vld [vmem:[#allocation4 + $0x1e] sm:$0xff]  ;;  %v5330_v0 = vld [vmem:[#allocation4 + $0x26] sm:$0x7] }
 0x4c6   : > { %v5332_v62 = vmax.f32 %v5324_v9, %v5328_v44  ;;  %v11752_v48 = vld [vmem:[#allocation4 + $0xc] sm:$0xff]  ;;  %5275 = vst.msk [vmem:[#allocation4 + $0x40] sm:$0xff] %vm3498_vm6, %v5263_v43  ;;  %v5253_v4 = vadd.f32 %v11724_v24, %v5215_v61  ;;  %v5333_v3 = vmax.f32 %v5325_v25, %v5329_v17  ;;  %v5337_v39 = vld [vmem:[#allocation4 + $0x1f] sm:$0xff]  ;;  %v5334_v49 = vmax.f32 %v5326_v34, %v5330_v0  ;;  %v5338_v12 = vld [vmem:[#allocation4 + $0x27] sm:$0x7] }
 0x4c7   : > { %8951 = vmatprep.mubr.msk.f32.mxu0 %vm3498_vm6, %v5339_v37  ;;  %v5266_v31 = vmax.f32 %v5254_v15, 0.0  ;;  %v5295_v2 = vmax.f32 %v5287_v23, %v11752_v48  ;;  %v5312_v24 = vld [vmem:[%s12202_s7 + $0x28] sm:$0xff]  ;;  %v7351_v18 = vld [vmem:[%s12202_s7 + $0x80] sm:$0xff]  ;;  %v11792_v21 = vld [vmem:[#allocation4 + $0x1c] sm:$0xff]  ;;  %v5554_v9 = vmax.f32 %v5546_v54, %v5550_v51 }
 0x4c8   : > { %v5340_v8 = vmax.f32 %v5332_v62, %v5336_v1  ;;  %v5265_v63 = vmax.f32 %v5253_v4, 0.0  ;;  %v5341_v59 = vmax.f32 %v5333_v3, %v5337_v39  ;;  %v5342_v35 = vmax.f32 %v5334_v49, %v5338_v12  ;;  %v11769_v40 = vld [vmem:[#allocation4 + $0xd] sm:$0xff]  ;;  %v5282_v58 = vld [vmem:[#allocation4 + $0x18] sm:$0x7]  ;;  %v5294_v57 = vld [vmem:[#allocation4 + $0x24] sm:$0x7] }
 0x4c9   : > { %5278 = vst.msk [vmem:[#allocation4 + $0x58] sm:$0xff] %vm3498_vm6, %v5266_v31  ;;  %v9440_v19 = vpack.c.bf16 %v5312_v24, %v5311_v32  ;;  %v5303_v47 = vmax.f32 %v5295_v2, %v11769_v40  ;;  %v5284_v20 = vld [vmem:[#allocation4 + $0x9] sm:$0xff]  ;;  %v11780_v56 = vld [vmem:[#allocation4 + $0x34] sm:$0xff]  ;;  %v11801_v10 = vld [vmem:[#allocation4 + $0x1d] sm:$0xff]  ;;  %v5555_v4 = vmax.f32 %v11752_v48, %v11769_v40 }
 0x4ca   : > { %8952 = vmatmul.mubr.msk.f32.vlgmr.msra.gmra.mrb[186].mxu0 %vm3498_vm6, %v5340_v8  ;;  %5277 = vst.msk [vmem:[#allocation4 + $0x50] sm:$0xff] %vm3498_vm6, %v5265_v63  ;;  %v11782_v5 = vld [vmem:[#allocation4 + $0x35] sm:$0xff]  ;;  %v7355_v25 = vld [vmem:[%s12202_s7 + $0xa0] sm:$0xff]  ;;  %v5302_v30 = vld [vmem:[#allocation4 + $0x25] sm:$0x7] }
 0x4cb   : > { %9435 = vmatpush3.bf16.msra.mxu0 %v11718_v28  ;;  %8954 = vmatprep.mubr.msk.f32.mxu0 %vm3498_vm6, %v5341_v59  ;;  %v5280_v28 = vld [vmem:[#allocation4 + $0x8] sm:$0xff]  ;;  %v5281_v52 = vld [vmem:[#allocation4 + $0x10] sm:$0xff]  ;;  %v6382_v53 = vmax.f32 %v11780_v56, %v11782_v5  ;;  %v5286_v7 = vld [vmem:[#allocation4 + $0x19] sm:$0x7]  ;;  %v9456_v61 = vpack.c.bf16 %v7356_v45, %v7355_v25 }
 0x4cc   : > { %9437 = vmatprep.subr.bf16.mxu0 %v9436_v6  ;;  %v5288_v29 = vmax.f32 %v5280_v28, %v5284_v20  ;;  %v5285_v50 = vld [vmem:[#allocation4 + $0x11] sm:$0xff]  ;;  %v5290_v46 = vmax.f32 %v5282_v58, %v5286_v7  ;;  %v5562_v44 = vmax.f32 %v5554_v9, %v5281_v52  ;;  %v7358_v34 = vld [vmem:[%s12202_s7 + $0xb8] sm:$0xff]  ;;  %v7363_v1 = vld [vmem:[%s12202_s7 + $0xc0] sm:$0xff] }
 0x4cd   : > { %v7352_v13 = vld [vmem:[%s12202_s7 + $0x88] sm:$0xff]  ;;  %v5289_v16 = vmax.f32 %v5281_v52, %v5285_v50  ;;  %v7353_v26 = vld [vmem:[%s12202_s7 + $0x90] sm:$0xff]  ;;  %v5560_v31 = vld [vmem:[#allocation4 + $0x20] sm:$0xff] }
 0x4ce   : > { %8955 = vmatmul.mubr.msk.f32.gmra.mrb[188].mxu0 %vm3498_vm6, %v5342_v35  ;;  %v5292_v14 = vld [vmem:[#allocation4 + $0x14] sm:$0xff]  ;;  %v9448_v27 = vpack.c.bf16 %v7352_v13, %v7351_v18  ;;  %v5298_v43 = vmax.f32 %v5290_v46, %v5294_v57  ;;  %v9452_v36 = vpack.c.bf16 %v7354_v60, %v7353_v26  ;;  %v5570_v62 = vmax.f32 %v5562_v44, %v5285_v50  ;;  %v5553_v49 = vld [vmem:[#allocation4 + $0x1d] sm:$0x7]  ;;  %v5561_v48 = vld [vmem:[#allocation4 + $0x28] sm:$0x7] }
 0x4cf   : > { %9439 = vmatpush3.bf16.msra.mxu0 %v9436_v6  ;;  %8973 = vmatprep.mubr.msk.f32.mxu0 %vm3498_vm6, %v5303_v47  ;;  %v5296_v42 = vmax.f32 %v5288_v29, %v5292_v14  ;;  %v5297_v11 = vmax.f32 %v5289_v16, %v11792_v21  ;;  %v5300_v33 = vld [vmem:[#allocation4 + $0x15] sm:$0xff]  ;;  %v7366_v24 = vld [vmem:[%s12202_s7 + $0xd8] sm:$0xff]  ;;  %v5569_v52 = vld [vmem:[#allocation4 + $0x29] sm:$0x7] }
 0x4d0   : > { %9441 = vmatprep.subr.bf16.mxu0 %v9440_v19  ;;  %v5306_v15 = vmax.f32 %v5298_v43, %v5302_v30  ;;  %v7357_v17 = vld [vmem:[%s12202_s7 + $0xb0] sm:$0xff]  ;;  %v7364_v3 = vld [vmem:[%s12202_s7 + $0xc8] sm:$0xff]  ;;  %v5556_v39 = vmax.f32 %v5292_v14, %v5300_v33  ;;  %v11834_v38 = vld [vmem:[#allocation4 + $0x24] sm:$0xff] }
 0x4d1   : > { %v5304_v41 = vmax.f32 %v5296_v42, %v5300_v33  ;;  %v5305_v37 = vmax.f32 %v5297_v11, %v11801_v10  ;;  %v9460_v0 = vpack.c.bf16 %v7358_v34, %v7357_v17  ;;  %v5567_v23 = vld [vmem:[#allocation4 + $0x19] sm:$0xff]  ;;  %v9464_v59 = vpack.c.bf16 %v7364_v3, %v7363_v1  ;;  %v7368_v29 = vld [vmem:[%s12202_s7 + $0xe8] sm:$0xff]  ;;  %v11845_v18 = vld [vmem:[#allocation4 + $0x25] sm:$0xff] }
 0x4d2   : > { %v5559_v8 = vld [vmem:[#allocation4 + $0x18] sm:$0xff]  ;;  %v5564_v2 = vmax.f32 %v5556_v39, %v5560_v31  ;;  %v7370_v58 = vld [vmem:[%s12202_s7 + $0xf8] sm:$0xff]  ;;  %v11855_v7 = vld [vmem:[#allocation4 + $0x29] sm:$0xff] }
 0x4d3   : > { %9443 = vmatpush3.bf16.msra.mxu0 %v9440_v19  ;;  %v5549_v6 = vld [vmem:[#allocation4 + $0x1c] sm:$0x7]  ;;  %v5563_v63 = vmax.f32 %v5555_v4, %v5559_v8  ;;  %v5692_v12 = vmax.f32 %v5559_v8, %v5567_v23  ;;  %v5568_v19 = vld [vmem:[#allocation4 + $0x21] sm:$0xff]  ;;  %v7376_v54 = vld [vmem:[%s12202_s7 + $0x108] sm:$0xff] }
 0x4d4   : > { %9445 = vmatprep.subr.bf16.mxu0 %v9444_v22  ;;  %v7365_v32 = vld [vmem:[%s12202_s7 + $0xd0] sm:$0xff]  ;;  %v5557_v35 = vmax.f32 %v5549_v6, %v5553_v49  ;;  %v5572_v20 = vmax.f32 %v5564_v2, %v5568_v19  ;;  %v11864_v51 = vld [vmem:[#allocation4 + $0x28] sm:$0xff]  ;;  %v5687_v26 = vld [vmem:[#allocation4 + $0x30] sm:$0x7]  ;;  %v5693_v46 = vmax.f32 %v5560_v31, %v5568_v19 }
 0x4d5   : > { %v5571_v40 = vmax.f32 %v5563_v63, %v5567_v23  ;;  %v9468_v55 = vpack.c.bf16 %v7366_v24, %v7365_v32  ;;  %v5700_v28 = vmax.f32 %v5692_v12, %v11834_v38  ;;  %v7369_v16 = vld [vmem:[%s12202_s7 + $0xf0] sm:$0xff]  ;;  %v11866_v11 = vld [vmem:[#allocation4 + $0x2c] sm:$0xff]  ;;  %v5694_v57 = vmax.f32 %v11864_v51, %v11855_v7  ;;  %v7378_v25 = vld [vmem:[%s12202_s7 + $0x118] sm:$0xff] }
 0x4d6   : > { %v5565_v47 = vmax.f32 %v5557_v35, %v5561_v48  ;;  %v9476_v42 = vpack.c.bf16 %v7370_v58, %v7369_v16  ;;  %v5691_v60 = vld [vmem:[#allocation4 + $0x31] sm:$0x7]  ;;  %v5822_v33 = vld [vmem:[#allocation4 + $0x1a] sm:$0xff]  ;;  %v5834_v34 = vld [vmem:[#allocation4 + $0x26] sm:$0xff]  ;;  %v5968_v16 = vmax.f32 %v11792_v21, %v11801_v10 }
 0x4d7   : > { %9447 = vmatpush3.bf16.msra.mxu0 %v9444_v22  ;;  %v7367_v22 = vld [vmem:[%s12202_s7 + $0xe0] sm:$0xff]  ;;  %v5708_v14 = vmax.f32 %v5700_v28, %v11845_v18  ;;  %v5826_v9 = vld [vmem:[#allocation4 + $0x1b] sm:$0xff]  ;;  %v7380_v3 = vld [vmem:[%s12202_s7 + $0x128] sm:$0xff] }
 0x4d8   : > { %9449 = vmatprep.subr.bf16.mxu0 %v9448_v27  ;;  %v5573_v50 = vmax.f32 %v5565_v47, %v5569_v52  ;;  %v9472_v13 = vpack.c.bf16 %v7368_v29, %v7367_v22  ;;  %v7377_v44 = vld [vmem:[%s12202_s7 + $0x110] sm:$0xff]  ;;  %v5830_v45 = vmax.f32 %v5822_v33, %v5826_v9  ;;  %v11878_v30 = vld [vmem:[#allocation4 + $0x2d] sm:$0xff]  ;;  %v7382_v63 = vld [vmem:[%s12202_s7 + $0x138] sm:$0xff] }
 0x4d9   : > { %v9484_v17 = vpack.c.bf16 %v7378_v25, %v7377_v44  ;;  %v7379_v1 = vld [vmem:[%s12202_s7 + $0x120] sm:$0xff]  ;;  %v5707_v23 = vld [vmem:[#allocation4 + $0x3d] sm:$0x7]  ;;  %v7392_v9 = vld [vmem:[%s12202_s7 + $0x168] sm:$0xff] }
 0x4da   : > { %8974 = vmatmul.mubr.msk.f32.vlgmr.msra.gmra.mrb[186].mxu0 %vm3498_vm6, %v5304_v41  ;;  %v5701_v41 = vmax.f32 %v5693_v46, %v11866_v11  ;;  %v5838_v4 = vmax.f32 %v5830_v45, %v5834_v34  ;;  %v5842_v8 = vld [vmem:[#allocation4 + $0x27] sm:$0xff]  ;;  %v9488_v39 = vpack.c.bf16 %v7380_v3, %v7379_v1  ;;  %v7381_v49 = vld [vmem:[%s12202_s7 + $0x130] sm:$0xff]  ;;  %v5976_v46 = vmax.f32 %v5968_v16, %v11864_v51  ;;  %v5973_v44 = vld [vmem:[#allocation4 + $0x30] sm:$0xff] }
 0x4db   : > { %8976 = vmatprep.mubr.msk.f32.mxu0 %vm3498_vm6, %v5305_v37  ;;  %9451 = vmatpush3.bf16.msra.mxu0 %v9448_v27  ;;  %v7375_v27 = vld [vmem:[%s12202_s7 + $0x100] sm:$0xff]  ;;  %v5702_v37 = vmax.f32 %v5694_v57, %v11780_v56  ;;  %v9492_v24 = vpack.c.bf16 %v7382_v63, %v7381_v49  ;;  %v5836_v29 = vld [vmem:[#allocation4 + $0x36] sm:$0xff]  ;;  %v5845_v21 = vld [vmem:[#allocation4 + $0x3f] sm:$0x7]  ;;  %v5970_v45 = vmax.f32 %v11866_v11, %v11878_v30 }
 0x4dc   : > { %9453 = vmatprep.subr.bf16.mxu0 %v9452_v36  ;;  %v9480_v43 = vpack.c.bf16 %v7376_v54, %v7375_v27  ;;  %v5846_v6 = vmax.f32 %v5838_v4, %v5842_v8  ;;  %v5828_v2 = vld [vmem:[#allocation4 + $0x2b] sm:$0xff]  ;;  %v5823_v48 = vld [vmem:[#allocation4 + $0x22] sm:$0xff]  ;;  %v5844_v54 = vld [vmem:[#allocation4 + $0x37] sm:$0xff] }
 0x4dd   : > { %v5827_v32 = vld [vmem:[#allocation4 + $0x23] sm:$0xff]  ;;  %v5835_v12 = vld [vmem:[#allocation4 + $0x2e] sm:$0xff]  ;;  %v7393_v51 = vld [vmem:[%s12202_s7 + $0x170] sm:$0xff] }
 0x4de   : > { %8977 = vmatmul.mubr.msk.f32.gmra.mrb[188].mxu0 %vm3498_vm6, %v5306_v15  ;;  %v5699_v15 = vld [vmem:[#allocation4 + $0x3c] sm:$0x7]  ;;  %v7387_v35 = vld [vmem:[%s12202_s7 + $0x140] sm:$0xff]  ;;  %v5831_v47 = vmax.f32 %v5823_v48, %v5827_v32  ;;  %v7400_v25 = vld [vmem:[%s12202_s7 + $0x188] sm:$0xff] }
 0x4df   : > { %9455 = vmatpush3.bf16.msra.mxu0 %v9452_v36  ;;  %8995 = vmatprep.mubr.msk.f32.mxu0 %vm3498_vm6, %v5570_v62  ;;  %v5695_v36 = vmax.f32 %v5687_v26, %v5691_v60  ;;  %v7391_v33 = vld [vmem:[%s12202_s7 + $0x160] sm:$0xff]  ;;  %v5981_v34 = vld [vmem:[#allocation4 + $0x31] sm:$0xff]  ;;  %v5975_v3 = vld [vmem:[#allocation4 + $0x40] sm:$0x7] }
 0x4e0   : > { %9457 = vmatprep.subr.bf16.mxu0 %v9456_v61  ;;  %v5839_v28 = vmax.f32 %v5831_v47, %v5835_v12  ;;  %v5974_v4 = vld [vmem:[#allocation4 + $0x38] sm:$0xff]  ;;  %v7402_v11 = vld [vmem:[%s12202_s7 + $0x198] sm:$0xff]  ;;  %v6105_v16 = vld [vmem:[#allocation4 + $0x49] sm:$0x7] }
 0x4e1   : > { %v5703_v62 = vmax.f32 %v5695_v36, %v5699_v15  ;;  %v7394_v36 = vld [vmem:[%s12202_s7 + $0x178] sm:$0xff]  ;;  %v5969_v15 = vmax.f32 %v11834_v38, %v11845_v18  ;;  %v5978_v1 = vmax.f32 %v5970_v45, %v5974_v4  ;;  %v6121_v45 = vld [vmem:[#allocation4 + $0x55] sm:$0x7] }
 0x4e2   : > { %v11946_v18 = vld [vmem:[#allocation4 + $0x3c] sm:$0xff] }
 0x4e3   : > { %9459 = vmatpush3.bf16.msra.mxu0 %v9456_v61  ;;  %v5709_v61 = vmax.f32 %v5701_v41, %v11878_v30  ;;  %v5711_v31 = vmax.f32 %v5703_v62, %v5707_v23  ;;  %v9504_v41 = vpack.c.bf16 %v7392_v9, %v7391_v33  ;;  %v5967_v62 = vld [vmem:[#allocation4 + $0x35] sm:$0x7]  ;;  %v7401_v23 = vld [vmem:[%s12202_s7 + $0x190] sm:$0xff]  ;;  %v5983_v48 = vld [vmem:[#allocation4 + $0x41] sm:$0x7] }
 0x4e4   : > { %9461 = vmatprep.subr.bf16.mxu0 %v9460_v0  ;;  %v5982_v30 = vld [vmem:[#allocation4 + $0x39] sm:$0xff] }
 0x4e5   : > { %v5986_v49 = vmax.f32 %v5978_v1, %v5982_v30  ;;  %v6248_v9 = vld [vmem:[#allocation4 + $0x3e] sm:$0xff] }
 0x4e6   : > { %v6241_v1 = vld [vmem:[#allocation4 + $0x3b] sm:$0xff] }
 0x4e7   : > { %9463 = vmatpush3.bf16.msra.mxu0 %v9460_v0  ;;  %v5710_v0 = vmax.f32 %v5702_v37, %v11782_v5  ;;  %v9508_v37 = vpack.c.bf16 %v7394_v36, %v7393_v51  ;;  %v7429_v5 = vld [vmem:[%s12202_s7 + $0x230] sm:$0xff] }
 0x4e8   : > { %9465 = vmatprep.subr.bf16.mxu0 %v9464_v59 }
 0x4ea   : > { %8996 = vmatmul.mubr.msk.f32.vlgmr.msra.gmra.mrb[186].mxu0 %vm3498_vm6, %v5571_v40  ;;  %v7388_v40 = vld [vmem:[%s12202_s7 + $0x148] sm:$0xff] }
 0x4eb   : > { %8998 = vmatprep.mubr.msk.f32.mxu0 %vm3498_vm6, %v5572_v20  ;;  %9467 = vmatpush3.bf16.msra.mxu0 %v9464_v59  ;;  %v5824_v59 = vld [vmem:[#allocation4 + $0x2a] sm:$0xff]  ;;  %v5829_v20 = vld [vmem:[#allocation4 + $0x33] sm:$0x7]  ;;  %v9496_v22 = vpack.c.bf16 %v7388_v40, %v7387_v35  ;;  %v7405_v40 = vld [vmem:[%s12202_s7 + $0x1b0] sm:$0xff] }
 0x4ec   : > { %9469 = vmatprep.subr.bf16.mxu0 %v9468_v55  ;;  %v5832_v19 = vmax.f32 %v5824_v59, %v5828_v2  ;;  %v7403_v59 = vld [vmem:[%s12202_s7 + $0x1a0] sm:$0xff]  ;;  %v7404_v2 = vld [vmem:[%s12202_s7 + $0x1a8] sm:$0xff] }
 0x4ed   : > { %v9520_v12 = vpack.c.bf16 %v7404_v2, %v7403_v59 }
 0x4ee   : > { %8999 = vmatmul.mubr.msk.f32.gmra.mrb[188].mxu0 %vm3498_vm6, %v5573_v50  ;;  %v5840_v52 = vmax.f32 %v5832_v19, %v5836_v29  ;;  %v5837_v50 = vld [vmem:[#allocation4 + $0x3e] sm:$0x7]  ;;  %v7412_v29 = vld [vmem:[%s12202_s7 + $0x1c8] sm:$0xff] }
 0x4ef   : > { %9471 = vmatpush3.bf16.msra.mxu0 %v9468_v55  ;;  %9017 = vmatprep.mubr.msk.f32.mxu0 %vm3498_vm6, %v5708_v14  ;;  %v5825_v55 = vld [vmem:[#allocation4 + $0x32] sm:$0x7]  ;;  %v7390_v14 = vld [vmem:[%s12202_s7 + $0x158] sm:$0xff] }
 0x4f0   : > { %9473 = vmatprep.subr.bf16.mxu0 %v9472_v13  ;;  %v5833_v58 = vmax.f32 %v5825_v55, %v5829_v20  ;;  %v5848_v60 = vmax.f32 %v5840_v52, %v5844_v54  ;;  %v7406_v19 = vld [vmem:[%s12202_s7 + $0x1b8] sm:$0xff]  ;;  %v6107_v55 = vmax.f32 %v5974_v4, %v5982_v30  ;;  %v6112_v52 = vld [vmem:[#allocation4 + $0x4c] sm:$0xff] }
 0x4f1   : > { %v9524_v47 = vpack.c.bf16 %v7406_v19, %v7405_v40  ;;  %v11968_v20 = vld [vmem:[#allocation4 + $0x40] sm:$0xff]  ;;  %v6240_v54 = vld [vmem:[#allocation4 + $0x33] sm:$0xff] }
 0x4f2   : > { %v5841_v57 = vmax.f32 %v5833_v58, %v5837_v50  ;;  %v11978_v50 = vld [vmem:[#allocation4 + $0x44] sm:$0xff]  ;;  %v6237_v4 = vld [vmem:[#allocation4 + $0x3a] sm:$0xff] }
 0x4f3   : > { %9475 = vmatpush3.bf16.msra.mxu0 %v9472_v13  ;;  %v7389_v13 = vld [vmem:[%s12202_s7 + $0x150] sm:$0xff]  ;;  %v6115_v58 = vmax.f32 %v6107_v55, %v11978_v50  ;;  %v6242_v30 = vld [vmem:[#allocation4 + $0x43] sm:$0xff]  ;;  %v6258_v55 = vld [vmem:[#allocation4 + $0x4f] sm:$0xff] }
 0x4f4   : > { %9477 = vmatprep.subr.bf16.mxu0 %v9476_v42  ;;  %v9500_v26 = vpack.c.bf16 %v7390_v14, %v7389_v13  ;;  %v5849_v10 = vmax.f32 %v5841_v57, %v5845_v21  ;;  %v6101_v14 = vld [vmem:[#allocation4 + $0x48] sm:$0x7] }
 0x4f5   : > { %v6109_v33 = vmax.f32 %v6101_v14, %v6105_v16  ;;  %v11989_v21 = vld [vmem:[#allocation4 + $0x45] sm:$0xff]  ;;  %v7428_v16 = vld [vmem:[%s12202_s7 + $0x228] sm:$0xff] }
 0x4f6   : > { %v6257_v19 = vld [vmem:[#allocation4 + $0x47] sm:$0xff] }
 0x4f7   : > { %9479 = vmatpush3.bf16.msra.mxu0 %v9476_v42  ;;  %v5843_v42 = vld [vmem:[#allocation4 + $0x2f] sm:$0xff] }
 0x4f8   : > { %9481 = vmatprep.subr.bf16.mxu0 %v9480_v43  ;;  %v5847_v27 = vmax.f32 %v5839_v28, %v5843_v42  ;;  %v11970_v28 = vld [vmem:[#allocation4 + $0x41] sm:$0xff] }
 0x4f9   : > { %v6108_v13 = vmax.f32 %v11968_v20, %v11970_v28  ;;  %v7427_v14 = vld [vmem:[%s12202_s7 + $0x220] sm:$0xff] }
 0x4fa   : > { %9018 = vmatmul.mubr.msk.f32.vlgmr.msra.gmra.mrb[186].mxu0 %vm3498_vm6, %v5709_v61  ;;  %v5963_v61 = vld [vmem:[#allocation4 + $0x34] sm:$0x7] }
 0x4fb   : > { %9020 = vmatprep.mubr.msk.f32.mxu0 %vm3498_vm6, %v5710_v0  ;;  %9483 = vmatpush3.bf16.msra.mxu0 %v9480_v43  ;;  %v5984_v43 = vmax.f32 %v5976_v46, %v11855_v7  ;;  %v7399_v7 = vld [vmem:[%s12202_s7 + $0x180] sm:$0xff]  ;;  %v5971_v38 = vmax.f32 %v5963_v61, %v5967_v62  ;;  %v6116_v57 = vmax.f32 %v6108_v13, %v6112_v52  ;;  %v7414_v46 = vld [vmem:[%s12202_s7 + $0x1d8] sm:$0xff] }
 0x4fc   : > { %9485 = vmatprep.subr.bf16.mxu0 %v9484_v17  ;;  %v9512_v0 = vpack.c.bf16 %v7400_v25, %v7399_v7  ;;  %v7415_v7 = vld [vmem:[%s12202_s7 + $0x1e0] sm:$0xff]  ;;  %v7416_v25 = vld [vmem:[%s12202_s7 + $0x1e8] sm:$0xff]  ;;  %v6256_v61 = vld [vmem:[#allocation4 + $0x3f] sm:$0xff]  ;;  %v6390_v13 = vmax.f32 %v6382_v53, %v11968_v20 }
 0x4fd   : > { %v9536_v62 = vpack.c.bf16 %v7416_v25, %v7415_v7  ;;  %v7430_v53 = vld [vmem:[%s12202_s7 + $0x238] sm:$0xff] }
 0x4fe   : > { %9021 = vmatmul.mubr.msk.f32.gmra.mrb[188].mxu0 %vm3498_vm6, %v5711_v31  ;;  %v6106_v31 = vmax.f32 %v5973_v44, %v5981_v34  ;;  %v6398_v56 = vmax.f32 %v6390_v13, %v11970_v28  ;;  %v9556_v20 = vpack.c.bf16 %v7430_v53, %v7429_v5  ;;  %v6527_v28 = vld [vmem:[%s12204_s9] sm:$0xff] }
 0x4ff   : > { %9487 = vmatpush3.bf16.msra.mxu0 %v9484_v17  ;;  %9039 = vmatprep.mubr.msk.f32.mxu0 %vm3498_vm6, %v5846_v6  ;;  %v5977_v17 = vmax.f32 %v5969_v15, %v5973_v44  ;;  %v9516_v6 = vpack.c.bf16 %v7402_v11, %v7401_v23  ;;  %v6245_v23 = vmax.f32 %v6237_v4, %v6241_v1  ;;  %v6238_v11 = vld [vmem:[#allocation4 + $0x42] sm:$0xff] }
 0x500   : > { %9489 = vmatprep.subr.bf16.mxu0 %v9488_v39  ;;  %v6114_v63 = vmax.f32 %v6106_v31, %v11946_v18  ;;  %v7424_v31 = vld [vmem:[%s12202_s7 + $0x208] sm:$0xff]  ;;  %v6535_v1 = vld [vmem:[%s12204_s9 + $0x40] sm:$0xff] }
 0x501   : > { %v5985_v8 = vmax.f32 %v5977_v17, %v5981_v34  ;;  %v7417_v17 = vld [vmem:[%s12202_s7 + $0x1f0] sm:$0xff]  ;;  %v6653_v13 = vld [vmem:[%s12206_s11] sm:$0xff] }
 0x503   : > { %9491 = vmatpush3.bf16.msra.mxu0 %v9488_v39  ;;  %v5979_v39 = vmax.f32 %v5971_v38, %v5975_v3  ;;  %v7423_v38 = vld [vmem:[%s12202_s7 + $0x200] sm:$0xff] }
 0x504   : > { %9493 = vmatprep.subr.bf16.mxu0 %v9492_v24  ;;  %v9544_v2 = vpack.c.bf16 %v7424_v31, %v7423_v38  ;;  %v6539_v31 = vld [vmem:[%s12204_s9 + $0x60] sm:$0xff] }
 0x505   : > { %v5987_v32 = vmax.f32 %v5979_v39, %v5983_v48  ;;  %v6249_v39 = vld [vmem:[#allocation4 + $0x46] sm:$0xff] }
 0x506   : > { %v6253_v59 = vmax.f32 %v6245_v23, %v6249_v39 }
 0x507   : > { %9495 = vmatpush3.bf16.msra.mxu0 %v9492_v24  ;;  %v11957_v24 = vld [vmem:[#allocation4 + $0x3d] sm:$0xff] }
 0x508   : > { %9497 = vmatprep.subr.bf16.mxu0 %v9496_v22  ;;  %v6122_v35 = vmax.f32 %v6114_v63, %v11957_v24  ;;  %v6243_v63 = vld [vmem:[#allocation4 + $0x4b] sm:$0x7] }
 0x50a   : > { %9040 = vmatmul.mubr.msk.f32.vlgmr.msra.gmra.mrb[186].mxu0 %vm3498_vm6, %v5847_v27  ;;  %v6236_v27 = vld [vmem:[#allocation4 + $0x32] sm:$0xff] }
 0x50b   : > { %9042 = vmatprep.mubr.msk.f32.mxu0 %vm3498_vm6, %v5848_v60  ;;  %9499 = vmatpush3.bf16.msra.mxu0 %v9496_v22  ;;  %v7411_v22 = vld [vmem:[%s12202_s7 + $0x1c0] sm:$0xff]  ;;  %v7413_v60 = vld [vmem:[%s12202_s7 + $0x1d0] sm:$0xff] }
 0x50c   : > { %9501 = vmatprep.subr.bf16.mxu0 %v9500_v26  ;;  %v9528_v42 = vpack.c.bf16 %v7412_v29, %v7411_v22  ;;  %v9532_v36 = vpack.c.bf16 %v7414_v46, %v7413_v60  ;;  %v6387_v60 = vld [vmem:[#allocation4 + $0x48] sm:$0xff]  ;;  %v6384_v46 = vmax.f32 %v11978_v50, %v11989_v21  ;;  %v6396_v50 = vld [vmem:[#allocation4 + $0x51] sm:$0xff] }
 0x50e   : > { %9043 = vmatmul.mubr.msk.f32.gmra.mrb[188].mxu0 %vm3498_vm6, %v5849_v10  ;;  %v6244_v10 = vmax.f32 %v6236_v27, %v6240_v54  ;;  %v9552_v27 = vpack.c.bf16 %v7428_v16, %v7427_v14  ;;  %v6383_v54 = vmax.f32 %v11946_v18, %v11957_v24  ;;  %v6654_v14 = vld [vmem:[%s12206_s11 + $0x8] sm:$0xff] }
 0x50f   : > { %9503 = vmatpush3.bf16.msra.mxu0 %v9500_v26  ;;  %9061 = vmatprep.mubr.msk.f32.mxu0 %vm3498_vm6, %v5984_v43  ;;  %v6113_v26 = vld [vmem:[#allocation4 + $0x54] sm:$0x7]  ;;  %v9593_v16 = vpack.c.bf16 %v6654_v14, %v6653_v13 }
 0x510   : > { %9505 = vmatprep.subr.bf16.mxu0 %v9504_v41  ;;  %v6120_v43 = vld [vmem:[#allocation4 + $0x4d] sm:$0xff]  ;;  %v6117_v51 = vmax.f32 %v6109_v33, %v6113_v26  ;;  %v6252_v44 = vmax.f32 %v6244_v10, %v6248_v9  ;;  %v6391_v10 = vmax.f32 %v6383_v54, %v6387_v60 }
 0x511   : > { %v6388_v26 = vld [vmem:[#allocation4 + $0x50] sm:$0xff]  ;;  %v6377_v33 = vld [vmem:[#allocation4 + $0x4c] sm:$0x7]  ;;  %9594 = vmatpush3.bf16.msra.mxu1 %v9593_v16 }
 0x512   : > { %v6125_v15 = vmax.f32 %v6117_v51, %v6121_v45  ;;  %v6260_v34 = vmax.f32 %v6252_v44, %v6256_v61  ;;  %v6381_v9 = vld [vmem:[#allocation4 + $0x4d] sm:$0x7]  ;;  %v6392_v24 = vmax.f32 %v6384_v46, %v6388_v26  ;;  %v6529_v51 = vld [vmem:[%s12204_s9 + $0x10] sm:$0xff] }
 0x513   : > { %9507 = vmatpush3.bf16.msra.mxu0 %v9504_v41  ;;  %v6123_v41 = vmax.f32 %v6115_v58, %v11989_v21  ;;  %v6259_v58 = vld [vmem:[#allocation4 + $0x57] sm:$0x7]  ;;  %v6531_v45 = vld [vmem:[%s12204_s9 + $0x20] sm:$0xff] }
 0x514   : > { %9509 = vmatprep.subr.bf16.mxu0 %v9508_v37  ;;  %v6400_v25 = vmax.f32 %v6392_v24, %v6396_v50  ;;  %v6397_v61 = vld [vmem:[#allocation4 + $0x59] sm:$0x7] }
 0x517   : > { %9511 = vmatpush3.bf16.msra.mxu0 %v9508_v37  ;;  %v6124_v37 = vmax.f32 %v6116_v57, %v6120_v43  ;;  %v6528_v57 = vld [vmem:[%s12204_s9 + $0x8] sm:$0xff]  ;;  %v6389_v43 = vld [vmem:[#allocation4 + $0x58] sm:$0x7] }
 0x518   : > { %9513 = vmatprep.subr.bf16.mxu0 %v9512_v0  ;;  %v9560_v18 = vpack.c.bf16 %v6528_v57, %v6527_v28 }
 0x51a   : > { %9062 = vmatmul.mubr.msk.f32.vlgmr.msra.gmra.mrb[186].mxu0 %vm3498_vm6, %v5985_v8  ;;  %v6250_v8 = vld [vmem:[#allocation4 + $0x4e] sm:$0xff] }
 0x51b   : > { %9064 = vmatprep.mubr.msk.f32.mxu0 %vm3498_vm6, %v5986_v49  ;;  %9515 = vmatpush3.bf16.msra.mxu0 %v9512_v0  ;;  %v7418_v0 = vld [vmem:[%s12202_s7 + $0x1f8] sm:$0xff]  ;;  %v6239_v49 = vld [vmem:[#allocation4 + $0x4a] sm:$0x7] }
 0x51c   : > { %9517 = vmatprep.subr.bf16.mxu0 %v9516_v6  ;;  %v9540_v3 = vpack.c.bf16 %v7418_v0, %v7417_v17  ;;  %v6247_v40 = vmax.f32 %v6239_v49, %v6243_v63  ;;  %v6534_v0 = vld [vmem:[%s12204_s9 + $0x38] sm:$0xff] }
 0x51d   : > { %v6542_v49 = vld [vmem:[%s12204_s9 + $0x78] sm:$0xff] }
 0x51e   : > { %9065 = vmatmul.mubr.msk.f32.gmra.mrb[188].mxu0 %vm3498_vm6, %v5987_v32  ;;  %v6251_v32 = vld [vmem:[#allocation4 + $0x56] sm:$0x7] }
 0x51f   : > { %9519 = vmatpush3.bf16.msra.mxu0 %v9516_v6  ;;  %9083 = vmatprep.mubr.msk.f32.mxu0 %vm3498_vm6, %v6122_v35  ;;  %v6246_v6 = vmax.f32 %v6238_v11, %v6242_v30  ;;  %v7426_v35 = vld [vmem:[%s12202_s7 + $0x218] sm:$0xff]  ;;  %v6255_v22 = vmax.f32 %v6247_v40, %v6251_v32  ;;  %v6537_v11 = vld [vmem:[%s12204_s9 + $0x50] sm:$0xff] }
 0x520   : > { %9521 = vmatprep.subr.bf16.mxu0 %v9520_v12  ;;  %v6538_v30 = vld [vmem:[%s12204_s9 + $0x58] sm:$0xff] }
 0x521   : > { %v6254_v48 = vmax.f32 %v6246_v6, %v6250_v8  ;;  %v9580_v38 = vpack.c.bf16 %v6538_v30, %v6537_v11  ;;  %v6540_v8 = vld [vmem:[%s12204_s9 + $0x68] sm:$0xff]  ;;  %v6541_v6 = vld [vmem:[%s12204_s9 + $0x70] sm:$0xff] }
 0x522   : > { %v9584_v39 = vpack.c.bf16 %v6540_v8, %v6539_v31  ;;  %v9588_v63 = vpack.c.bf16 %v6542_v49, %v6541_v6 }
 0x523   : > { %9523 = vmatpush3.bf16.msra.mxu0 %v9520_v12  ;;  %v7425_v12 = vld [vmem:[%s12202_s7 + $0x210] sm:$0xff]  ;;  %v6262_v52 = vmax.f32 %v6254_v48, %v6258_v55 }
 0x524   : > { %9525 = vmatprep.subr.bf16.mxu0 %v9524_v47  ;;  %v9548_v29 = vpack.c.bf16 %v7426_v35, %v7425_v12 }
 0x527   : > { %9527 = vmatpush3.bf16.msra.mxu0 %v9524_v47  ;;  %v6261_v47 = vmax.f32 %v6253_v59, %v6257_v19  ;;  %v7435_v59 = vld [vmem:[%s12203_s8] ss:$0 sm:$0xff] }
 0x528   : > { %9529 = vmatprep.subr.bf16.mxu0 %v9528_v42 }
 0x52a   : > { %9084 = vmatmul.mubr.msk.f32.vlgmr.msra.gmra.mrb[186].mxu0 %vm3498_vm6, %v6123_v41  ;;  %v6395_v41 = vld [vmem:[#allocation4 + $0x49] sm:$0xff] }
 0x52b   : > { %9086 = vmatprep.mubr.msk.f32.mxu0 %vm3498_vm6, %v6124_v37  ;;  %9531 = vmatpush3.bf16.msra.mxu0 %v9528_v42  ;;  %v6263_v42 = vmax.f32 %v6255_v22, %v6259_v58  ;;  %v6385_v37 = vmax.f32 %v6377_v33, %v6381_v9  ;;  %v6399_v44 = vmax.f32 %v6391_v10, %v6395_v41  ;;  %v7436_v58 = vld [vmem:[%s12205_s10] ss:$0 sm:$0xff] }
 0x52c   : > { %9533 = vmatprep.subr.bf16.mxu0 %v9532_v36 }
 0x52d   : > { %v6393_v21 = vmax.f32 %v6385_v37, %v6389_v43 }
 0x52e   : > { %9087 = vmatmul.mubr.msk.f32.gmra.mrb[188].mxu0 %vm3498_vm6, %v6125_v15  ;;  %v6532_v15 = vld [vmem:[%s12204_s9 + $0x28] sm:$0xff] }
 0x52f   : > { %9535 = vmatpush3.bf16.msra.mxu0 %v9532_v36  ;;  %9105 = vmatprep.mubr.msk.f32.mxu0 %vm3498_vm6, %v6260_v34  ;;  %v6530_v36 = vld [vmem:[%s12204_s9 + $0x18] sm:$0xff]  ;;  %v9568_v17 = vpack.c.bf16 %v6532_v15, %v6531_v45  ;;  %v6533_v34 = vld [vmem:[%s12204_s9 + $0x30] sm:$0xff] }
 0x530   : > { %9537 = vmatprep.subr.bf16.mxu0 %v9536_v62  ;;  %v9564_v7 = vpack.c.bf16 %v6530_v36, %v6529_v51  ;;  %v9572_v4 = vpack.c.bf16 %v6534_v0, %v6533_v34 }
 0x533   : > { %9539 = vmatpush3.bf16.msra.mxu0 %v9536_v62  ;;  %v6401_v62 = vmax.f32 %v6393_v21, %v6397_v61 }
 0x534   : > { %9541 = vmatprep.subr.bf16.mxu0 %v9540_v3 }
 0x537   : > { %9543 = vmatpush3.bf16.msra.mxu0 %v9540_v3  ;;  %v6536_v3 = vld [vmem:[%s12204_s9 + $0x48] sm:$0xff] }
 0x538   : > { %9545 = vmatprep.subr.bf16.mxu0 %v9544_v2  ;;  %v9576_v23 = vpack.c.bf16 %v6536_v3, %v6535_v1 }
 0x53a   : > { %9106 = vmatmul.mubr.msk.f32.vlgmr.msra.gmra.mrb[186].mxu0 %vm3498_vm6, %v6261_v47 }
 0x53b   : > { %9108 = vmatprep.mubr.msk.f32.mxu0 %vm3498_vm6, %v6262_v52  ;;  %9547 = vmatpush3.bf16.msra.mxu0 %v9544_v2 }
 0x53c   : > { %9549 = vmatprep.subr.bf16.mxu0 %v9548_v29 }
 0x53e   : > { %9109 = vmatmul.mubr.msk.f32.gmra.mrb[188].mxu0 %vm3498_vm6, %v6263_v42 }
 0x53f   : > { %9551 = vmatpush3.bf16.msra.mxu0 %v9548_v29  ;;  %9127 = vmatprep.mubr.msk.f32.mxu0 %vm3498_vm6, %v6398_v56 }
 0x540   : > { %9553 = vmatprep.subr.bf16.mxu0 %v9552_v27 }
 0x543   : > { %9555 = vmatpush3.bf16.msra.mxu0 %v9552_v27 }
 0x544   : > { %9557 = vmatprep.subr.bf16.mxu0 %v9556_v20 }
 0x547   : > { %9559 = vmatpush3.bf16.msra.mxu0 %v9556_v20 }
 0x548   : > { %9561 = vmatprep.subr.bf16.mxu0 %v9560_v18 }
 0x54a   : > { %9128 = vmatmul.mubr.msk.f32.vlgmr.msra.gmra.mrb[186].mxu0 %vm3498_vm6, %v6399_v44 }
 0x54b   : > { %9130 = vmatprep.mubr.msk.f32.mxu0 %vm3498_vm6, %v6400_v25  ;;  %9563 = vmatpush3.bf16.msra.mxu0 %v9560_v18  ;;  %v6655_v18 = vld [vmem:[%s12207_s12] sm:$0x1] }
 0x54c   : > { %9565 = vmatprep.subr.bf16.mxu0 %v9564_v7 }
 0x54e   : > { %9131 = vmatmul.mubr.msk.f32.gmra.mrb[188].mxu0 %vm3498_vm6, %v6401_v62 }
 0x54f   : > { %9567 = vmatpush3.bf16.msra.mxu0 %v9564_v7 }
 0x550   : > { %9569 = vmatprep.subr.bf16.mxu0 %v9568_v17 }
 0x553   : > { %9571 = vmatpush3.bf16.msra.mxu0 %v9568_v17 }
 0x554   : > { %9573 = vmatprep.subr.bf16.mxu0 %v9572_v4 }
 0x557   : > { %9575 = vmatpush3.bf16.msra.mxu0 %v9572_v4 }
 0x558   : > { %9577 = vmatprep.subr.bf16.mxu0 %v9576_v23 }
 0x55b   : > { %9579 = vmatpush3.bf16.msra.mxu0 %v9576_v23 }
 0x55c   : > { %9581 = vmatprep.subr.bf16.mxu0 %v9580_v38 }
 0x55f   : > { %9583 = vmatpush3.bf16.msra.mxu0 %v9580_v38 }
 0x560   : > { %9585 = vmatprep.subr.bf16.mxu0 %v9584_v39 }
 0x563   : > { %9587 = vmatpush3.bf16.msra.mxu0 %v9584_v39 }
 0x564   : > { %9589 = vmatprep.subr.bf16.mxu0 %v9588_v63 }
 0x567   : > { %9591 = vmatpush3.bf16.msra.mxu0 %v9588_v63 }
 0x61d   : > { %v9129_v2 = vpop.f32.mrb[186].mxu0 }
 0x61e   : > { %v6520_v48 = vadd.f32 %v9129_v2, %v7435_v59  ;;  %v6489_v32 = vpop.f32.mrb[187].mxu0 }
 0x61f   : > { %v6519_v12 = vadd.f32 %v7435_v59, %v6489_v32 }
 0x620   : > { %v6524_v19 = vmax.f32 %v6520_v48, 0.0 }
 0x621   : > { %v6523_v35 = vmax.f32 %v6519_v12, 0.0  ;;  %v9132_v40 = vpop.f32.mrb[188].mxu0 }
 0x622   : > { %v6522_v47 = vadd.f32 %v9132_v40, %v7435_v59  ;;  %v6499_v55 = vpop.f32.mrb[189].mxu0 }
 0x623   : > { %v6521_v22 = vadd.f32 %v7435_v59, %v6499_v55  ;;  %9165 = vmatprep.mubr.f32.mxu0 %v6523_v35 }
 0x624   : > { %9166 = vmatmul.mubr.f32.vlgmr.msra.gmra.mrb[190].mxu0 %v6524_v19  ;;  %v6526_v52 = vmax.f32 %v6522_v47, 0.0 }
 0x625   : > { %v6525_v29 = vmax.f32 %v6521_v22, 0.0 }
 0x627   : > { %9168 = vmatprep.mubr.f32.mxu0 %v6525_v29 }
 0x628   : > { %9169 = vmatmul.mubr.f32.gmra.mrb[192].mxu0 %v6526_v52 }
 0x6f7   : > { %v9167_v42 = vpop.f32.mrb[190].mxu0 }
 0x6f8   : > { %v6616_v27 = vpop.f32.mrb[191].mxu0 }
 0x6f9   : > { %v6617_v56 = vadd.f32 %v7436_v58, %v6616_v27 }
 0x6fb   : > { %v6635_v5 = vmax.f32 %v6617_v56, 0.0  ;;  %v9170_v53 = vpop.f32.mrb[192].mxu0 }
 0x6fc   : > { %v6632_v20 = vadd.f32 %v9170_v53, %v7436_v58  ;;  %v6626_v54 = vpop.f32.mrb[193].mxu0 }
 0x6fd   : > { %6640 = vst.msk [vmem:[#allocation5] sm:$0xff] %vm6639_vm7, %v6635_v5 }
 0x6fe   : > { %v6638_v28 = vmax.f32 %v6632_v20, 0.0 }
 0x700   : > { %6644 = vst.msk [vmem:[#allocation5 + $0x18] sm:$0x7] %vm6643_vm8, %v6638_v28 }
 0x704   : > { %v6645_v57 = vld [vmem:[#allocation5] sm:$0x1]  ;;  %v6646_v26 = vld [vmem:[#allocation5 + $0x2] sm:$0x1] }
 0x705   : > { %v6647_v60 = vadd.f32 %v6646_v26, %v6645_v57 }
 0x707   : > { %v6648_v46 = vld [vmem:[#allocation5 + $0x18] sm:$0x1]  ;;  %v6650_v9 = vld [vmem:[#allocation5 + $0x1a] sm:$0x1] }
 0x708   : > { %v6649_v33 = vadd.f32 %v6648_v46, %v6647_v60 }
 0x70a   : > { %v6651_v10 = vadd.f32 %v6650_v9, %v6649_v33 }
 0x70c   : > { %v6652_v41 = vmul.f32 0.25, %v6651_v10 }
 0x70e   : > { %9176 = vmatmul.mubr.msk.f32.vlgmr.msra.gmra.mrb[168].mxu1 %vm6639_vm7, %v6652_v41  ;;  %6744 = vst.msk [vmem:[%s469_s28] sm:$0x1] %vm6743_vm9, %v6652_v41 }
 0x7e1   : > { %v6725_v24 = vpop.f32.mrb[168].mxu1 }
 0x7e2   : > { %v6726_v43 = vadd.f32 %v6725_v24, %v6655_v18  ;;  %v9177_v51 = vpop.f32.mrb[169].mxu1 }
 0x7e4   : > { %v6730_v36 = vsel %vm6729_vm10, %v6726_v43, -inf }
 0x7e5   : > { %6731 = vmax.xlane.f32.xlu0 %v6730_v36 }
 0x872   : > { %v6732_v37 = vpop.xlane.xlu0 %6731 }
 0x873   : > { %v6733_v44 = vsub.f32 %v6726_v43, %v6732_v37 }
 0x875   : > { %v6734_v50 = vmul.f32 1.442695, %v6733_v44 }
 0x877   : > { %9772 = vpow2.f32 %v6734_v50 }
 0x881   : > { %v9773_v21 = vpop.eup %9772 }
 0x882   : > { %v6736_v7 = vsel %vm6729_vm10, %v9773_v21, 0.0 }
 0x883   : > { %6737 = vadd.xlane.f32.xlu0 %v6736_v7 }
 0x884   : > { %9789 = shalt.err (!%p9786_p3)
}
 0x885   : > { %s9790_s28 = scalar_lea.hbm %s12125_s22, 16  ;;  %s9794_s1 = scalar_lea.hbm %s12209_s14, 32 }
 0x886   : > { %p9791_p4 = scmp.ne.s32.totalorder %s12125_s22, %s9790_s28  ;;  %p9795_p9 = scmp.lt.u32.totalorder %s12125_s22, %s12209_s14 }
 0x887   : > { %p9796_p10 = scmp.lt.u32.totalorder %s9794_s1, %s9790_s28  ;;  %p9798_p12 = scmp.lt.u32.totalorder %s9790_s28, %s12125_s22 }
 0x888   : > { %p9792_p7 = pnand %p9791_p4, %p9991_p5 }
 0x889   : > { %p9797_p11 = por %p9796_p10, %p9795_p9 }
 0x88a   : > { %p9793_p8 = pneg %p9792_p7 }
 0x88b   : > { %p9799_p13 = por %p9798_p12, %p9797_p11 }
 0x88d   : > { %p9800_p0 = pnand %p9799_p13, %p9793_p8 }
 0x88f   : > { %9803 = shalt.err (!%p9800_p0)
}
 0x890   : > { %9725 = dma.vmem_to_hbm [thread:$0]  (%p9991_p5), %s6776_s18, 16, %s12125_s22, %s6750_s20  }
 0x891   : > { %s463_s0 = scalar_lea.vmem [#allocation6], %s12110_s27  ;;  %s12227_s21 = sshll.u32 %s9974_s17, 4 }
 0x892   : > { %s6762_s3 = sshll.u32 %s463_s0, 4  ;;  %s12151_s26 = scalar_lea.hbm %s12208_s13, %s12227_s21  ;;  %s12153_s3 = int_to_ptr.vmem [resolvable:$true] %s6762_s3 }
 0x893   : > { %s6746_s22 = scalar_lea.sflag [#allocation7], %s12110_s27  ;;  %s9804_s18 = scalar_lea.vmem %s12153_s3, 16 }
 0x894   : > { %p9805_p1 = scmp.ne.s32.totalorder %s12153_s3, %s9804_s18  ;;  %s9877_s20 = smov [#allocation6]  }
 0x895   : > { %s9808_s17 = sshll.u32 %s9877_s20, 4  ;;  %s9809_s17 = int_to_ptr.vmem [resolvable:$false] %s9808_s17 }
 0x896   : > { %p9806_p2 = pnand %p9805_p1, %p9991_p5  ;;  %s9810_s1 = scalar_lea.vmem %s9809_s17, 32 }
 0x897   : > { %p9811_p4 = scmp.lt.s32.totalorder %s12153_s3, %s9809_s17  ;;  %p9812_p7 = scmp.lt.s32.totalorder %s9810_s1, %s9804_s18 }
 0x898   : > { %p9807_p3 = pneg %p9806_p2 }
 0x899   : > { %p9813_p8 = por %p9812_p7, %p9811_p4 }
 0x89b   : > { %p9814_p9 = pnand %p9813_p8, %p9807_p3 }
 0x910   : > { %v6738_v25 = vpop.xlane.xlu0 %6737 }
 0x911   : > { %9774 = vlog2.f32 %v6738_v25 }
 0x91b   : > { %v9775_v45 = vpop.eup %9774 }
 0x91c   : > { %v6740_v15 = vmul.f32 0.6931472, %v9775_v45 }
 0x91e   : > { %v6741_v61 = vsub.f32 %v6733_v44, %v6740_v15 }
 0x920   : > { %6742 = vst.msk [vmem:[%s463_s0] sm:$0x1] %vm6729_vm10, %v6741_v61 }
 0x921   : > { %9817 = shalt.err (!%p9814_p9)
}
 0x922   : > { %s9818_s27 = scalar_lea.hbm %s12151_s26, 16  ;;  %s9822_s21 = scalar_lea.hbm %s12208_s13, 32 }
 0x923   : > { %p9819_p10 = scmp.ne.s32.totalorder %s12151_s26, %s9818_s27  ;;  %p9823_p13 = scmp.lt.u32.totalorder %s12151_s26, %s12208_s13 }
 0x924   : > { %p9824_p0 = scmp.lt.u32.totalorder %s9822_s21, %s9818_s27  ;;  %p9826_p2 = scmp.lt.u32.totalorder %s9818_s27, %s12151_s26 }
 0x925   : > { %p9820_p11 = pnand %p9819_p10, %p9991_p5 }
 0x926   : > { %p9825_p1 = por %p9824_p0, %p9823_p13 }
 0x927   : > { %p9821_p12 = pneg %p9820_p11 }
 0x928   : > { %p9827_p3 = por %p9826_p2, %p9825_p1 }
 0x92a   : > { %p9828_p4 = pnand %p9827_p3, %p9821_p12 }
 0x92c   : > { %9831 = shalt.err (!%p9828_p4)
}
 0x92d   : > { %9724 = dma.vmem_to_hbm [thread:$0]  (%p9991_p5), %s12153_s3, 16, %s12151_s26, %s6746_s22  }
 0x92e PF: > { %p9735_p7 = scmp.ge.s32.totalorder %s9870_s16, 2  ;;  %s6787_s18 = sand.u32 1, %s9858_s29  }
 0x92f   : > { %s6788_s20 = scalar_lea.sflag [#allocation7], %s6787_s18 }
 0x930   : > { %p9729_p8 = pnand %p9735_p7, %p9995_p6 }
 0x932   : > { %9849 = dma.done.wait (!%p9729_p8), %s6788_s20, 16  }
 0x933   : > { %9851 = vsyncadd (!%p9729_p8), %s6788_s20, 4294967280  ;;  %s6796_s17 = scalar_lea.sflag [#allocation9], %s6787_s18 }
 0x934   : > { %9853 = dma.done.wait (!%p9729_p8), %s6796_s17, 16  }
 0x935   : > { %9855 = vsyncadd (!%p9729_p8), %s6796_s17, 4294967280  ;;  %s12228_s23 = sld [smem:[#allocation12_spill]]  ;;  %p28_p5 = scmp.ge.s32.totalorder %s9978_s19, 4  }
 0x936   : > { %s12229_s29 = smov %s9862_s30  ;;  %s12230_s30 = smov %s9866_s15 }
 0x937   : > { %s12232_s16 = smov %s9978_s19  ;;  %30 = sbr.rel (!%p28_p5) target bundleno = 10 (0xa), region = 151 }
 0x93b   : > { %s12231_s15 = smov %s12228_s23 }
 0x93e   :  { %6800 = vsyncpa [#allocation7], 1 }
 0x93f   :  { %6802 = vsyncpa [#allocation7 + $0x1], 1 }
 0x940   :  { %6803 = vsyncpa [#allocation9], 1 }
 0x941   :  { %6805 = vsyncpa [#allocation9 + $0x1], 1 }

</bundles_post_ra>
